<compile_context>
chip_gen: v5e
topology: v5e:2x2
jax: 0.10.0
libtpu: 0.0.40
codegen_flags: <defaults>
</compile_context>

<pallas_src>
import jax
import jax.numpy as jnp
from jax.experimental import pallas as pl
from jax.experimental.pallas import tpu as pltpu

IN_FEATURES = 50
OUT_FEATURES = 1
LANES = 128           # batch rows folded onto the lane axis of the output
MAX_TILE_ROWS = 256   # 256 row-groups = 32768 batch rows per grid step
LANE_PAD = 128        # minor dim (50 features) pads to 128 lanes in VMEM


def _linear_kernel(x_ref, w_ref, b_ref, o_ref):
    # x_ref: (tile_rows*128, 50) VMEM  -- batch-major, features on lanes
    # w_ref: (1, 50)             VMEM  -- PyTorch weight row (out=1, in=50)
    # b_ref: (1,)                SMEM  -- scalar bias
    # o_ref: (tile_rows, 128)    VMEM  -- lane-dense output tile
    tile_rows, lanes = o_ref.shape
    # Layout-free reshape: splits the sublane axis at a multiple of 8,
    # lane (feature) axis untouched.
    x3 = x_ref[...].reshape(tile_rows, lanes, x_ref.shape[-1])
    prod = x3 * w_ref[...]                  # VPU broadcast multiply
    red = jnp.sum(prod, axis=-1)            # reduce over the 50 features
    o_ref[...] = (red + b_ref[0]).astype(o_ref.dtype)


def model_part2_forward(x, w, b):
    """x: (B, 50) f32, w: (1, 50) f32 (PyTorch layout), b: (1,) f32 -> (B, 1)."""
    B = x.shape[0]

    # Small-batch dispatch: a standalone pallas_call here is pure overhead.
    if B < LANES:
        return x @ w.T + b

    rows = pl.cdiv(B, LANES)  # number of 128-row groups (ceil)

    # Tile sizing:
    #  * tile_rows must be a multiple of 8 (output block sublane rule) or
    #    equal to the full `rows` extent.
    #  * cap at MAX_TILE_ROWS (v7x: 2 x 16 MiB double-buffered input blocks).
    #  * keep >= 2 grid steps when possible (v7x 2-TC sharding + pipelining).
    if rows > MAX_TILE_ROWS:
        tile_rows = MAX_TILE_ROWS
    elif rows >= 16:
        tile_rows = ((pl.cdiv(rows, 2) + 7) // 8) * 8
    else:
        tile_rows = rows
    grid = (pl.cdiv(rows, tile_rows),)

    # VMEM budget with lane padding (50 -> 128) and double buffering, plus
    # headroom for one elementwise temporary and compiler scratch.
    in_block = tile_rows * LANES * LANE_PAD * 4
    out_block = tile_rows * LANES * 4
    vmem_limit = 2 * in_block + 2 * out_block + in_block + (4 << 20)

    out2d = pl.pallas_call(
        _linear_kernel,
        out_shape=jax.ShapeDtypeStruct((rows, LANES), x.dtype),
        grid=grid,
        in_specs=[
            # x stays (B, 50); the ragged boundary block is masked by Pallas.
            pl.BlockSpec((tile_rows * LANES, IN_FEATURES), lambda i: (i, 0)),
            pl.BlockSpec((1, IN_FEATURES), lambda i: (0, 0)),
            pl.BlockSpec(memory_space=pltpu.MemorySpace.SMEM),
        ],
        out_specs=pl.BlockSpec((tile_rows, LANES), lambda i: (i, 0)),
        compiler_params=pltpu.CompilerParams(
            dimension_semantics=("parallel",),
            vmem_limit_bytes=vmem_limit,
        ),
    )(x, w, b)

    # Un-fold the lane-dense output and drop the <128-row ragged tail.
    return out2d.reshape(rows * LANES)[:B].reshape(B, OUT_FEATURES)


def init_params(key):
    # Match PyTorch nn.Linear default init: U(-1/sqrt(in), 1/sqrt(in)).
    kw, kb = jax.random.split(key)
    bound = 1.0 / (IN_FEATURES ** 0.5)
    w = jax.random.uniform(kw, (OUT_FEATURES, IN_FEATURES), jnp.float32, -bound, bound)
    b = jax.random.uniform(kb, (OUT_FEATURES,), jnp.float32, -bound, bound)
    return w, b


if __name__ == "__main__":
    key = jax.random.PRNGKey(0)
    k_x, k_x2, k_p = jax.random.split(key, 3)
    w, b = init_params(k_p)

    # Kernel path: batch large enough to fold onto 128 lanes, deliberately
    # ragged (not a multiple of 128 or of the tile) to exercise boundary
    # masking and a multi-step grid (rows=17 -> tile_rows=16, grid=(2,)).
    B = 2085
    x = jax.random.normal(k_x, (B, IN_FEATURES), jnp.float32)
    y = model_part2_forward(x, w, b)
    jax.block_until_ready(y)
    y_ref = x @ w.T + b
    assert y.shape == (B, OUT_FEATURES)
    assert jnp.allclose(y, y_ref, atol=1e-4, rtol=1e-4), "kernel path mismatch"

    # Small-batch fallback path.
    B2 = 8
    x2 = jax.random.normal(k_x2, (B2, IN_FEATURES), jnp.float32)
    y2 = model_part2_forward(x2, w, b)
    jax.block_until_ready(y2)
    assert y2.shape == (B2, OUT_FEATURES)
    assert jnp.allclose(y2, x2 @ w.T + b, atol=1e-4, rtol=1e-4), "fallback mismatch"

    print("KERNEL_OK")
</pallas_src>

<mosaic_0001>
module attributes {stable_mosaic.version = 11 : i64} {
  func.func @_linear_kernel(%arg0: i32, %arg1: memref<2048x50xf32, #tpu.memory_space<vmem>>, %arg2: memref<1x50xf32, #tpu.memory_space<vmem>>, %arg3: memref<1xf32, #tpu.memory_space<smem>>, %arg4: memref<16x128xf32, #tpu.memory_space<vmem>>) attributes {dimension_semantics = [#tpu.dimension_semantics<parallel>], iteration_bounds = array<i64: 2>, scalar_prefetch = 0 : i64, scratch_operands = 0 : i64, tpu.core_type = #tpu.core_type<tc>, window_params = [{transform_indices = @transform_0, window_bounds = array<i64: 2048, 50>}, {pipeline_mode = #tpu.pipeline_mode<synchronous>, transform_indices = @transform_1, window_bounds = array<i64: 1, 50>}, {transform_indices = @transform_2, window_bounds = array<i64: 1>}, {transform_indices = @transform_3, window_bounds = array<i64: 16, 128>}]} {
    %c0 = arith.constant 0 : index
    %c0_0 = arith.constant 0 : index
    %0 = vector.load %arg1[%c0, %c0_0] : memref<2048x50xf32, #tpu.memory_space<vmem>>, vector<2048x50xf32>
    %1 = vector.shape_cast %0 : vector<2048x50xf32> to vector<16x128x50xf32>
    %c0_1 = arith.constant 0 : index
    %c0_2 = arith.constant 0 : index
    %2 = vector.load %arg2[%c0_1, %c0_2] : memref<1x50xf32, #tpu.memory_space<vmem>>, vector<1x50xf32>
    %3 = vector.shape_cast %2 : vector<1x50xf32> to vector<1x1x50xf32>
    %4 = vector.broadcast %3 : vector<1x1x50xf32> to vector<16x128x50xf32>
    %5 = arith.mulf %1, %4 : vector<16x128x50xf32>
    %cst = arith.constant dense<0.000000e+00> : vector<16x128xf32>
    %6 = vector.multi_reduction <add>, %5, %cst [2] : vector<16x128x50xf32> to vector<16x128xf32>
    %c0_3 = arith.constant 0 : index
    %7 = memref.load %arg3[%c0_3] : memref<1xf32, #tpu.memory_space<smem>>
    %8 = vector.broadcast %7 : f32 to vector<16x128xf32>
    %9 = arith.addf %6, %8 : vector<16x128xf32>
    %c0_4 = arith.constant 0 : index
    %c0_5 = arith.constant 0 : index
    %10 = vector.load %arg4[%c0_4, %c0_5] : memref<16x128xf32, #tpu.memory_space<vmem>>, vector<16x128xf32>
    tpu.vector_store %arg4[%c0_4, %c0_5], %9 {strides = array<i32>} : memref<16x128xf32, #tpu.memory_space<vmem>>, vector<16x128xf32>,
    return
  }
  func.func @transform_0(%arg0: i32) -> (i32, i32) {
    %c0_i32 = arith.constant 0 : i32
    %c0_i32_0 = arith.constant 0 : i32
    return %arg0, %c0_i32 : i32, i32
  }
  func.func @transform_1(%arg0: i32) -> (i32, i32) {
    %c0_i32 = arith.constant 0 : i32
    %c0_i32_0 = arith.constant 0 : i32
    %c0_i32_1 = arith.constant 0 : i32
    return %c0_i32, %c0_i32_0 : i32, i32
  }
  func.func @transform_2(%arg0: i32) -> i32 {
    %c0_i32 = arith.constant 0 : i32
    %c0_i32_0 = arith.constant 0 : i32
    return %c0_i32 : i32
  }
  func.func @transform_3(%arg0: i32) -> (i32, i32) {
    %c0_i32 = arith.constant 0 : i32
    %c0_i32_0 = arith.constant 0 : i32
    return %arg0, %c0_i32 : i32, i32
  }
}

</mosaic_0001>

<bundles_post_ra>
// kernel: tpu_custom_call.1
= control target key start
LH: loop header
LB: loop body
LE: loop exit
PB: predicated region body
PF: predicated region fallthrough
CT: control target
= control target key end

     0   :  { %s4913_s0 = inlined_call_operand.vmem [shape: f32[2085,50], index: 0, kind: input, shape index: {}]   ;;  %s4914_s1 = inlined_call_operand.vmem [shape: f32[1,50], index: 1, kind: input, shape index: {}]   ;;  %s4915_s2 = inlined_call_operand.<no memory space> [shape: f32[1], index: 2, kind: input, shape index: {}]   ;;  %s4916_s3 = inlined_call_operand.hbm [shape: f32[17,128], index: 3, kind: output, shape index: {}]  }
   0x1   :  { %8 = sst [smem:[#allocation2]] %s4915_s2 }
   0x2   :  { %9 = vsyncpa [#allocation4], 0 }
   0x3   :  { %11 = vsyncpa [#allocation4 + $0x1], 0  ;;  %s2796_s14 = smov 0   ;;  %s2798_s15 = smov 0  }
   0x4   :  { %s2800_s16 = smov 0   ;;  %s2802_s17 = smov 0  }
   0x5 LB: > { %s2817_s2 = sadd.s32 4294967295, %s2768_s17   ;;  %s2634_s18 = sadd.s32 4294967294, %s2768_s17   ;;  %s2768_s17 = sphi %s2802_s17, %s5071_s17   ;;  %s2764_s16 = sphi %s2800_s16, %s5070_s16   ;;  %s2760_s15 = sphi %s2798_s15, %s5069_s15   ;;  %s2756_s14 = sphi %s2796_s14, %s5068_s14  }
   0x6   : > { %s2821_s19 = sadd.s32 1, %s2768_s17   ;;  %s92_s20 = sadd.s32 1, %s2764_s16 }
   0x7   : > { %s89_s21 = ssub.s32 %s2768_s17, %s2821_s19  ;;  %p102_p0 = scmp.ne.s32.totalorder %s2764_s16, %s2760_s15 }
   0x8   : > { %p90_p1 = scmp.eq.s32.totalorder %s89_s21, 0  ;;  %p103_p2 = scmp.eq.s32.totalorder %s2817_s2, 1 }
   0x9   : > { %p108_p3 = scmp.ne.s32.totalorder %s2760_s15, %s2756_s14  ;;  %p109_p4 = scmp.eq.s32.totalorder %s2634_s18, 1 }
   0xa   : > { %s2832_s22 = scalar_select %p90_p1, %s2764_s16, %s92_s20  }
   0xb   : > { %p2834_p5 = por %p103_p2, %p102_p0  ;;  %p2838_p6 = por %p109_p4, %p108_p3 }
   0xc   : > { %p2637_p7 = scmp.ge.s32.totalorder %s2768_s17, 1  ;;  %p150_p8 = scmp.lt.s32.totalorder %s2768_s17, 3 }
   0xe   : > { %p151_p9 = pnand %p2637_p7, %p150_p8 }
  0x10   : > { %154 = sbr.rel (%p151_p9) target bundleno = 865 (0x361), region = 32 }
  0x15   : > { %s2639_s25 = sshll.u32 %s2817_s2, 8  ;;  %v2848_v0 = vld [vmem:[%s4914_s1] ss:$0 sm:$0xff]  ;;  %vm713_vm0 = vcmask 408576   ;;  %s1482_s7 = sld [smem:[#allocation2]]  ;;  %vm2001_vm1 = vcmask 130112  }
  0x16   : > { %p183_p10 = scmp.lt.s32.totalorder %s2639_s25, 260  ;;  %vm2005_vm2 = vcmask 195712   ;;  %vm4917_vm3 = vcmask 261312   ;;  %vm2013_vm4 = vcmask 326912   ;;  %vm2017_vm5 = vcmask 392512   ;;  %s175_s10 = sand.u32 1, %s2760_s15  }
  0x17   : > { %vm2021_vm6 = vcmask 458112   ;;  %vm2025_vm7 = vcmask 523712   ;;  %vm2029_vm8 = vcmask 589312   ;;  %vm2033_vm9 = vcmask 654912   ;;  %s2638_s11 = sshll.u32 %s175_s10, 4  ;;  %s4852_s20 = scalar_lea.sflag [#allocation4], %s175_s10 }
  0x18   : > { %s5073_s25 = smov (!%p183_p10, %s2639_s25), 260  ;;  %vm4921_vm10 = vcmask 720512   ;;  %vm4920_vm11 = vcmask 786112   ;;  %vm4923_vm12 = vcmask 851712   ;;  %vm2049_vm13 = vcmask 917312   ;;  %s4201_s12 = scalar_lea.vmem [#allocation3], %s2638_s11 }
  0x19   : > { %s2640_s28 = sshll.u32 %s5073_s25, 3  ;;  %vm2053_vm14 = vcmask 982912   ;;  %vm2057_vm15 = vcmask 1048512   ;;  %s2642_s21 = sshll.u32 (%p2834_p5), %s2817_s2, 1 }
  0x1a   : > { %s2853_s4 = scalar_lea.vmem %s4913_s0, %s2640_s28  ;;  %s2558_s25 = ssub.s32 (%p2834_p5), 3, %s2642_s21 }
  0x1b   : > { %v199_v1 = vld [vmem:[%s2853_s4 + $0x10] sm:$0xff]  ;;  %v197_v2 = vld [vmem:[%s2853_s4] sm:$0xff]  ;;  %v200_v7 = vld [vmem:[%s2853_s4 + $0x18] sm:$0xff]  ;;  %p2559_p11 = scmp.lt.s32.totalorder (%p2834_p5), %s2558_s25, 2 }
  0x1c   : > { %v201_v3 = vld [vmem:[%s2853_s4 + $0x20] sm:$0xff]  ;;  %v459_v4 = vmul.f32 %v2848_v0, %v199_v1  ;;  %v457_v5 = vmul.f32 %v2848_v0, %v197_v2  ;;  %v198_v8 = vld [vmem:[%s2853_s4 + $0x8] sm:$0xff]  ;;  %v460_v13 = vmul.f32 %v2848_v0, %v200_v7  ;;  %v204_v19 = vld [vmem:[%s2853_s4 + $0x38] sm:$0xff] }
  0x1d   : > { %v461_v6 = vmul.f32 %v2848_v0, %v201_v3  ;;  %v202_v12 = vld [vmem:[%s2853_s4 + $0x28] sm:$0xff]  ;;  %v458_v14 = vmul.f32 %v2848_v0, %v198_v8  ;;  %v203_v20 = vld [vmem:[%s2853_s4 + $0x30] sm:$0xff]  ;;  %v205_v21 = vld [vmem:[%s2853_s4 + $0x40] sm:$0xff]  ;;  %v464_v22 = vmul.f32 %v2848_v0, %v204_v19 }
  0x1e   : > { %v720_v9 = vsel %vm713_vm0, %v459_v4, 0.0  ;;  %v714_v10 = vsel %vm713_vm0, %v457_v5, 0.0  ;;  %v462_v15 = vmul.f32 %v2848_v0, %v202_v12  ;;  %v723_v16 = vsel %vm713_vm0, %v460_v13, 0.0  ;;  %v207_v28 = vld [vmem:[%s2853_s4 + $0x50] sm:$0xff]  ;;  %v206_v29 = vld [vmem:[%s2853_s4 + $0x48] sm:$0xff]  ;;  %v208_v30 = vld [vmem:[%s2853_s4 + $0x58] sm:$0xff] }
  0x1f   : > { %v726_v11 = vsel %vm713_vm0, %v461_v6, 0.0  ;;  %721 = vadd.xlane.f32.xlu1 %v720_v9  ;;  %715 = vadd.xlane.f32.xlu0 %v714_v10  ;;  %v717_v17 = vsel %vm713_vm0, %v458_v14, 0.0  ;;  %v463_v23 = vmul.f32 %v2848_v0, %v203_v20  ;;  %v465_v24 = vmul.f32 %v2848_v0, %v205_v21  ;;  %v210_v37 = vld [vmem:[%s2853_s4 + $0x68] sm:$0xff]  ;;  %v209_v38 = vld [vmem:[%s2853_s4 + $0x60] sm:$0xff]  ;;  %v211_v39 = vld [vmem:[%s2853_s4 + $0x70] sm:$0xff] }
  0x20   : > { %727 = vadd.xlane.f32.xlu2 %v726_v11  ;;  %v729_v18 = vsel %vm713_vm0, %v462_v15, 0.0  ;;  %v735_v25 = vsel %vm713_vm0, %v464_v22, 0.0  ;;  %v467_v31 = vmul.f32 %v2848_v0, %v207_v28  ;;  %v466_v32 = vmul.f32 %v2848_v0, %v206_v29  ;;  %v213_v46 = vld [vmem:[%s2853_s4 + $0x80] sm:$0xff]  ;;  %v212_v47 = vld [vmem:[%s2853_s4 + $0x78] sm:$0xff]  ;;  %v214_v48 = vld [vmem:[%s2853_s4 + $0x88] sm:$0xff] }
  0x21   : > { %v732_v26 = vsel %vm713_vm0, %v463_v23, 0.0  ;;  %v738_v27 = vsel %vm713_vm0, %v465_v24, 0.0  ;;  %v468_v33 = vmul.f32 %v2848_v0, %v208_v30  ;;  %v470_v40 = vmul.f32 %v2848_v0, %v210_v37  ;;  %v216_v55 = vld [vmem:[%s2853_s4 + $0x98] sm:$0xff]  ;;  %v215_v56 = vld [vmem:[%s2853_s4 + $0x90] sm:$0xff]  ;;  %v217_v57 = vld [vmem:[%s2853_s4 + $0xa0] sm:$0xff] }
  0x22   : > { %v744_v34 = vsel %vm713_vm0, %v467_v31, 0.0  ;;  %v741_v35 = vsel %vm713_vm0, %v466_v32, 0.0  ;;  %v469_v41 = vmul.f32 %v2848_v0, %v209_v38  ;;  %v471_v42 = vmul.f32 %v2848_v0, %v211_v39  ;;  %v219_v1 = vld [vmem:[%s2853_s4 + $0xb0] sm:$0xff]  ;;  %v218_v2 = vld [vmem:[%s2853_s4 + $0xa8] sm:$0xff]  ;;  %v220_v3 = vld [vmem:[%s2853_s4 + $0xb8] sm:$0xff] }
  0x23   : > { %v747_v36 = vsel %vm713_vm0, %v468_v33, 0.0  ;;  %v753_v43 = vsel %vm713_vm0, %v470_v40, 0.0  ;;  %v473_v49 = vmul.f32 %v2848_v0, %v213_v46  ;;  %v472_v50 = vmul.f32 %v2848_v0, %v212_v47  ;;  %v222_v10 = vld [vmem:[%s2853_s4 + $0xc8] sm:$0xff]  ;;  %v221_v11 = vld [vmem:[%s2853_s4 + $0xc0] sm:$0xff]  ;;  %v223_v12 = vld [vmem:[%s2853_s4 + $0xd0] sm:$0xff] }
  0x24   : > { %v750_v44 = vsel %vm713_vm0, %v469_v41, 0.0  ;;  %v756_v45 = vsel %vm713_vm0, %v471_v42, 0.0  ;;  %v474_v51 = vmul.f32 %v2848_v0, %v214_v48  ;;  %v476_v58 = vmul.f32 %v2848_v0, %v216_v55  ;;  %v225_v19 = vld [vmem:[%s2853_s4 + $0xe0] sm:$0xff]  ;;  %v224_v20 = vld [vmem:[%s2853_s4 + $0xd8] sm:$0xff]  ;;  %v226_v21 = vld [vmem:[%s2853_s4 + $0xe8] sm:$0xff] }
  0x25   : > { %v762_v52 = vsel %vm713_vm0, %v473_v49, 0.0  ;;  %v759_v53 = vsel %vm713_vm0, %v472_v50, 0.0  ;;  %v475_v59 = vmul.f32 %v2848_v0, %v215_v56  ;;  %v477_v60 = vmul.f32 %v2848_v0, %v217_v57  ;;  %v228_v28 = vld [vmem:[%s2853_s4 + $0xf8] sm:$0xff]  ;;  %v227_v29 = vld [vmem:[%s2853_s4 + $0xf0] sm:$0xff]  ;;  %v229_v30 = vld [vmem:[%s2853_s4 + $0x100] sm:$0xff] }
  0x26   : > { %v765_v54 = vsel %vm713_vm0, %v474_v51, 0.0  ;;  %v771_v61 = vsel %vm713_vm0, %v476_v58, 0.0  ;;  %v479_v4 = vmul.f32 %v2848_v0, %v219_v1  ;;  %v478_v5 = vmul.f32 %v2848_v0, %v218_v2  ;;  %v231_v37 = vld [vmem:[%s2853_s4 + $0x110] sm:$0xff]  ;;  %v230_v38 = vld [vmem:[%s2853_s4 + $0x108] sm:$0xff]  ;;  %v232_v39 = vld [vmem:[%s2853_s4 + $0x118] sm:$0xff] }
  0x27   : > { %724 = vadd.xlane.f32.xlu1 %v723_v16  ;;  %718 = vadd.xlane.f32.xlu0 %v717_v17  ;;  %v768_v62 = vsel %vm713_vm0, %v475_v59, 0.0  ;;  %v774_v63 = vsel %vm713_vm0, %v477_v60, 0.0  ;;  %v480_v6 = vmul.f32 %v2848_v0, %v220_v3  ;;  %v482_v13 = vmul.f32 %v2848_v0, %v222_v10  ;;  %v234_v46 = vld [vmem:[%s2853_s4 + $0x128] sm:$0xff]  ;;  %v233_v47 = vld [vmem:[%s2853_s4 + $0x120] sm:$0xff]  ;;  %v235_v48 = vld [vmem:[%s2853_s4 + $0x130] sm:$0xff] }
  0x28   : > { %730 = vadd.xlane.f32.xlu2 %v729_v18  ;;  %v780_v7 = vsel %vm713_vm0, %v479_v4, 0.0  ;;  %v777_v8 = vsel %vm713_vm0, %v478_v5, 0.0  ;;  %v481_v14 = vmul.f32 %v2848_v0, %v221_v11  ;;  %v483_v15 = vmul.f32 %v2848_v0, %v223_v12  ;;  %v237_v55 = vld [vmem:[%s2853_s4 + $0x140] sm:$0xff]  ;;  %v236_v56 = vld [vmem:[%s2853_s4 + $0x138] sm:$0xff]  ;;  %v238_v57 = vld [vmem:[%s2853_s4 + $0x148] sm:$0xff] }
  0x29   : > { %v783_v9 = vsel %vm713_vm0, %v480_v6, 0.0  ;;  %v789_v16 = vsel %vm713_vm0, %v482_v13, 0.0  ;;  %v485_v22 = vmul.f32 %v2848_v0, %v225_v19  ;;  %v484_v23 = vmul.f32 %v2848_v0, %v224_v20  ;;  %v240_v1 = vld [vmem:[%s2853_s4 + $0x158] sm:$0xff]  ;;  %v239_v2 = vld [vmem:[%s2853_s4 + $0x150] sm:$0xff]  ;;  %v241_v3 = vld [vmem:[%s2853_s4 + $0x160] sm:$0xff] }
  0x2a   : > { %v786_v17 = vsel %vm713_vm0, %v481_v14, 0.0  ;;  %v792_v18 = vsel %vm713_vm0, %v483_v15, 0.0  ;;  %v486_v24 = vmul.f32 %v2848_v0, %v226_v21  ;;  %v488_v31 = vmul.f32 %v2848_v0, %v228_v28  ;;  %v243_v10 = vld [vmem:[%s2853_s4 + $0x170] sm:$0xff]  ;;  %v242_v11 = vld [vmem:[%s2853_s4 + $0x168] sm:$0xff]  ;;  %v244_v12 = vld [vmem:[%s2853_s4 + $0x178] sm:$0xff] }
  0x2b   : > { %v487_v32 = vmul.f32 %v2848_v0, %v227_v29  ;;  %v489_v33 = vmul.f32 %v2848_v0, %v229_v30  ;;  %v491_v40 = vmul.f32 %v2848_v0, %v231_v37  ;;  %v490_v41 = vmul.f32 %v2848_v0, %v230_v38 }
  0x2c   : > { %v492_v42 = vmul.f32 %v2848_v0, %v232_v39  ;;  %v494_v49 = vmul.f32 %v2848_v0, %v234_v46  ;;  %v493_v50 = vmul.f32 %v2848_v0, %v233_v47  ;;  %v495_v51 = vmul.f32 %v2848_v0, %v235_v48  ;;  %v252_v46 = vld [vmem:[%s2853_s4 + $0x1b8] sm:$0xff]  ;;  %v251_v47 = vld [vmem:[%s2853_s4 + $0x1b0] sm:$0xff]  ;;  %v253_v48 = vld [vmem:[%s2853_s4 + $0x1c0] sm:$0xff] }
  0x2d   : > { %v497_v58 = vmul.f32 %v2848_v0, %v237_v55  ;;  %v496_v59 = vmul.f32 %v2848_v0, %v236_v56  ;;  %v498_v60 = vmul.f32 %v2848_v0, %v238_v57  ;;  %v500_v4 = vmul.f32 %v2848_v0, %v240_v1 }
  0x2e   : > { %v499_v5 = vmul.f32 %v2848_v0, %v239_v2  ;;  %v501_v6 = vmul.f32 %v2848_v0, %v241_v3  ;;  %v503_v13 = vmul.f32 %v2848_v0, %v243_v10  ;;  %v502_v14 = vmul.f32 %v2848_v0, %v242_v11 }
  0x2f   : > { %736 = vadd.xlane.f32.xlu1 %v735_v25  ;;  %733 = vadd.xlane.f32.xlu0 %v732_v26  ;;  %v798_v25 = vsel %vm713_vm0, %v485_v22, 0.0  ;;  %v795_v26 = vsel %vm713_vm0, %v484_v23, 0.0  ;;  %v504_v15 = vmul.f32 %v2848_v0, %v244_v12  ;;  %v246_v22 = vld [vmem:[%s2853_s4 + $0x188] sm:$0xff]  ;;  %v245_v23 = vld [vmem:[%s2853_s4 + $0x180] sm:$0xff] }
  0x30   : > { %739 = vadd.xlane.f32.xlu2 %v738_v27  ;;  %v801_v27 = vsel %vm713_vm0, %v486_v24, 0.0  ;;  %v852_v19 = vsel %vm713_vm0, %v503_v13, 0.0  ;;  %v849_v20 = vsel %vm713_vm0, %v502_v14, 0.0  ;;  %v247_v24 = vld [vmem:[%s2853_s4 + $0x190] sm:$0xff] }
  0x31   : > { %v855_v21 = vsel %vm713_vm0, %v504_v15, 0.0 }
  0x37   : > { %745 = vadd.xlane.f32.xlu1 %v744_v34  ;;  %742 = vadd.xlane.f32.xlu0 %v741_v35  ;;  %v807_v34 = vsel %vm713_vm0, %v488_v31, 0.0  ;;  %v804_v35 = vsel %vm713_vm0, %v487_v32, 0.0 }
  0x38   : > { %748 = vadd.xlane.f32.xlu2 %v747_v36  ;;  %v810_v36 = vsel %vm713_vm0, %v489_v33, 0.0 }
  0x3f   : > { %754 = vadd.xlane.f32.xlu1 %v753_v43  ;;  %751 = vadd.xlane.f32.xlu0 %v750_v44  ;;  %v816_v43 = vsel %vm713_vm0, %v491_v40, 0.0  ;;  %v813_v44 = vsel %vm713_vm0, %v490_v41, 0.0 }
  0x40   : > { %757 = vadd.xlane.f32.xlu2 %v756_v45  ;;  %v819_v45 = vsel %vm713_vm0, %v492_v42, 0.0 }
  0x47   : > { %763 = vadd.xlane.f32.xlu1 %v762_v52  ;;  %760 = vadd.xlane.f32.xlu0 %v759_v53  ;;  %v825_v52 = vsel %vm713_vm0, %v494_v49, 0.0  ;;  %v822_v53 = vsel %vm713_vm0, %v493_v50, 0.0  ;;  %v512_v49 = vmul.f32 %v2848_v0, %v252_v46  ;;  %v511_v50 = vmul.f32 %v2848_v0, %v251_v47 }
  0x48   : > { %766 = vadd.xlane.f32.xlu2 %v765_v54  ;;  %v828_v54 = vsel %vm713_vm0, %v495_v51, 0.0  ;;  %v513_v51 = vmul.f32 %v2848_v0, %v253_v48 }
  0x49   : > { %v879_v55 = vsel %vm713_vm0, %v512_v49, 0.0  ;;  %v876_v56 = vsel %vm713_vm0, %v511_v50, 0.0 }
  0x4a   : > { %v882_v57 = vsel %vm713_vm0, %v513_v51, 0.0 }
  0x4f   : > { %772 = vadd.xlane.f32.xlu1 %v771_v61  ;;  %769 = vadd.xlane.f32.xlu0 %v768_v62  ;;  %v834_v61 = vsel %vm713_vm0, %v497_v58, 0.0  ;;  %v831_v62 = vsel %vm713_vm0, %v496_v59, 0.0  ;;  %v255_v58 = vld [vmem:[%s2853_s4 + $0x1d0] sm:$0xff]  ;;  %v254_v59 = vld [vmem:[%s2853_s4 + $0x1c8] sm:$0xff] }
  0x50   : > { %775 = vadd.xlane.f32.xlu2 %v774_v63  ;;  %v837_v63 = vsel %vm713_vm0, %v498_v60, 0.0  ;;  %v256_v60 = vld [vmem:[%s2853_s4 + $0x1d8] sm:$0xff] }
  0x57   : > { %781 = vadd.xlane.f32.xlu1 %v780_v7  ;;  %778 = vadd.xlane.f32.xlu0 %v777_v8  ;;  %v843_v7 = vsel %vm713_vm0, %v500_v4, 0.0  ;;  %v840_v8 = vsel %vm713_vm0, %v499_v5, 0.0 }
  0x58   : > { %784 = vadd.xlane.f32.xlu2 %v783_v9  ;;  %v846_v9 = vsel %vm713_vm0, %v501_v6, 0.0 }
  0x5f   : > { %790 = vadd.xlane.f32.xlu1 %v789_v16  ;;  %787 = vadd.xlane.f32.xlu0 %v786_v17 }
  0x60   : > { %793 = vadd.xlane.f32.xlu2 %v792_v18 }
  0x67   : > { %799 = vadd.xlane.f32.xlu1 %v798_v25  ;;  %796 = vadd.xlane.f32.xlu0 %v795_v26  ;;  %v506_v25 = vmul.f32 %v2848_v0, %v246_v22  ;;  %v505_v26 = vmul.f32 %v2848_v0, %v245_v23  ;;  %v261_v22 = vld [vmem:[%s2853_s4 + $0x200] sm:$0xff]  ;;  %v260_v23 = vld [vmem:[%s2853_s4 + $0x1f8] sm:$0xff] }
  0x68   : > { %802 = vadd.xlane.f32.xlu2 %v801_v27  ;;  %v507_v27 = vmul.f32 %v2848_v0, %v247_v24  ;;  %v262_v24 = vld [vmem:[%s2853_s4 + $0x208] sm:$0xff] }
  0x69   : > { %v861_v31 = vsel %vm713_vm0, %v506_v25, 0.0  ;;  %v858_v32 = vsel %vm713_vm0, %v505_v26, 0.0  ;;  %v521_v25 = vmul.f32 %v2848_v0, %v261_v22  ;;  %v520_v26 = vmul.f32 %v2848_v0, %v260_v23 }
  0x6a   : > { %v864_v33 = vsel %vm713_vm0, %v507_v27, 0.0  ;;  %v522_v27 = vmul.f32 %v2848_v0, %v262_v24 }
  0x6f   : > { %808 = vadd.xlane.f32.xlu1 %v807_v34  ;;  %805 = vadd.xlane.f32.xlu0 %v804_v35  ;;  %v249_v34 = vld [vmem:[%s2853_s4 + $0x1a0] sm:$0xff]  ;;  %v248_v35 = vld [vmem:[%s2853_s4 + $0x198] sm:$0xff] }
  0x70   : > { %811 = vadd.xlane.f32.xlu2 %v810_v36  ;;  %v250_v36 = vld [vmem:[%s2853_s4 + $0x1a8] sm:$0xff]  ;;  %v509_v37 = vmul.f32 %v2848_v0, %v249_v34  ;;  %v508_v38 = vmul.f32 %v2848_v0, %v248_v35  ;;  %v906_v34 = vsel %vm713_vm0, %v521_v25, 0.0  ;;  %v903_v35 = vsel %vm713_vm0, %v520_v26, 0.0  ;;  %v273_v25 = vld [vmem:[%s2853_s4 + $0x260] sm:$0xff]  ;;  %v272_v26 = vld [vmem:[%s2853_s4 + $0x258] sm:$0xff] }
  0x71   : > { %v510_v39 = vmul.f32 %v2848_v0, %v250_v36  ;;  %v909_v36 = vsel %vm713_vm0, %v522_v27, 0.0  ;;  %v274_v27 = vld [vmem:[%s2853_s4 + $0x268] sm:$0xff] }
  0x77   : > { %817 = vadd.xlane.f32.xlu1 %v816_v43  ;;  %814 = vadd.xlane.f32.xlu0 %v813_v44  ;;  %v870_v43 = vsel %vm713_vm0, %v509_v37, 0.0  ;;  %v867_v44 = vsel %vm713_vm0, %v508_v38, 0.0  ;;  %v264_v37 = vld [vmem:[%s2853_s4 + $0x218] sm:$0xff]  ;;  %v263_v38 = vld [vmem:[%s2853_s4 + $0x210] sm:$0xff] }
  0x78   : > { %820 = vadd.xlane.f32.xlu2 %v819_v45  ;;  %v873_v45 = vsel %vm713_vm0, %v510_v39, 0.0  ;;  %v265_v39 = vld [vmem:[%s2853_s4 + $0x220] sm:$0xff] }
  0x7f   : > { %826 = vadd.xlane.f32.xlu1 %v825_v52  ;;  %823 = vadd.xlane.f32.xlu0 %v822_v53 }
  0x80   : > { %829 = vadd.xlane.f32.xlu2 %v828_v54 }
  0x87   : > { %835 = vadd.xlane.f32.xlu1 %v834_v61  ;;  %832 = vadd.xlane.f32.xlu0 %v831_v62  ;;  %v515_v61 = vmul.f32 %v2848_v0, %v255_v58  ;;  %v514_v62 = vmul.f32 %v2848_v0, %v254_v59 }
  0x88   : > { %838 = vadd.xlane.f32.xlu2 %v837_v63  ;;  %v516_v63 = vmul.f32 %v2848_v0, %v256_v60 }
  0x89   : > { %v888_v4 = vsel %vm713_vm0, %v515_v61, 0.0  ;;  %v885_v5 = vsel %vm713_vm0, %v514_v62, 0.0 }
  0x8a   : > { %v891_v6 = vsel %vm713_vm0, %v516_v63, 0.0 }
  0x8f   : > { %844 = vadd.xlane.f32.xlu1 %v843_v7  ;;  %841 = vadd.xlane.f32.xlu0 %v840_v8  ;;  %v258_v7 = vld [vmem:[%s2853_s4 + $0x1e8] sm:$0xff]  ;;  %v257_v8 = vld [vmem:[%s2853_s4 + $0x1e0] sm:$0xff] }
  0x90   : > { %847 = vadd.xlane.f32.xlu2 %v846_v9  ;;  %v259_v9 = vld [vmem:[%s2853_s4 + $0x1f0] sm:$0xff]  ;;  %v518_v10 = vmul.f32 %v2848_v0, %v258_v7  ;;  %v517_v11 = vmul.f32 %v2848_v0, %v257_v8  ;;  %v270_v7 = vld [vmem:[%s2853_s4 + $0x248] sm:$0xff]  ;;  %v269_v8 = vld [vmem:[%s2853_s4 + $0x240] sm:$0xff] }
  0x91   : > { %v519_v12 = vmul.f32 %v2848_v0, %v259_v9  ;;  %v271_v9 = vld [vmem:[%s2853_s4 + $0x250] sm:$0xff] }
  0x92   : > { %v2996_v16 = vpop.xlane.xlu1 %721  ;;  %v2998_v17 = vpop.xlane.xlu0 %715 }
  0x93   : > { %v3000_v18 = vpop.xlane.xlu2 %727 }
  0x97   : > { %853 = vadd.xlane.f32.xlu1 %v852_v19  ;;  %850 = vadd.xlane.f32.xlu0 %v849_v20  ;;  %v897_v19 = vsel %vm713_vm0, %v518_v10, 0.0  ;;  %v894_v20 = vsel %vm713_vm0, %v517_v11, 0.0  ;;  %v530_v10 = vmul.f32 %v2848_v0, %v270_v7  ;;  %v529_v11 = vmul.f32 %v2848_v0, %v269_v8  ;;  %v279_v7 = vld [vmem:[%s2853_s4 + $0x290] sm:$0xff]  ;;  %v278_v8 = vld [vmem:[%s2853_s4 + $0x288] sm:$0xff] }
  0x98   : > { %856 = vadd.xlane.f32.xlu2 %v855_v21  ;;  %v900_v21 = vsel %vm713_vm0, %v519_v12, 0.0  ;;  %v531_v12 = vmul.f32 %v2848_v0, %v271_v9  ;;  %v280_v9 = vld [vmem:[%s2853_s4 + $0x298] sm:$0xff] }
  0x99   : > { %v933_v22 = vsel %vm713_vm0, %v530_v10, 0.0  ;;  %v930_v23 = vsel %vm713_vm0, %v529_v11, 0.0  ;;  %v539_v10 = vmul.f32 %v2848_v0, %v279_v7  ;;  %v538_v11 = vmul.f32 %v2848_v0, %v278_v8 }
  0x9a   : > { %v3011_v28 = vpop.xlane.xlu1 %724  ;;  %v3013_v29 = vpop.xlane.xlu0 %718  ;;  %v936_v24 = vsel %vm713_vm0, %v531_v12, 0.0  ;;  %v540_v12 = vmul.f32 %v2848_v0, %v280_v9 }
  0x9b   : > { %v3015_v30 = vpop.xlane.xlu2 %730 }
  0x9f   : > { %862 = vadd.xlane.f32.xlu1 %v861_v31  ;;  %859 = vadd.xlane.f32.xlu0 %v858_v32 }
  0xa0   : > { %865 = vadd.xlane.f32.xlu2 %v864_v33 }
  0xa2   : > { %v3026_v40 = vpop.xlane.xlu1 %736  ;;  %v3028_v41 = vpop.xlane.xlu0 %733 }
  0xa3   : > { %v3030_v42 = vpop.xlane.xlu2 %739 }
  0xa7   : > { %871 = vadd.xlane.f32.xlu1 %v870_v43  ;;  %868 = vadd.xlane.f32.xlu0 %v867_v44  ;;  %v524_v43 = vmul.f32 %v2848_v0, %v264_v37  ;;  %v523_v44 = vmul.f32 %v2848_v0, %v263_v38 }
  0xa8   : > { %874 = vadd.xlane.f32.xlu2 %v873_v45  ;;  %v525_v45 = vmul.f32 %v2848_v0, %v265_v39 }
  0xa9   : > { %v915_v49 = vsel %vm713_vm0, %v524_v43, 0.0  ;;  %v912_v50 = vsel %vm713_vm0, %v523_v44, 0.0 }
  0xaa   : > { %v3041_v52 = vpop.xlane.xlu1 %745  ;;  %v3043_v53 = vpop.xlane.xlu0 %742  ;;  %v918_v51 = vsel %vm713_vm0, %v525_v45, 0.0 }
  0xab   : > { %v3045_v54 = vpop.xlane.xlu2 %748 }
  0xaf   : > { %880 = vadd.xlane.f32.xlu1 %v879_v55  ;;  %877 = vadd.xlane.f32.xlu0 %v876_v56  ;;  %v267_v55 = vld [vmem:[%s2853_s4 + $0x230] sm:$0xff]  ;;  %v266_v56 = vld [vmem:[%s2853_s4 + $0x228] sm:$0xff] }
  0xb0   : > { %883 = vadd.xlane.f32.xlu2 %v882_v57  ;;  %v268_v57 = vld [vmem:[%s2853_s4 + $0x238] sm:$0xff]  ;;  %v527_v58 = vmul.f32 %v2848_v0, %v267_v55  ;;  %v526_v59 = vmul.f32 %v2848_v0, %v266_v56 }
  0xb1   : > { %v528_v60 = vmul.f32 %v2848_v0, %v268_v57 }
  0xb2   : > { %v3056_v1 = vpop.xlane.xlu1 %754  ;;  %v3058_v2 = vpop.xlane.xlu0 %751 }
  0xb3   : > { %v3060_v3 = vpop.xlane.xlu2 %757 }
  0xb7   : > { %889 = vadd.xlane.f32.xlu1 %v888_v4  ;;  %886 = vadd.xlane.f32.xlu0 %v885_v5  ;;  %v924_v4 = vsel %vm713_vm0, %v527_v58, 0.0  ;;  %v921_v5 = vsel %vm713_vm0, %v526_v59, 0.0 }
  0xb8   : > { %892 = vadd.xlane.f32.xlu2 %v891_v6  ;;  %v927_v6 = vsel %vm713_vm0, %v528_v60, 0.0 }
  0xba   : > { %v3071_v13 = vpop.xlane.xlu1 %763  ;;  %v3073_v14 = vpop.xlane.xlu0 %760 }
  0xbb   : > { %v3075_v15 = vpop.xlane.xlu2 %766 }
  0xbf   : > { %898 = vadd.xlane.f32.xlu1 %v897_v19  ;;  %895 = vadd.xlane.f32.xlu0 %v894_v20 }
  0xc0   : > { %901 = vadd.xlane.f32.xlu2 %v900_v21 }
  0xc2   : > { %v3086_v31 = vpop.xlane.xlu1 %772  ;;  %v3088_v32 = vpop.xlane.xlu0 %769 }
  0xc3   : > { %v3090_v33 = vpop.xlane.xlu2 %775 }
  0xc7   : > { %907 = vadd.xlane.f32.xlu1 %v906_v34  ;;  %904 = vadd.xlane.f32.xlu0 %v903_v35  ;;  %v533_v34 = vmul.f32 %v2848_v0, %v273_v25  ;;  %v532_v35 = vmul.f32 %v2848_v0, %v272_v26  ;;  %v960_v25 = vsel %vm713_vm0, %v539_v10, 0.0  ;;  %v957_v26 = vsel %vm713_vm0, %v538_v11, 0.0 }
  0xc8   : > { %910 = vadd.xlane.f32.xlu2 %v909_v36  ;;  %v534_v36 = vmul.f32 %v2848_v0, %v274_v27  ;;  %v963_v27 = vsel %vm713_vm0, %v540_v12, 0.0 }
  0xc9   : > { %v942_v43 = vsel %vm713_vm0, %v533_v34, 0.0  ;;  %v939_v44 = vsel %vm713_vm0, %v532_v35, 0.0  ;;  %v282_v34 = vld [vmem:[%s2853_s4 + $0x2a8] sm:$0xff]  ;;  %v281_v35 = vld [vmem:[%s2853_s4 + $0x2a0] sm:$0xff] }
  0xca   : > { %v3101_v46 = vpop.xlane.xlu1 %781  ;;  %v3103_v47 = vpop.xlane.xlu0 %778  ;;  %v945_v45 = vsel %vm713_vm0, %v534_v36, 0.0  ;;  %v283_v36 = vld [vmem:[%s2853_s4 + $0x2b0] sm:$0xff] }
  0xcb   : > { %v3105_v48 = vpop.xlane.xlu2 %784 }
  0xcf   : > { %916 = vadd.xlane.f32.xlu1 %v915_v49  ;;  %913 = vadd.xlane.f32.xlu0 %v912_v50  ;;  %v276_v49 = vld [vmem:[%s2853_s4 + $0x278] sm:$0xff]  ;;  %v275_v50 = vld [vmem:[%s2853_s4 + $0x270] sm:$0xff] }
  0xd0   : > { %919 = vadd.xlane.f32.xlu2 %v918_v51  ;;  %v277_v51 = vld [vmem:[%s2853_s4 + $0x280] sm:$0xff]  ;;  %v536_v55 = vmul.f32 %v2848_v0, %v276_v49  ;;  %v535_v56 = vmul.f32 %v2848_v0, %v275_v50 }
  0xd1   : > { %v537_v57 = vmul.f32 %v2848_v0, %v277_v51 }
  0xd2   : > { %v3116_v61 = vpop.xlane.xlu1 %790  ;;  %v3118_v62 = vpop.xlane.xlu0 %787 }
  0xd3   : > { %v3120_v63 = vpop.xlane.xlu2 %793 }
  0xd7   : > { %925 = vadd.xlane.f32.xlu1 %v924_v4  ;;  %922 = vadd.xlane.f32.xlu0 %v921_v5  ;;  %v951_v4 = vsel %vm713_vm0, %v536_v55, 0.0  ;;  %v948_v5 = vsel %vm713_vm0, %v535_v56, 0.0 }
  0xd8   : > { %928 = vadd.xlane.f32.xlu2 %v927_v6  ;;  %v954_v6 = vsel %vm713_vm0, %v537_v57, 0.0 }
  0xda   : > { %v3131_v19 = vpop.xlane.xlu1 %799  ;;  %v3133_v20 = vpop.xlane.xlu0 %796 }
  0xdb   : > { %v3135_v21 = vpop.xlane.xlu2 %802 }
  0xdf   : > { %934 = vadd.xlane.f32.xlu1 %v933_v22  ;;  %931 = vadd.xlane.f32.xlu0 %v930_v23 }
  0xe0   : > { %937 = vadd.xlane.f32.xlu2 %v936_v24 }
  0xe2   : > { %v3146_v37 = vpop.xlane.xlu1 %808  ;;  %v3148_v38 = vpop.xlane.xlu0 %805 }
  0xe3   : > { %4929 = vst [vmem:[#allocation6_spill] sm:$0xff] %v3148_v38  ;;  %v3150_v39 = vpop.xlane.xlu2 %811 }
  0xe7   : > { %943 = vadd.xlane.f32.xlu1 %v942_v43  ;;  %940 = vadd.xlane.f32.xlu0 %v939_v44  ;;  %v542_v43 = vmul.f32 %v2848_v0, %v282_v34  ;;  %v541_v44 = vmul.f32 %v2848_v0, %v281_v35  ;;  %v288_v34 = vld [vmem:[%s2853_s4 + $0x2d8] sm:$0xff]  ;;  %v287_v35 = vld [vmem:[%s2853_s4 + $0x2d0] sm:$0xff] }
  0xe8   : > { %946 = vadd.xlane.f32.xlu2 %v945_v45  ;;  %v543_v45 = vmul.f32 %v2848_v0, %v283_v36  ;;  %v289_v36 = vld [vmem:[%s2853_s4 + $0x2e0] sm:$0xff] }
  0xe9   : > { %v969_v55 = vsel %vm713_vm0, %v542_v43, 0.0  ;;  %v966_v56 = vsel %vm713_vm0, %v541_v44, 0.0  ;;  %v548_v43 = vmul.f32 %v2848_v0, %v288_v34  ;;  %v547_v44 = vmul.f32 %v2848_v0, %v287_v35 }
  0xea   : > { %v3161_v58 = vpop.xlane.xlu1 %817  ;;  %v3163_v59 = vpop.xlane.xlu0 %814  ;;  %v972_v57 = vsel %vm713_vm0, %v543_v45, 0.0  ;;  %v549_v45 = vmul.f32 %v2848_v0, %v289_v36 }
  0xeb   : > { %v3165_v60 = vpop.xlane.xlu2 %820 }
  0xef   : > { %952 = vadd.xlane.f32.xlu1 %v951_v4  ;;  %949 = vadd.xlane.f32.xlu0 %v948_v5  ;;  %v285_v4 = vld [vmem:[%s2853_s4 + $0x2c0] sm:$0xff]  ;;  %v284_v5 = vld [vmem:[%s2853_s4 + $0x2b8] sm:$0xff] }
  0xf0   : > { %955 = vadd.xlane.f32.xlu2 %v954_v6  ;;  %v286_v6 = vld [vmem:[%s2853_s4 + $0x2c8] sm:$0xff]  ;;  %v545_v7 = vmul.f32 %v2848_v0, %v285_v4  ;;  %v544_v8 = vmul.f32 %v2848_v0, %v284_v5  ;;  %v987_v4 = vsel %vm713_vm0, %v548_v43, 0.0  ;;  %v984_v5 = vsel %vm713_vm0, %v547_v44, 0.0 }
  0xf1   : > { %v546_v9 = vmul.f32 %v2848_v0, %v286_v6  ;;  %v990_v6 = vsel %vm713_vm0, %v549_v45, 0.0 }
  0xf2   : > { %v3176_v22 = vpop.xlane.xlu1 %826  ;;  %v3178_v23 = vpop.xlane.xlu0 %823 }
  0xf3   : > { %v3180_v24 = vpop.xlane.xlu2 %829 }
  0xf7   : > { %961 = vadd.xlane.f32.xlu1 %v960_v25  ;;  %958 = vadd.xlane.f32.xlu0 %v957_v26  ;;  %v978_v25 = vsel %vm713_vm0, %v545_v7, 0.0  ;;  %v975_v26 = vsel %vm713_vm0, %v544_v8, 0.0  ;;  %v291_v7 = vld [vmem:[%s2853_s4 + $0x2f0] sm:$0xff]  ;;  %v290_v8 = vld [vmem:[%s2853_s4 + $0x2e8] sm:$0xff] }
  0xf8   : > { %964 = vadd.xlane.f32.xlu2 %v963_v27  ;;  %v981_v27 = vsel %vm713_vm0, %v546_v9, 0.0  ;;  %v292_v9 = vld [vmem:[%s2853_s4 + $0x2f8] sm:$0xff] }
  0xfa   : > { %v3191_v49 = vpop.xlane.xlu1 %835  ;;  %v3193_v50 = vpop.xlane.xlu0 %832 }
  0xfb   : > { %v3195_v51 = vpop.xlane.xlu2 %838 }
  0xff   : > { %970 = vadd.xlane.f32.xlu1 %v969_v55  ;;  %967 = vadd.xlane.f32.xlu0 %v966_v56 }
 0x100   : > { %973 = vadd.xlane.f32.xlu2 %v972_v57 }
 0x102   : > { %v3206_v10 = vpop.xlane.xlu1 %844  ;;  %v3208_v11 = vpop.xlane.xlu0 %841 }
 0x103   : > { %4930 = vst [vmem:[#allocation7_spill] sm:$0xff] %v3206_v10  ;;  %v3210_v12 = vpop.xlane.xlu2 %847  ;;  %v325_v10 = vld [vmem:[%s2853_s4 + $0x400] sm:$0xff] }
 0x104   : > { %4931 = vst [vmem:[#allocation8_spill] sm:$0xff] %v3210_v12  ;;  %v321_v12 = vld [vmem:[%s2853_s4 + $0x3e0] sm:$0xff] }
 0x107   : > { %979 = vadd.xlane.f32.xlu1 %v978_v25  ;;  %976 = vadd.xlane.f32.xlu0 %v975_v26  ;;  %v551_v25 = vmul.f32 %v2848_v0, %v291_v7  ;;  %v550_v26 = vmul.f32 %v2848_v0, %v290_v8 }
 0x108   : > { %982 = vadd.xlane.f32.xlu2 %v981_v27  ;;  %v552_v27 = vmul.f32 %v2848_v0, %v292_v9 }
 0x109   : > { %v996_v43 = vsel %vm713_vm0, %v551_v25, 0.0  ;;  %v993_v44 = vsel %vm713_vm0, %v550_v26, 0.0 }
 0x10a   : > { %v3221_v55 = vpop.xlane.xlu1 %853  ;;  %v3223_v56 = vpop.xlane.xlu0 %850  ;;  %v999_v45 = vsel %vm713_vm0, %v552_v27, 0.0 }
 0x10b   : > { %4932 = vst [vmem:[#allocation9_spill] sm:$0xff] %v3221_v55  ;;  %v3225_v57 = vpop.xlane.xlu2 %856 }
 0x10c   : > { %4933 = vst [vmem:[#allocation10_spill] sm:$0xff] %v3223_v56 }
 0x10d   : > { %4934 = vst [vmem:[#allocation11_spill] sm:$0xff] %v3225_v57 }
 0x10f   : > { %988 = vadd.xlane.f32.xlu1 %v987_v4  ;;  %985 = vadd.xlane.f32.xlu0 %v984_v5  ;;  %v294_v4 = vld [vmem:[%s2853_s4 + $0x308] sm:$0xff]  ;;  %v293_v5 = vld [vmem:[%s2853_s4 + $0x300] sm:$0xff] }
 0x110   : > { %991 = vadd.xlane.f32.xlu2 %v990_v6  ;;  %v295_v6 = vld [vmem:[%s2853_s4 + $0x310] sm:$0xff]  ;;  %v554_v7 = vmul.f32 %v2848_v0, %v294_v4  ;;  %v553_v8 = vmul.f32 %v2848_v0, %v293_v5  ;;  %v298_v4 = vld [vmem:[%s2853_s4 + $0x328] sm:$0xff] }
 0x111   : > { %v555_v9 = vmul.f32 %v2848_v0, %v295_v6  ;;  %v558_v56 = vmul.f32 %v2848_v0, %v298_v4 }
 0x112   : > { %v3236_v34 = vpop.xlane.xlu1 %862  ;;  %v3238_v35 = vpop.xlane.xlu0 %859  ;;  %v1005_v57 = vsel %vm713_vm0, %v554_v7, 0.0  ;;  %v1002_v55 = vsel %vm713_vm0, %v553_v8, 0.0 }
 0x113   : > { %v3240_v36 = vpop.xlane.xlu2 %865 }
 0x114   : > { %4935 = vst [vmem:[#allocation12_spill] sm:$0xff] %v3240_v36  ;;  %v323_v36 = vld [vmem:[%s2853_s4 + $0x3f0] sm:$0xff] }
 0x117   : > { %997 = vadd.xlane.f32.xlu1 %v996_v43  ;;  %994 = vadd.xlane.f32.xlu0 %v993_v44  ;;  %v1008_v43 = vsel %vm713_vm0, %v555_v9, 0.0  ;;  %v297_v44 = vld [vmem:[%s2853_s4 + $0x320] sm:$0xff] }
 0x118   : > { %1000 = vadd.xlane.f32.xlu2 %v999_v45  ;;  %v296_v45 = vld [vmem:[%s2853_s4 + $0x318] sm:$0xff]  ;;  %v557_v5 = vmul.f32 %v2848_v0, %v297_v44  ;;  %v301_v44 = vld [vmem:[%s2853_s4 + $0x340] sm:$0xff] }
 0x119   : > { %v556_v6 = vmul.f32 %v2848_v0, %v296_v45 }
 0x11a   : > { %v3251_v25 = vpop.xlane.xlu1 %871  ;;  %v3253_v26 = vpop.xlane.xlu0 %868 }
 0x11b   : > { %4936 = vst [vmem:[#allocation13_spill] sm:$0xff] %v3251_v25  ;;  %v3255_v27 = vpop.xlane.xlu2 %874  ;;  %v1011_v25 = vsel %vm713_vm0, %v556_v6, 0.0 }
 0x11c   : > { %4937 = vst [vmem:[#allocation14_spill] sm:$0xff] %v3253_v26 }
 0x11d   : > { %4938 = vst [vmem:[#allocation15_spill] sm:$0xff] %v3255_v27  ;;  %v1014_v27 = vsel %vm713_vm0, %v557_v5, 0.0 }
 0x11f   : > { %1006 = vadd.xlane.f32.xlu1 %v1005_v57  ;;  %1003 = vadd.xlane.f32.xlu0 %v1002_v55  ;;  %v1017_v57 = vsel %vm713_vm0, %v558_v56, 0.0  ;;  %v300_v55 = vld [vmem:[%s2853_s4 + $0x338] sm:$0xff] }
 0x120   : > { %1009 = vadd.xlane.f32.xlu2 %v1008_v43  ;;  %v299_v43 = vld [vmem:[%s2853_s4 + $0x330] sm:$0xff]  ;;  %v560_v45 = vmul.f32 %v2848_v0, %v300_v55  ;;  %v304_v55 = vld [vmem:[%s2853_s4 + $0x358] sm:$0xff] }
 0x121   : > { %v559_v4 = vmul.f32 %v2848_v0, %v299_v43 }
 0x122   : > { %v3266_v7 = vpop.xlane.xlu1 %880  ;;  %v3268_v8 = vpop.xlane.xlu0 %877 }
 0x123   : > { %4939 = vst [vmem:[#allocation16_spill] sm:$0xff] %v3266_v7  ;;  %v3270_v9 = vpop.xlane.xlu2 %883  ;;  %v1023_v7 = vsel %vm713_vm0, %v560_v45, 0.0 }
 0x124   : > { %4940 = vst [vmem:[#allocation17_spill] sm:$0xff] %v3268_v8  ;;  %v1020_v8 = vsel %vm713_vm0, %v559_v4, 0.0 }
 0x125   : > { %4941 = vst [vmem:[#allocation18_spill] sm:$0xff] %v3270_v9  ;;  %v561_v9 = vmul.f32 %v2848_v0, %v301_v44 }
 0x127   : > { %1015 = vadd.xlane.f32.xlu1 %v1014_v27  ;;  %1012 = vadd.xlane.f32.xlu0 %v1011_v25  ;;  %v1026_v27 = vsel %vm713_vm0, %v561_v9, 0.0  ;;  %v303_v25 = vld [vmem:[%s2853_s4 + $0x350] sm:$0xff] }
 0x128   : > { %1018 = vadd.xlane.f32.xlu2 %v1017_v57  ;;  %v302_v57 = vld [vmem:[%s2853_s4 + $0x348] sm:$0xff]  ;;  %v563_v43 = vmul.f32 %v2848_v0, %v303_v25  ;;  %v307_v25 = vld [vmem:[%s2853_s4 + $0x370] sm:$0xff] }
 0x129   : > { %v562_v44 = vmul.f32 %v2848_v0, %v302_v57 }
 0x12a   : > { %v3281_v5 = vpop.xlane.xlu1 %889  ;;  %v3283_v6 = vpop.xlane.xlu0 %886 }
 0x12b   : > { %4942 = vst [vmem:[#allocation19_spill] sm:$0xff] %v3281_v5  ;;  %v3285_v56 = vpop.xlane.xlu2 %892  ;;  %v1032_v5 = vsel %vm713_vm0, %v563_v43, 0.0 }
 0x12c   : > { %4943 = vst [vmem:[#allocation20_spill] sm:$0xff] %v3283_v6  ;;  %v1029_v6 = vsel %vm713_vm0, %v562_v44, 0.0 }
 0x12d   : > { %4944 = vst [vmem:[#allocation21_spill] sm:$0xff] %v3285_v56  ;;  %v564_v56 = vmul.f32 %v2848_v0, %v304_v55 }
 0x12f   : > { %1024 = vadd.xlane.f32.xlu1 %v1023_v7  ;;  %1021 = vadd.xlane.f32.xlu0 %v1020_v8  ;;  %v1035_v7 = vsel %vm713_vm0, %v564_v56, 0.0  ;;  %v306_v8 = vld [vmem:[%s2853_s4 + $0x368] sm:$0xff] }
 0x130   : > { %1027 = vadd.xlane.f32.xlu2 %v1026_v27  ;;  %v305_v27 = vld [vmem:[%s2853_s4 + $0x360] sm:$0xff]  ;;  %v566_v57 = vmul.f32 %v2848_v0, %v306_v8  ;;  %v310_v8 = vld [vmem:[%s2853_s4 + $0x388] sm:$0xff] }
 0x131   : > { %v565_v55 = vmul.f32 %v2848_v0, %v305_v27 }
 0x132   : > { %v3296_v45 = vpop.xlane.xlu1 %898  ;;  %v3298_v4 = vpop.xlane.xlu0 %895 }
 0x133   : > { %4945 = vst [vmem:[#allocation22_spill] sm:$0xff] %v3296_v45  ;;  %v3300_v9 = vpop.xlane.xlu2 %901  ;;  %v1041_v45 = vsel %vm713_vm0, %v566_v57, 0.0 }
 0x134   : > { %4946 = vst [vmem:[#allocation23_spill] sm:$0xff] %v3298_v4  ;;  %v1038_v4 = vsel %vm713_vm0, %v565_v55, 0.0 }
 0x135   : > { %4947 = vst [vmem:[#allocation24_spill] sm:$0xff] %v3300_v9  ;;  %v567_v9 = vmul.f32 %v2848_v0, %v307_v25  ;;  %v3326_v0 = vld [vmem:[%s4914_s1] ss:$0 sm:$0xff] }
 0x137   : > { %1033 = vadd.xlane.f32.xlu1 %v1032_v5  ;;  %1030 = vadd.xlane.f32.xlu0 %v1029_v6  ;;  %v1044_v5 = vsel %vm713_vm0, %v567_v9, 0.0  ;;  %v309_v6 = vld [vmem:[%s2853_s4 + $0x380] sm:$0xff]  ;;  %v570_v9 = vmul.f32 %v3326_v0, %v310_v8 }
 0x138   : > { %1036 = vadd.xlane.f32.xlu2 %v1035_v7  ;;  %v308_v7 = vld [vmem:[%s2853_s4 + $0x378] sm:$0xff]  ;;  %v569_v27 = vmul.f32 %v3326_v0, %v309_v6  ;;  %v311_v6 = vld [vmem:[%s2853_s4 + $0x390] sm:$0xff] }
 0x139   : > { %v568_v25 = vmul.f32 %v3326_v0, %v308_v7  ;;  %v313_v7 = vld [vmem:[%s2853_s4 + $0x3a0] sm:$0xff] }
 0x13a   : > { %v3311_v43 = vpop.xlane.xlu1 %907  ;;  %v3313_v44 = vpop.xlane.xlu0 %904 }
 0x13b   : > { %4948 = vst [vmem:[#allocation25_spill] sm:$0xff] %v3311_v43  ;;  %v3315_v56 = vpop.xlane.xlu2 %910 }
 0x13c   : > { %4949 = vst [vmem:[#allocation26_spill] sm:$0xff] %v3313_v44 }
 0x13d   : > { %4950 = vst [vmem:[#allocation27_spill] sm:$0xff] %v3315_v56  ;;  %v312_v56 = vld [vmem:[%s2853_s4 + $0x398] sm:$0xff] }
 0x13e   : > { %v572_v8 = vmul.f32 %v3326_v0, %v312_v56  ;;  %v316_v56 = vld [vmem:[%s2853_s4 + $0x3b8] sm:$0xff] }
 0x13f   : > { %1042 = vadd.xlane.f32.xlu1 %v1041_v45  ;;  %1039 = vadd.xlane.f32.xlu0 %v1038_v4  ;;  %v1050_v45 = vsel %vm713_vm0, %v569_v27, 0.0  ;;  %v1047_v4 = vsel %vm713_vm0, %v568_v25, 0.0 }
 0x140   : > { %1045 = vadd.xlane.f32.xlu2 %v1044_v5  ;;  %v1053_v5 = vsel %vm713_vm0, %v570_v9, 0.0 }
 0x142   : > { %v3331_v57 = vpop.xlane.xlu1 %916  ;;  %v3333_v55 = vpop.xlane.xlu0 %913 }
 0x143   : > { %4951 = vst [vmem:[#allocation28_spill] sm:$0xff] %v3331_v57  ;;  %v3335_v44 = vpop.xlane.xlu2 %919  ;;  %v571_v57 = vmul.f32 %v3326_v0, %v311_v6 }
 0x144   : > { %4952 = vst [vmem:[#allocation29_spill] sm:$0xff] %v3333_v55  ;;  %v1059_v55 = vsel %vm713_vm0, %v572_v8, 0.0 }
 0x145   : > { %4953 = vst [vmem:[#allocation30_spill] sm:$0xff] %v3335_v44  ;;  %v573_v44 = vmul.f32 %v3326_v0, %v313_v7  ;;  %v1056_v43 = vsel %vm713_vm0, %v571_v57, 0.0 }
 0x147   : > { %1051 = vadd.xlane.f32.xlu1 %v1050_v45  ;;  %1048 = vadd.xlane.f32.xlu0 %v1047_v4  ;;  %v1062_v45 = vsel %vm713_vm0, %v573_v44, 0.0  ;;  %v315_v4 = vld [vmem:[%s2853_s4 + $0x3b0] sm:$0xff] }
 0x148   : > { %1054 = vadd.xlane.f32.xlu2 %v1053_v5  ;;  %v314_v5 = vld [vmem:[%s2853_s4 + $0x3a8] sm:$0xff]  ;;  %v575_v6 = vmul.f32 %v3326_v0, %v315_v4  ;;  %v319_v4 = vld [vmem:[%s2853_s4 + $0x3d0] sm:$0xff] }
 0x149   : > { %v574_v7 = vmul.f32 %v3326_v0, %v314_v5  ;;  %v1996_v5 = vlaneseq }
 0x14a   : > { %v3346_v27 = vpop.xlane.xlu1 %925  ;;  %v3348_v25 = vpop.xlane.xlu0 %922 }
 0x14b   : > { %4954 = vst [vmem:[#allocation31_spill] sm:$0xff] %v3346_v27  ;;  %v3350_v9 = vpop.xlane.xlu2 %928  ;;  %v1068_v27 = vsel %vm713_vm0, %v575_v6, 0.0  ;;  %v579_v6 = vmul.f32 %v3326_v0, %v319_v4 }
 0x14c   : > { %4955 = vst [vmem:[#allocation32_spill] sm:$0xff] %v3348_v25  ;;  %v1065_v25 = vsel %vm713_vm0, %v574_v7, 0.0 }
 0x14d   : > { %4956 = vst [vmem:[#allocation33_spill] sm:$0xff] %v3350_v9  ;;  %v576_v9 = vmul.f32 %v3326_v0, %v316_v56 }
 0x14f   : > { %1060 = vadd.xlane.f32.xlu1 %v1059_v55  ;;  %1057 = vadd.xlane.f32.xlu0 %v1056_v43  ;;  %v1071_v43 = vsel %vm713_vm0, %v576_v9, 0.0  ;;  %v318_v55 = vld [vmem:[%s2853_s4 + $0x3c8] sm:$0xff] }
 0x150   : > { %1063 = vadd.xlane.f32.xlu2 %v1062_v45  ;;  %v317_v45 = vld [vmem:[%s2853_s4 + $0x3c0] sm:$0xff]  ;;  %v578_v56 = vmul.f32 %v3326_v0, %v318_v55  ;;  %v1080_v55 = vsel %vm713_vm0, %v579_v6, 0.0 }
 0x152   : > { %v3361_v8 = vpop.xlane.xlu1 %934  ;;  %v3363_v57 = vpop.xlane.xlu0 %931 }
 0x153   : > { %4957 = vst [vmem:[#allocation34_spill] sm:$0xff] %v3361_v8  ;;  %v3365_v44 = vpop.xlane.xlu2 %937 }
 0x154   : > { %4958 = vst [vmem:[#allocation35_spill] sm:$0xff] %v3363_v57  ;;  %v3382_v57 = vand.u32 127, %v1996_v5 }
 0x155   : > { %4959 = vst [vmem:[#allocation36_spill] sm:$0xff] %v3365_v44  ;;  %v577_v44 = vmul.f32 %v3326_v0, %v317_v45  ;;  %v320_v45 = vld [vmem:[%s2853_s4 + $0x3d8] sm:$0xff] }
 0x156   : > { %v3392_v4 = vadd.s32 4294967288, %v3382_v57 }
 0x157   : > { %1069 = vadd.xlane.f32.xlu1 %v1068_v27  ;;  %1066 = vadd.xlane.f32.xlu0 %v1065_v25  ;;  %v1077_v27 = vsel %vm713_vm0, %v578_v56, 0.0  ;;  %v1074_v25 = vsel %vm713_vm0, %v577_v44, 0.0  ;;  %v581_v44 = vmul.f32 %v3326_v0, %v321_v12  ;;  %v580_v56 = vmul.f32 %v3326_v0, %v320_v45 }
 0x158   : > { %1072 = vadd.xlane.f32.xlu2 %v1071_v43  ;;  %v3386_v43 = vstv %s1482_s7  ;;  %v3413_v12 = vadd.s32 4294967272, %v3382_v57 }
 0x159   : > { %v1484_v5 = vadd.f32 %v3386_v43, %v2998_v17  ;;  %v1486_v17 = vadd.f32 %v3386_v43, %v2996_v16  ;;  %v1083_v45 = vsel %vm713_vm0, %v580_v56, 0.0  ;;  %v583_v56 = vmul.f32 %v3326_v0, %v323_v36 }
 0x15a   : > { %v3376_v7 = vpop.xlane.xlu1 %943  ;;  %v3378_v8 = vpop.xlane.xlu0 %940  ;;  %v1501_v36 = vadd.f32 %v3386_v43, %v3075_v15 }
 0x15b   : > { %4960 = vst [vmem:[#allocation37_spill] sm:$0xff] %v3376_v7  ;;  %v3380_v9 = vpop.xlane.xlu2 %946  ;;  %v1485_v7 = vadd.f32 %v3386_v43, %v3013_v29  ;;  %v1092_v15 = vsel %vm713_vm0, %v583_v56, 0.0  ;;  %v3473_v56 = vadd.s32 4294967240, %v3382_v57 }
 0x15c   : > { %4961 = vst [vmem:[#allocation38_spill] sm:$0xff] %v3378_v8  ;;  %v322_v8 = vld [vmem:[%s2853_s4 + $0x3e8] sm:$0xff] }
 0x15d   : > { %4962 = vst [vmem:[#allocation39_spill] sm:$0xff] %v3380_v9  ;;  %v582_v6 = vmul.f32 %v3326_v0, %v322_v8  ;;  %v2000_v9 = vperm.slane %v1485_v7, %v3392_v4  ;;  %v1998_v8 = vperm.slane %v1484_v5, %v3382_v57  ;;  %v1487_v7 = vadd.f32 %v3386_v43, %v3011_v28 }
 0x15e   : > { %v3429_v5 = vadd.s32 4294967264, %v3382_v57 }
 0x15f   : > { %1078 = vadd.xlane.f32.xlu1 %v1077_v27  ;;  %1075 = vadd.xlane.f32.xlu0 %v1074_v25  ;;  %v3408_v27 = vadd.s32 4294967280, %v3382_v57  ;;  %v2002_v16 = vsel %vm2001_vm1, %v2000_v9, %v1998_v8  ;;  %v2008_v28 = vperm.slane %v1487_v7, %v3413_v12  ;;  %v3439_v8 = vadd.s32 4294967256, %v3382_v57 }
 0x160   : > { %1081 = vadd.xlane.f32.xlu2 %v1080_v55  ;;  %v1086_v55 = vsel %vm713_vm0, %v581_v44, 0.0  ;;  %v1489_v7 = vadd.f32 %v3386_v43, %v3015_v30 }
 0x161   : > { %v2004_v38 = vperm.slane %v1486_v17, %v3408_v27  ;;  %v585_v17 = vmul.f32 %v3326_v0, %v325_v10  ;;  %v3452_v10 = vadd.s32 4294967248, %v3382_v57 }
 0x162   : > { %v3403_v26 = vpop.xlane.xlu1 %952  ;;  %v3405_v29 = vpop.xlane.xlu0 %949 }
 0x163   : > { %4963 = vst [vmem:[#allocation40_spill] sm:$0xff] %v3403_v26  ;;  %v3415_v25 = vpop.xlane.xlu2 %955  ;;  %v324_v26 = vld [vmem:[%s2853_s4 + $0x3f8] sm:$0xff]  ;;  %v2006_v9 = vsel %vm2005_vm2, %v2004_v38, %v2002_v16  ;;  %v1502_v16 = vadd.f32 %v3386_v43, %v3088_v32  ;;  %v1491_v32 = vadd.f32 %v3386_v43, %v3026_v40 }
 0x164   : > { %4964 = vst [vmem:[#allocation41_spill] sm:$0xff] %v3405_v29  ;;  %v1089_v29 = vsel %vm713_vm0, %v582_v6, 0.0  ;;  %v584_v44 = vmul.f32 %v3326_v0, %v324_v26  ;;  %v1488_v6 = vadd.f32 %v3386_v43, %v3000_v18  ;;  %v1500_v26 = vadd.f32 %v3386_v43, %v3071_v13 }
 0x165   : > { %4965 = vst [vmem:[#allocation42_spill] sm:$0xff] %v3415_v25  ;;  %v2010_v30 = vsel %vm4917_vm3, %v2008_v28, %v2006_v9  ;;  %v326_v25 = vld [vmem:[%s2853_s4 + $0x408] sm:$0xff]  ;;  %v2060_v28 = vperm.slane %v1501_v36, %v3392_v4  ;;  %v328_v9 = vld [vmem:[%s2853_s4 + $0x418] sm:$0xff]  ;;  %v3483_v36 = vadd.s32 4294967232, %v3382_v57 }
 0x166   : > { %v1095_v13 = vsel %vm713_vm0, %v584_v44, 0.0  ;;  %v588_v40 = vmul.f32 %v3326_v0, %v328_v9  ;;  %v3507_v9 = vadd.s32 4294967216, %v3382_v57 }
 0x167   : > { %1087 = vadd.xlane.f32.xlu1 %v1086_v55  ;;  %1084 = vadd.xlane.f32.xlu0 %v1083_v45  ;;  %v2012_v45 = vperm.slane %v1488_v6, %v3429_v5 }
 0x168   : > { %1090 = vadd.xlane.f32.xlu2 %v1089_v29  ;;  %v1490_v29 = vadd.f32 %v3386_v43, %v3028_v41  ;;  %v2016_v41 = vperm.slane %v1489_v7, %v3439_v8 }
 0x169   : > { %v2014_v44 = vsel %vm2013_vm4, %v2012_v45, %v2010_v30  ;;  %v2062_v30 = vperm.slane %v1502_v16, %v3408_v27  ;;  %v1504_v45 = vadd.f32 %v3386_v43, %v3090_v33 }
 0x16a   : > { %v3447_v18 = vpop.xlane.xlu1 %961  ;;  %v3449_v38 = vpop.xlane.xlu0 %958  ;;  %v2020_v6 = vperm.slane %v1490_v29, %v3452_v10  ;;  %v2018_v29 = vsel %vm2017_vm5, %v2016_v41, %v2014_v44  ;;  %v3510_v44 = vadd.s32 4294967224, %v3382_v57 }
 0x16b   : > { %4966 = vst [vmem:[#allocation43_spill] sm:$0xff] %v3447_v18  ;;  %v3456_v55 = vpop.xlane.xlu2 %964  ;;  %v1098_v18 = vsel %vm713_vm0, %v585_v17, 0.0  ;;  %v1503_v17 = vadd.f32 %v3386_v43, %v3086_v31 }
 0x16c   : > { %4967 = vst [vmem:[#allocation44_spill] sm:$0xff] %v3449_v38  ;;  %v327_v38 = vld [vmem:[%s2853_s4 + $0x410] sm:$0xff] }
 0x16d   : > { %4968 = vst [vmem:[#allocation45_spill] sm:$0xff] %v3456_v55  ;;  %v2059_v55 = vperm.slane %v1500_v26, %v3382_v57  ;;  %v587_v7 = vmul.f32 %v3326_v0, %v327_v38  ;;  %v586_v26 = vmul.f32 %v3326_v0, %v326_v25  ;;  %v2024_v38 = vperm.slane %v1491_v32, %v3473_v56 }
 0x16e   : > { %v1107_v32 = vsel %vm713_vm0, %v588_v40, 0.0 }
 0x16f   : > { %1096 = vadd.xlane.f32.xlu1 %v1095_v13  ;;  %1093 = vadd.xlane.f32.xlu0 %v1092_v15  ;;  %v1492_v13 = vadd.f32 %v3386_v43, %v3030_v42  ;;  %v2061_v31 = vsel %vm2001_vm1, %v2060_v28, %v2059_v55  ;;  %v2022_v15 = vsel %vm2021_vm6, %v2020_v6, %v2018_v29  ;;  %v1104_v41 = vsel %vm713_vm0, %v587_v7, 0.0  ;;  %v330_v6 = vld [vmem:[%s2853_s4 + $0x428] sm:$0xff]  ;;  %v329_v29 = vld [vmem:[%s2853_s4 + $0x420] sm:$0xff] }
 0x170   : > { %1099 = vadd.xlane.f32.xlu2 %v1098_v18  ;;  %v2064_v42 = vperm.slane %v1503_v17, %v3413_v12  ;;  %v1505_v55 = vadd.f32 %v3386_v43, %v3103_v47  ;;  %v1101_v28 = vsel %vm713_vm0, %v586_v26, 0.0  ;;  %v2063_v33 = vsel %vm2005_vm2, %v2062_v30, %v2061_v31  ;;  %v331_v26 = vld [vmem:[%s2853_s4 + $0x430] sm:$0xff] }
 0x171   : > { %v2028_v17 = vperm.slane %v1492_v13, %v3483_v36  ;;  %v1493_v47 = vadd.f32 %v3386_v43, %v3043_v53  ;;  %v3520_v7 = vadd.s32 4294967208, %v3382_v57  ;;  %v1506_v30 = vadd.f32 %v3386_v43, %v3101_v46 }
 0x172   : > { %v3491_v18 = vpop.xlane.xlu1 %970  ;;  %v3493_v25 = vpop.xlane.xlu0 %967  ;;  %v2065_v40 = vsel %vm4917_vm3, %v2064_v42, %v2063_v33  ;;  %v2068_v13 = vperm.slane %v1505_v55, %v3439_v8  ;;  %v590_v53 = vmul.f32 %v3326_v0, %v330_v6  ;;  %v589_v31 = vmul.f32 %v3326_v0, %v329_v29 }
 0x173   : > { %4969 = vst [vmem:[#allocation46_spill] sm:$0xff] %v3491_v18  ;;  %v3499_v16 = vpop.xlane.xlu2 %973  ;;  %v2066_v18 = vperm.slane %v1504_v45, %v3429_v5  ;;  %v1517_v46 = vadd.f32 %v3386_v43, %v3163_v59  ;;  %v1494_v45 = vadd.f32 %v3386_v43, %v3041_v52  ;;  %v2032_v42 = vperm.slane %v1493_v47, %v3510_v44 }
 0x174   : > { %4970 = vst [vmem:[#allocation47_spill] sm:$0xff] %v3493_v25  ;;  %v3532_v25 = vadd.s32 4294967192, %v3382_v57  ;;  %v3543_v55 = vadd.s32 4294967200, %v3382_v57  ;;  %v2070_v52 = vperm.slane %v1506_v30, %v3452_v10  ;;  %v1518_v29 = vadd.f32 %v3386_v43, %v3161_v58  ;;  %v333_v30 = vld [vmem:[%s2853_s4 + $0x440] sm:$0xff] }
 0x175   : > { %4971 = vst [vmem:[#allocation48_spill] sm:$0xff] %v3499_v16  ;;  %v2026_v16 = vsel %vm2025_vm7, %v2024_v38, %v2022_v15  ;;  %v1516_v38 = vadd.f32 %v3386_v43, %v3150_v39  ;;  %v591_v15 = vmul.f32 %v3326_v0, %v331_v26  ;;  %v2067_v33 = vsel %vm2013_vm4, %v2066_v18, %v2065_v40  ;;  %v332_v40 = vld [vmem:[%s2853_s4 + $0x438] sm:$0xff] }
 0x176   : > { %v2030_v59 = vsel %vm2029_vm8, %v2028_v17, %v2026_v16  ;;  %v1113_v47 = vsel %vm713_vm0, %v590_v53, 0.0  ;;  %v1110_v26 = vsel %vm713_vm0, %v589_v31, 0.0  ;;  %v1495_v18 = vadd.f32 %v3386_v43, %v3045_v54  ;;  %v334_v31 = vld [vmem:[%s2853_s4 + $0x448] sm:$0xff] }
 0x177   : > { %1105 = vadd.xlane.f32.xlu1 %v1104_v41  ;;  %1102 = vadd.xlane.f32.xlu0 %v1101_v28  ;;  %v1507_v41 = vadd.f32 %v3386_v43, %v3105_v48  ;;  %v2069_v48 = vsel %vm2017_vm5, %v2068_v13, %v2067_v33  ;;  %v2090_v16 = vperm.slane %v1516_v38, %v3382_v57  ;;  %v3577_v54 = vadd.s32 4294967184, %v3382_v57 }
 0x178   : > { %1108 = vadd.xlane.f32.xlu2 %v1107_v32  ;;  %v1508_v32 = vadd.f32 %v3386_v43, %v3118_v62  ;;  %v2091_v17 = vperm.slane %v1517_v46, %v3392_v4  ;;  %v1116_v62 = vsel %vm713_vm0, %v591_v15, 0.0  ;;  %v2036_v13 = vperm.slane %v1494_v45, %v3507_v9 }
 0x179   : > { %v2034_v33 = vsel %vm2033_vm9, %v2032_v42, %v2030_v59  ;;  %v2072_v58 = vperm.slane %v1507_v41, %v3473_v56  ;;  %v1509_v53 = vadd.f32 %v3386_v43, %v3116_v61  ;;  %v2071_v38 = vsel %vm2021_vm6, %v2070_v52, %v2069_v48 }
 0x17a   : > { %v3547_v28 = vpop.xlane.xlu1 %979  ;;  %v3549_v39 = vpop.xlane.xlu0 %976  ;;  %v2074_v46 = vperm.slane %v1508_v32, %v3483_v36  ;;  %v1519_v15 = vadd.f32 %v3386_v43, %v3165_v60  ;;  %v2093_v45 = vperm.slane %v1518_v29, %v3408_v27  ;;  %v1520_v42 = vadd.f32 %v3386_v43, %v3178_v23 }
 0x17b   : > { %v3556_v6 = vpop.xlane.xlu2 %982  ;;  %v593_v61 = vmul.f32 %v3326_v0, %v333_v30  ;;  %v592_v41 = vmul.f32 %v3326_v0, %v332_v40  ;;  %v2040_v59 = vperm.slane %v1495_v18, %v3520_v7  ;;  %v1496_v52 = vadd.f32 %v3386_v43, %v3058_v2 }
 0x17c   : > { %v2092_v32 = vsel %vm2001_vm1, %v2091_v17, %v2090_v16  ;;  %v594_v60 = vmul.f32 %v3326_v0, %v334_v31  ;;  %v2038_v48 = vsel %vm4921_vm10, %v2036_v13, %v2034_v33  ;;  %v2073_v29 = vsel %vm2025_vm7, %v2072_v58, %v2071_v38  ;;  %v336_v31 = vld [vmem:[%s2853_s4 + $0x458] sm:$0xff]  ;;  %v335_v38 = vld [vmem:[%s2853_s4 + $0x450] sm:$0xff] }
 0x17d   : > { %v2076_v23 = vperm.slane %v1509_v53, %v3510_v44  ;;  %v2075_v2 = vsel %vm2029_vm8, %v2074_v46, %v2073_v29  ;;  %v1511_v16 = vadd.f32 %v3386_v43, %v3133_v20  ;;  %v2095_v17 = vperm.slane %v1519_v15, %v3413_v12 }
 0x17e   : > { %v2097_v40 = vperm.slane %v1520_v42, %v3429_v5  ;;  %v1122_v13 = vsel %vm713_vm0, %v593_v61, 0.0  ;;  %v1119_v33 = vsel %vm713_vm0, %v592_v41, 0.0  ;;  %v2042_v58 = vsel %vm4920_vm11, %v2040_v59, %v2038_v48  ;;  %v337_v61 = vld [vmem:[%s2853_s4 + $0x460] sm:$0xff] }
 0x17f   : > { %1114 = vadd.xlane.f32.xlu1 %v1113_v47  ;;  %1111 = vadd.xlane.f32.xlu0 %v1110_v26  ;;  %v1510_v47 = vadd.f32 %v3386_v43, %v3120_v63  ;;  %v2094_v63 = vsel %vm2005_vm2, %v2093_v45, %v2092_v32  ;;  %v1497_v20 = vadd.f32 %v3386_v43, %v3056_v1 }
 0x180   : > { %1117 = vadd.xlane.f32.xlu2 %v1116_v62  ;;  %v1521_v62 = vadd.f32 %v3386_v43, %v3176_v22  ;;  %v2044_v53 = vperm.slane %v1496_v52, %v3543_v55  ;;  %v1125_v22 = vsel %vm713_vm0, %v594_v60, 0.0  ;;  %v2077_v46 = vsel %vm2033_vm9, %v2076_v23, %v2075_v2 }
 0x181   : > { %v2078_v15 = vperm.slane %v1510_v47, %v3507_v9  ;;  %v1512_v45 = vadd.f32 %v3386_v43, %v3131_v19  ;;  %v1522_v42 = vadd.f32 %v3386_v43, %v3180_v24  ;;  %v2080_v1 = vperm.slane %v1511_v16, %v3520_v7 }
 0x182   : > { %v3598_v26 = vpop.xlane.xlu1 %988  ;;  %v3600_v18 = vpop.xlane.xlu0 %985  ;;  %v2096_v41 = vsel %vm4917_vm3, %v2095_v17, %v2094_v63  ;;  %v2099_v59 = vperm.slane %v1521_v62, %v3439_v8  ;;  %v1523_v32 = vadd.f32 %v3386_v43, %v3193_v50  ;;  %v596_v19 = vmul.f32 %v3326_v0, %v336_v31 }
 0x183   : > { %v3608_v30 = vpop.xlane.xlu2 %991  ;;  %v2098_v52 = vsel %vm2013_vm4, %v2097_v40, %v2096_v41  ;;  %v595_v24 = vmul.f32 %v3326_v0, %v335_v38  ;;  %v2048_v60 = vperm.slane %v1497_v20, %v3532_v25  ;;  %v2046_v48 = vsel %vm4923_vm12, %v2044_v53, %v2042_v58  ;;  %v339_v38 = vld [vmem:[%s2853_s4 + $0x470] sm:$0xff] }
 0x184   : > { %v1498_v29 = vadd.f32 %v3386_v43, %v3060_v3  ;;  %v597_v23 = vmul.f32 %v3326_v0, %v337_v61  ;;  %v2079_v47 = vsel %vm4921_vm10, %v2078_v15, %v2077_v46  ;;  %v2082_v2 = vperm.slane %v1512_v45, %v3543_v55  ;;  %v338_v46 = vld [vmem:[%s2853_s4 + $0x468] sm:$0xff] }
 0x185   : > { %v1513_v50 = vadd.f32 %v3386_v43, %v3135_v21  ;;  %v2101_v16 = vperm.slane %v1522_v42, %v3452_v10  ;;  %v2081_v3 = vsel %vm4920_vm11, %v2080_v1, %v2079_v47  ;;  %v2100_v63 = vsel %vm2017_vm5, %v2099_v59, %v2098_v52  ;;  %v340_v1 = vld [vmem:[%s2853_s4 + $0x478] sm:$0xff]  ;;  %v4976_v47 = vld [vmem:[#allocation7_spill] sm:$0xff] }
 0x186   : > { %v1524_v40 = vadd.f32 %v3386_v43, %v3191_v49  ;;  %v3657_v21 = vadd.s32 4294967176, %v3382_v57  ;;  %v1131_v58 = vsel %vm713_vm0, %v596_v19, 0.0  ;;  %v1128_v20 = vsel %vm713_vm0, %v595_v24, 0.0 }
 0x187   : > { %1123 = vadd.xlane.f32.xlu1 %v1122_v13  ;;  %1120 = vadd.xlane.f32.xlu0 %v1119_v33  ;;  %v2103_v33 = vperm.slane %v1523_v32, %v3473_v56  ;;  %v2050_v53 = vsel %vm2049_vm13, %v2048_v60, %v2046_v48  ;;  %v3666_v31 = vadd.f32 %v3386_v43, %v3073_v14  ;;  %v1134_v49 = vsel %vm713_vm0, %v597_v23, 0.0  ;;  %v4975_v60 = vld [vmem:[#allocation6_spill] sm:$0xff] }
 0x188   : > { %1126 = vadd.xlane.f32.xlu2 %v1125_v22  ;;  %v2052_v22 = vperm.slane %v1498_v29, %v3577_v54  ;;  %v2083_v15 = vsel %vm4923_vm12, %v2082_v2, %v2081_v3  ;;  %v2084_v45 = vperm.slane %v1513_v50, %v3532_v25  ;;  %v2102_v42 = vsel %vm2021_vm6, %v2101_v16, %v2100_v63 }
 0x189   : > { %v1525_v61 = vadd.f32 %v3386_v43, %v3195_v51  ;;  %v2105_v41 = vperm.slane %v1524_v40, %v3483_v36  ;;  %v1526_v14 = vadd.f32 %v3386_v43, %v3208_v11  ;;  %v1533_v59 = vadd.f32 %v3386_v43, %v3236_v34  ;;  %v4977_v40 = vld [vmem:[#allocation12_spill] sm:$0xff] }
 0x18a   : > { %v3646_v17 = vpop.xlane.xlu1 %997  ;;  %v3648_v62 = vpop.xlane.xlu0 %994  ;;  %v2104_v52 = vsel %vm2025_vm7, %v2103_v33, %v2102_v42  ;;  %v1532_v32 = vadd.f32 %v3386_v43, %v3238_v35  ;;  %v599_v19 = vmul.f32 %v3326_v0, %v339_v38  ;;  %v598_v51 = vmul.f32 %v3326_v0, %v338_v46 }
 0x18b   : > { %4972 = vst [vmem:[#allocation49_spill] sm:$0xff] %v3646_v17  ;;  %v3654_v13 = vpop.xlane.xlu2 %1000  ;;  %v2054_v24 = vsel %vm2053_vm14, %v2052_v22, %v2050_v53  ;;  %v1515_v11 = vadd.f32 %v3386_v43, %v3146_v37  ;;  %v1514_v34 = vadd.f32 %v3386_v43, %v4975_v60  ;;  %v600_v48 = vmul.f32 %v3326_v0, %v340_v1  ;;  %v4978_v53 = vld [vmem:[#allocation14_spill] sm:$0xff] }
 0x18c   : > { %4973 = vst [vmem:[#allocation50_spill] sm:$0xff] %v3648_v62  ;;  %v2056_v29 = vperm.slane %v3666_v31, %v3657_v21  ;;  %v2085_v35 = vsel %vm2049_vm13, %v2084_v45, %v2083_v15  ;;  %v2107_v23 = vperm.slane %v1525_v61, %v3510_v44  ;;  %v1527_v2 = vadd.f32 %v3386_v43, %v4976_v47  ;;  %v4979_v15 = vld [vmem:[#allocation8_spill] sm:$0xff]  ;;  %v342_v61 = vld [vmem:[%s2853_s4 + $0x488] sm:$0xff]  ;;  %v341_v1 = vld [vmem:[%s2853_s4 + $0x480] sm:$0xff] }
 0x18d   : > { %4974 = vst [vmem:[#allocation51_spill] sm:$0xff] %v3654_v13  ;;  %v2106_v16 = vsel %vm2029_vm8, %v2105_v41, %v2104_v52  ;;  %v2109_v3 = vperm.slane %v1526_v14, %v3507_v9  ;;  %v2122_v63 = vperm.slane %v1533_v59, %v3392_v4  ;;  %v1534_v33 = vadd.f32 %v3386_v43, %v4977_v40  ;;  %v4980_v59 = vld [vmem:[#allocation25_spill] sm:$0xff]  ;;  %v347_v13 = vld [vmem:[%s2853_s4 + $0x4b0] sm:$0xff] }
 0x18e   : > { %v1535_v22 = vadd.f32 %v3386_v43, %v4978_v53  ;;  %v1140_v31 = vsel %vm713_vm0, %v599_v19, 0.0  ;;  %v2088_v38 = vperm.slane %v1515_v11, %v3657_v21  ;;  %v2086_v46 = vperm.slane %v1514_v34, %v3577_v54  ;;  %v4982_v34 = vld [vmem:[#allocation13_spill] sm:$0xff] }
 0x18f   : > { %1132 = vadd.xlane.f32.xlu1 %v1131_v58  ;;  %1129 = vadd.xlane.f32.xlu0 %v1128_v20  ;;  %v2121_v20 = vperm.slane %v1532_v32, %v3382_v57  ;;  %v1528_v45 = vadd.f32 %v3386_v43, %v4979_v15  ;;  %v1143_v42 = vsel %vm713_vm0, %v600_v48, 0.0  ;;  %v2108_v41 = vsel %vm2033_vm9, %v2107_v23, %v2106_v16  ;;  %v4981_v32 = vld [vmem:[#allocation27_spill] sm:$0xff]  ;;  %v4983_v53 = vld [vmem:[#allocation29_spill] sm:$0xff] }
 0x190   : > { %1135 = vadd.xlane.f32.xlu2 %v1134_v49  ;;  %v1137_v49 = vsel %vm713_vm0, %v598_v51, 0.0  ;;  %v2111_v14 = vperm.slane %v1527_v2, %v3520_v7  ;;  %v1548_v52 = vadd.f32 %v3386_v43, %v4980_v59  ;;  %v1549_v19 = vadd.f32 %v3386_v43, %v4981_v32  ;;  %v343_v51 = vld [vmem:[%s2853_s4 + $0x490] sm:$0xff]  ;;  %v4999_v62 = vld [vmem:[#allocation21_spill] sm:$0xff] }
 0x191   : > { %v2110_v11 = vsel %vm4921_vm10, %v2109_v3, %v2108_v41  ;;  %v2124_v60 = vperm.slane %v1534_v33, %v3408_v27  ;;  %v1536_v48 = vadd.f32 %v3386_v43, %v4982_v34  ;;  %v2123_v23 = vsel %vm2001_vm1, %v2122_v63, %v2121_v20  ;;  %v345_v34 = vld [vmem:[%s2853_s4 + $0x4a0] sm:$0xff] }
 0x192   : > { %v3699_v50 = vpop.xlane.xlu1 %1006  ;;  %v3701_v37 = vpop.xlane.xlu0 %1003  ;;  %v2126_v47 = vperm.slane %v1535_v22, %v3413_v12  ;;  %v602_v2 = vmul.f32 %v3326_v0, %v342_v61  ;;  %v601_v16 = vmul.f32 %v3326_v0, %v341_v1  ;;  %v2087_v40 = vsel %vm2053_vm14, %v2086_v46, %v2085_v35  ;;  %v4985_v1 = vld [vmem:[#allocation17_spill] sm:$0xff] }
 0x193   : > { %v3708_v58 = vpop.xlane.xlu2 %1009  ;;  %v2113_v3 = vperm.slane %v1528_v45, %v3543_v55  ;;  %v1550_v33 = vadd.f32 %v3386_v43, %v4983_v53  ;;  %v603_v15 = vmul.f32 %v3326_v0, %v343_v51  ;;  %v2152_v20 = vperm.slane %v1548_v52, %v3382_v57  ;;  %v4986_v52 = vld [vmem:[#allocation28_spill] sm:$0xff] }
 0x194   : > { %v2153_v22 = vperm.slane %v1549_v19, %v3392_v4  ;;  %v3752_v46 = vsel %vm2057_vm15, %v2056_v29, %v2054_v24  ;;  %v2125_v45 = vsel %vm2005_vm2, %v2124_v60, %v2123_v23  ;;  %v2128_v61 = vperm.slane %v1536_v48, %v3429_v5  ;;  %v344_v48 = vld [vmem:[%s2853_s4 + $0x498] sm:$0xff]  ;;  %v4987_v23 = vld [vmem:[#allocation10_spill] sm:$0xff] }
 0x195   : > { %v1538_v41 = vadd.f32 %v3386_v43, %v4985_v1  ;;  %v2127_v59 = vsel %vm4917_vm3, %v2126_v47, %v2125_v45  ;;  %v1551_v32 = vadd.f32 %v3386_v43, %v4986_v52  ;;  %v1149_v19 = vsel %vm713_vm0, %v602_v2, 0.0  ;;  %v4990_v45 = vld [vmem:[#allocation32_spill] sm:$0xff] }
 0x196   : > { %v1146_v24 = vsel %vm713_vm0, %v601_v16, 0.0  ;;  %v3766_v29 = vsel %vm2057_vm15, %v2088_v38, %v2087_v40  ;;  %v1152_v60 = vsel %vm713_vm0, %v603_v15, 0.0  ;;  %v1529_v47 = vadd.f32 %v3386_v43, %v4987_v23  ;;  %v346_v38 = vld [vmem:[%s2853_s4 + $0x4a8] sm:$0xff]  ;;  %v4993_v23 = vld [vmem:[#allocation20_spill] sm:$0xff] }
 0x197   : > { %1141 = vadd.xlane.f32.xlu1 %v1140_v31  ;;  %1138 = vadd.xlane.f32.xlu0 %v1137_v49  ;;  %v2112_v31 = vsel %vm4920_vm11, %v2111_v14, %v2110_v11  ;;  %v4984_v49 = vld [vmem:[#allocation15_spill] sm:$0xff]  ;;  %v2155_v11 = vperm.slane %v1550_v33, %v3408_v27  ;;  %v2154_v16 = vsel %vm2001_vm1, %v2153_v22, %v2152_v20  ;;  %v4989_v33 = vld [vmem:[#allocation30_spill] sm:$0xff]  ;;  %v4991_v22 = vld [vmem:[#allocation9_spill] sm:$0xff] }
 0x198   : > { %1144 = vadd.xlane.f32.xlu2 %v1143_v42  ;;  %v1537_v63 = vadd.f32 %v3386_v43, %v4984_v49  ;;  %v2114_v51 = vsel %vm4923_vm12, %v2113_v3, %v2112_v31  ;;  %v4988_v49 = vld [vmem:[#allocation16_spill] sm:$0xff]  ;;  %v2129_v40 = vsel %vm2013_vm4, %v2128_v61, %v2127_v59  ;;  %v2132_v3 = vperm.slane %v1538_v41, %v3452_v10  ;;  %v4992_v59 = vld [vmem:[#allocation18_spill] sm:$0xff] }
 0x199   : > { %v1539_v2 = vadd.f32 %v3386_v43, %v4988_v49  ;;  %v1552_v15 = vadd.f32 %v3386_v43, %v4989_v33  ;;  %v2157_v31 = vperm.slane %v1551_v32, %v3413_v12  ;;  %v605_v1 = vmul.f32 %v3326_v0, %v345_v34  ;;  %v4994_v33 = vld [vmem:[#allocation11_spill] sm:$0xff] }
 0x19a   : > { %v3747_v42 = vpop.xlane.xlu1 %1015  ;;  %v3749_v35 = vpop.xlane.xlu0 %1012  ;;  %v2130_v53 = vperm.slane %v1537_v63, %v3439_v8  ;;  %v1553_v63 = vadd.f32 %v3386_v43, %v4990_v45  ;;  %v604_v20 = vmul.f32 %v3326_v0, %v344_v48  ;;  %v1530_v61 = vadd.f32 %v3386_v43, %v4991_v22 }
 0x19b   : > { %v3758_v14 = vpop.xlane.xlu2 %1018  ;;  %v1540_v41 = vadd.f32 %v3386_v43, %v4992_v59  ;;  %v2156_v52 = vsel %vm2005_vm2, %v2155_v11, %v2154_v16  ;;  %v2115_v32 = vperm.slane %v1529_v47, %v3532_v25  ;;  %v1541_v34 = vadd.f32 %v3386_v43, %v4993_v23 }
 0x19c   : > { %v3806_v11 = vadd.f32 %v3386_v43, %v4994_v33  ;;  %v2159_v47 = vperm.slane %v1552_v15, %v3429_v5  ;;  %v2161_v45 = vperm.slane %v1553_v63, %v3439_v8  ;;  %v1158_v22 = vsel %vm713_vm0, %v605_v1, 0.0  ;;  %v4997_v1 = vld [vmem:[#allocation33_spill] sm:$0xff] }
 0x19d   : > { %v1155_v59 = vsel %vm713_vm0, %v604_v20, 0.0  ;;  %v2117_v23 = vperm.slane %v1530_v61, %v3577_v54  ;;  %v2116_v17 = vsel %vm2049_vm13, %v2115_v32, %v2114_v51  ;;  %v2138_v63 = vperm.slane %v1541_v34, %v3510_v44 }
 0x19e   : > { %v1555_v20 = vadd.f32 %v3386_v43, %v4997_v1  ;;  %v1543_v51 = vadd.f32 %v3386_v43, %v4999_v62  ;;  %v607_v34 = vmul.f32 %v3326_v0, %v347_v13 }
 0x19f   : > { %1150 = vadd.xlane.f32.xlu1 %v1149_v19  ;;  %1147 = vadd.xlane.f32.xlu0 %v1146_v24  ;;  %v606_v19 = vmul.f32 %v3326_v0, %v346_v38  ;;  %v2131_v24 = vsel %vm2017_vm5, %v2130_v53, %v2129_v40  ;;  %v4995_v53 = vld [vmem:[#allocation31_spill] sm:$0xff]  ;;  %v2158_v40 = vsel %vm4917_vm3, %v2157_v31, %v2156_v52  ;;  %v349_v52 = vld [vmem:[%s2853_s4 + $0x4c0] sm:$0xff]  ;;  %vm4918_vm3 = vcmask 1041409  }
 0x1a0   : > { %1153 = vadd.xlane.f32.xlu2 %v1152_v60  ;;  %v2134_v60 = vperm.slane %v1539_v2, %v3473_v56  ;;  %v2133_v16 = vsel %vm2021_vm6, %v2132_v3, %v2131_v24  ;;  %v1554_v2 = vadd.f32 %v3386_v43, %v4995_v53  ;;  %v2136_v3 = vperm.slane %v1540_v41, %v3483_v36  ;;  %v4996_v24 = vld [vmem:[#allocation19_spill] sm:$0xff]  ;;  %v348_v53 = vld [vmem:[%s2853_s4 + $0x4b8] sm:$0xff] }
 0x1a1   : > { %v1542_v15 = vadd.f32 %v3386_v43, %v4996_v24  ;;  %v1161_v33 = vsel %vm713_vm0, %v606_v19, 0.0  ;;  %v2160_v61 = vsel %vm2013_vm4, %v2159_v47, %v2158_v40  ;;  %v4998_v24 = vld [vmem:[#allocation35_spill] sm:$0xff]  ;;  %v3848_v62 = vsel %vm4918_vm3, %v3766_v29, %v3752_v46 }
 0x1a2   : > { %v3800_v48 = vpop.xlane.xlu1 %1024  ;;  %v3802_v49 = vpop.xlane.xlu0 %1021  ;;  %v2135_v31 = vsel %vm2025_vm7, %v2134_v60, %v2133_v16  ;;  %v2163_v41 = vperm.slane %v1554_v2, %v3452_v10  ;;  %v1556_v19 = vadd.f32 %v3386_v43, %v4998_v24  ;;  %v2162_v32 = vsel %vm2017_vm5, %v2161_v45, %v2160_v61  ;;  %v5000_v2 = vld [vmem:[#allocation23_spill] sm:$0xff] }
 0x1a3   : > { %v3812_v38 = vpop.xlane.xlu2 %1027  ;;  %v608_v60 = vmul.f32 %v3326_v0, %v348_v53  ;;  %v2137_v16 = vsel %vm2029_vm8, %v2136_v3, %v2135_v31  ;;  %v2140_v47 = vperm.slane %v1542_v15, %v3507_v9  ;;  %v1544_v40 = vadd.f32 %v3386_v43, %v5000_v2  ;;  %v5005_v2 = vld [vmem:[#allocation24_spill] sm:$0xff] }
 0x1a4   : > { %v2139_v45 = vsel %vm2033_vm9, %v2138_v63, %v2137_v16  ;;  %v2118_v53 = vsel %vm2053_vm14, %v2117_v23, %v2116_v17  ;;  %v2119_v31 = vperm.slane %v3806_v11, %v3657_v21  ;;  %v2164_v46 = vsel %vm2021_vm6, %v2163_v41, %v2162_v32  ;;  %v5004_v23 = vld [vmem:[#allocation36_spill] sm:$0xff]  ;;  %v350_v16 = vld [vmem:[%s2853_s4 + $0x4c8] sm:$0xff] }
 0x1a5   : > { %v2167_v29 = vperm.slane %v1556_v19, %v3483_v36  ;;  %v2142_v1 = vperm.slane %v1543_v51, %v3520_v7  ;;  %v1167_v61 = vsel %vm713_vm0, %v608_v60, 0.0  ;;  %v1164_v24 = vsel %vm713_vm0, %v607_v34, 0.0  ;;  %v351_v32 = vld [vmem:[%s2853_s4 + $0x4d0] sm:$0xff] }
 0x1a6   : > { %v2141_v17 = vsel %vm4921_vm10, %v2140_v47, %v2139_v45  ;;  %v2144_v11 = vperm.slane %v1544_v40, %v3543_v55  ;;  %v1558_v41 = vadd.f32 %v3386_v43, %v5004_v23  ;;  %v1546_v51 = vadd.f32 %v3386_v43, %v5005_v2  ;;  %v352_v47 = vld [vmem:[%s2853_s4 + $0x4d8] sm:$0xff]  ;;  %v5007_v45 = vld [vmem:[#allocation42_spill] sm:$0xff] }
 0x1a7   : > { %1159 = vadd.xlane.f32.xlu1 %v1158_v22  ;;  %1156 = vadd.xlane.f32.xlu0 %v1155_v59  ;;  %v609_v22 = vmul.f32 %v3326_v0, %v349_v52  ;;  %v2165_v59 = vperm.slane %v1555_v20, %v3473_v56  ;;  %v5003_v20 = vld [vmem:[#allocation22_spill] sm:$0xff]  ;;  %vm4919_vm3 = vcmask 1042434   ;;  %v1564_v23 = vadd.f32 %v3386_v43, %v5007_v45 }
 0x1a8   : > { %1162 = vadd.xlane.f32.xlu2 %v1161_v33  ;;  %v5001_v33 = vld [vmem:[#allocation34_spill] sm:$0xff]  ;;  %v1545_v52 = vadd.f32 %v3386_v43, %v5003_v20  ;;  %v2143_v2 = vsel %vm4920_vm11, %v2142_v1, %v2141_v17  ;;  %v5011_v17 = vld [vmem:[#allocation43_spill] sm:$0xff] }
 0x1a9   : > { %v1557_v13 = vadd.f32 %v3386_v43, %v5001_v33  ;;  %v1170_v19 = vsel %vm713_vm0, %v609_v22, 0.0  ;;  %v2166_v33 = vsel %vm2025_vm7, %v2165_v59, %v2164_v46  ;;  %v5006_v20 = vld [vmem:[#allocation38_spill] sm:$0xff]  ;;  %v5008_v22 = vld [vmem:[#allocation44_spill] sm:$0xff]  ;;  %v610_v46 = vmul.f32 %v3326_v0, %v350_v16 }
 0x1aa   : > { %v3854_v3 = vpop.xlane.xlu1 %1033  ;;  %v3856_v15 = vpop.xlane.xlu0 %1030  ;;  %v1559_v34 = vadd.f32 %v3386_v43, %v5006_v20  ;;  %v2168_v40 = vsel %vm2029_vm8, %v2167_v29, %v2166_v33  ;;  %v2146_v59 = vperm.slane %v1545_v52, %v3532_v25  ;;  %v2145_v20 = vsel %vm4923_vm12, %v2144_v11, %v2143_v2  ;;  %v5009_v33 = vld [vmem:[#allocation37_spill] sm:$0xff] }
 0x1ab   : > { %v3863_v63 = vpop.xlane.xlu2 %1036  ;;  %v2169_v60 = vperm.slane %v1557_v13, %v3510_v44  ;;  %v611_v13 = vmul.f32 %v3326_v0, %v351_v32  ;;  %v2171_v29 = vperm.slane %v1558_v41, %v3507_v9  ;;  %v1560_v45 = vadd.f32 %v3386_v43, %v5009_v33 }
 0x1ac   : > { %5002 = vst [vmem:[#allocation6_spill] sm:$0xff] %v3863_v63  ;;  %v1565_v63 = vadd.f32 %v3386_v43, %v5008_v22  ;;  %v612_v22 = vmul.f32 %v3326_v0, %v352_v47  ;;  %v2173_v52 = vperm.slane %v1559_v34, %v3520_v7  ;;  %v2120_v41 = vsel %vm2057_vm15, %v2119_v31, %v2118_v53 }
 0x1ad   : > { %v2170_v1 = vsel %vm2033_vm9, %v2169_v60, %v2168_v40  ;;  %v2148_v16 = vperm.slane %v1546_v51, %v3577_v54  ;;  %v2183_v47 = vperm.slane %v1564_v23, %v3382_v57  ;;  %v2147_v34 = vsel %vm2049_vm13, %v2146_v59, %v2145_v20  ;;  %v5015_v40 = vld [vmem:[#allocation39_spill] sm:$0xff]  ;;  %v5016_v51 = vld [vmem:[#allocation45_spill] sm:$0xff] }
 0x1ae   : > { %v2184_v2 = vperm.slane %v1565_v63, %v3392_v4  ;;  %v1561_v33 = vadd.f32 %v3386_v43, %v5015_v40  ;;  %v2172_v53 = vsel %vm4921_vm10, %v2171_v29, %v2170_v1  ;;  %v2175_v31 = vperm.slane %v1560_v45, %v3543_v55 }
 0x1af   : > { %1168 = vadd.xlane.f32.xlu1 %v1167_v61  ;;  %1165 = vadd.xlane.f32.xlu0 %v1164_v24  ;;  %v5010_v61 = vld [vmem:[#allocation26_spill] sm:$0xff]  ;;  %v1567_v23 = vadd.f32 %v3386_v43, %v5016_v51  ;;  %v1179_v63 = vsel %vm713_vm0, %v612_v22, 0.0  ;;  %v2174_v20 = vsel %vm4920_vm11, %v2173_v52, %v2172_v53  ;;  %v1581_v45 = vadd.f32 %v3386_v43, %v3699_v50 }
 0x1b0   : > { %1171 = vadd.xlane.f32.xlu2 %v1170_v19  ;;  %v1547_v24 = vadd.f32 %v3386_v43, %v5010_v61  ;;  %v1566_v19 = vadd.f32 %v3386_v43, %v5011_v17  ;;  %v1176_v61 = vsel %vm713_vm0, %v611_v13, 0.0  ;;  %v1173_v17 = vsel %vm713_vm0, %v610_v46, 0.0  ;;  %v5017_v13 = vld [vmem:[#allocation47_spill] sm:$0xff] }
 0x1b1   : > { %v1568_v46 = vadd.f32 %v3386_v43, %v5017_v13  ;;  %v2185_v29 = vsel %vm2001_vm1, %v2184_v2, %v2183_v47  ;;  %v1580_v22 = vadd.f32 %v3386_v43, %v3701_v37  ;;  %v2177_v1 = vperm.slane %v1561_v33, %v3532_v25  ;;  %v5018_v2 = vld [vmem:[#allocation46_spill] sm:$0xff] }
 0x1b2   : > { %v3904_v32 = vpop.xlane.xlu1 %1042  ;;  %v3906_v11 = vpop.xlane.xlu0 %1039  ;;  %v2150_v59 = vperm.slane %v1547_v24, %v3657_v21  ;;  %v2186_v40 = vperm.slane %v1566_v19, %v3408_v27  ;;  %v3939_v24 = vsel %vm4919_vm3, %v2120_v41, %v3848_v62  ;;  %v2176_v47 = vsel %vm4923_vm12, %v2175_v31, %v2174_v20 }
 0x1b3   : > { %5012 = vst [vmem:[#allocation7_spill] sm:$0xff] %v3904_v32  ;;  %v3912_v60 = vpop.xlane.xlu2 %1045  ;;  %v354_v32 = vld [vmem:[%s2853_s4 + $0x4e8] sm:$0xff]  ;;  %v2188_v50 = vperm.slane %v1567_v23, %v3413_v12  ;;  %v1569_v37 = vadd.f32 %v3386_v43, %v5018_v2  ;;  %v2190_v41 = vperm.slane %v1568_v46, %v3429_v5  ;;  %v2215_v31 = vperm.slane %v1581_v45, %v3392_v4  ;;  %v357_v46 = vld [vmem:[%s2853_s4 + $0x500] sm:$0xff]  ;;  %v5022_v45 = vld [vmem:[#allocation41_spill] sm:$0xff] }
 0x1b4   : > { %5013 = vst [vmem:[#allocation12_spill] sm:$0xff] %v3906_v11  ;;  %v355_v11 = vld [vmem:[%s2853_s4 + $0x4f0] sm:$0xff]  ;;  %v614_v52 = vmul.f32 %v3326_v0, %v354_v32  ;;  %v2187_v62 = vsel %vm2005_vm2, %v2186_v40, %v2185_v29  ;;  %v1582_v32 = vadd.f32 %v3386_v43, %v3708_v58  ;;  %vm5020_vm3 = vcmask 261312   ;;  %v356_v29 = vld [vmem:[%s2853_s4 + $0x4f8] sm:$0xff] }
 0x1b5   : > { %5014 = vst [vmem:[#allocation14_spill] sm:$0xff] %v3912_v60  ;;  %v353_v60 = vld [vmem:[%s2853_s4 + $0x4e0] sm:$0xff]  ;;  %v5019_v58 = vld [vmem:[#allocation40_spill] sm:$0xff]  ;;  %v2192_v20 = vperm.slane %v1569_v37, %v3439_v8  ;;  %v1584_v2 = vadd.f32 %v3386_v43, %v3747_v42 }
 0x1b6   : > { %v613_v19 = vmul.f32 %v3326_v0, %v353_v60  ;;  %v3968_v51 = vadd.f32 %v3386_v43, %v5019_v58  ;;  %v1185_v23 = vsel %vm713_vm0, %v614_v52, 0.0  ;;  %v5021_v40 = vld [vmem:[#allocation48_spill] sm:$0xff]  ;;  %v1571_v52 = vadd.f32 %v3386_v43, %v3549_v39  ;;  %v3997_v39 = vld [vmem:[%s4914_s1] ss:$0 sm:$0xff] }
 0x1b7   : > { %1177 = vadd.xlane.f32.xlu1 %v1176_v61  ;;  %1174 = vadd.xlane.f32.xlu0 %v1173_v17  ;;  %v615_v61 = vmul.f32 %v3326_v0, %v355_v11  ;;  %v2149_v17 = vsel %vm2053_vm14, %v2148_v16, %v2147_v34  ;;  %v2214_v0 = vperm.slane %v1580_v22, %v3382_v57 }
 0x1b8   : > { %1180 = vadd.xlane.f32.xlu2 %v1179_v63  ;;  %v3957_v53 = vsel %vm2057_vm15, %v2150_v59, %v2149_v17  ;;  %v1583_v11 = vadd.f32 %v3386_v43, %v3749_v35  ;;  %v3964_v34 = vsel %vm2049_vm13, %v2177_v1, %v2176_v47  ;;  %v1182_v63 = vsel %vm713_vm0, %v613_v19, 0.0  ;;  %v358_v47 = vld [vmem:[%s2853_s4 + $0x508] sm:$0xff] }
 0x1b9   : > { %v2189_v59 = vsel %vm5020_vm3, %v2188_v50, %v2187_v62  ;;  %v1570_v35 = vadd.f32 %v3386_v43, %v5021_v40  ;;  %v1188_v13 = vsel %vm713_vm0, %v615_v61, 0.0  ;;  %v3981_v22 = vadd.f32 %v3386_v43, %v5022_v45 }
 0x1ba   : > { %v1052_v60 = vpop.xlane.xlu1 %1051  ;;  %v3954_v33 = vpop.xlane.xlu0 %1048  ;;  %v2191_v1 = vsel %vm2013_vm4, %v2190_v41, %v2189_v59  ;;  %v2217_v19 = vperm.slane %v1582_v32, %v3408_v27  ;;  %v2216_v50 = vsel %vm2001_vm1, %v2215_v31, %v2214_v0  ;;  %v2219_v37 = vperm.slane %v1583_v11, %v3413_v12 }
 0x1bb   : > { %v1055_v16 = vpop.xlane.xlu2 %1054  ;;  %v1596_v61 = vadd.f32 %v3386_v43, %v1052_v60  ;;  %v617_v62 = vmul.f32 %v3997_v39, %v357_v46  ;;  %v616_v41 = vmul.f32 %v3997_v39, %v356_v29  ;;  %v2193_v42 = vsel %vm2017_vm5, %v2192_v20, %v2191_v1 }
 0x1bc   : > { %v1597_v17 = vadd.f32 %v3386_v43, %v1055_v16  ;;  %v2194_v32 = vperm.slane %v1570_v35, %v3452_v10  ;;  %v1572_v31 = vadd.f32 %v3386_v43, %v3547_v28  ;;  %v618_v60 = vmul.f32 %v3997_v39, %v358_v47 }
 0x1bd   : > { %v2196_v0 = vperm.slane %v1571_v52, %v3473_v56  ;;  %v1573_v11 = vadd.f32 %v3386_v43, %v3556_v6  ;;  %v2218_v16 = vsel %vm2005_vm2, %v2217_v19, %v2216_v50  ;;  %v1585_v58 = vadd.f32 %v3386_v43, %v3758_v14  ;;  %v360_v52 = vld [vmem:[%s2853_s4 + $0x518] sm:$0xff]  ;;  %v359_v19 = vld [vmem:[%s2853_s4 + $0x510] sm:$0xff] }
 0x1be   : > { %v2221_v59 = vperm.slane %v1584_v2, %v3429_v5  ;;  %v2220_v28 = vsel %vm5020_vm3, %v2219_v37, %v2218_v16  ;;  %v1586_v20 = vadd.f32 %v3386_v43, %v3802_v49  ;;  %v2245_v35 = vperm.slane %v1596_v61, %v3382_v57  ;;  %v361_v61 = vld [vmem:[%s2853_s4 + $0x520] sm:$0xff] }
 0x1bf   : > { %1186 = vadd.xlane.f32.xlu1 %v1185_v23  ;;  %1183 = vadd.xlane.f32.xlu0 %v1182_v63  ;;  %v1194_v14 = vsel %vm713_vm0, %v617_v62, 0.0  ;;  %v1191_v46 = vsel %vm713_vm0, %v616_v41, 0.0  ;;  %v2181_v29 = vperm.slane %v3968_v51, %v3657_v21  ;;  %v2195_v45 = vsel %vm2021_vm6, %v2194_v32, %v2193_v42 }
 0x1c0   : > { %1189 = vadd.xlane.f32.xlu2 %v1188_v13  ;;  %v2246_v13 = vperm.slane %v1597_v17, %v3392_v4  ;;  %v2198_v1 = vperm.slane %v1572_v31, %v3483_v36  ;;  %v1197_v49 = vsel %vm713_vm0, %v618_v60, 0.0  ;;  %v2197_v47 = vsel %vm2025_vm7, %v2196_v0, %v2195_v45 }
 0x1c1   : > { %v2200_v50 = vperm.slane %v1573_v11, %v3510_v44  ;;  %v2223_v2 = vperm.slane %v1585_v58, %v3439_v8  ;;  %v2222_v17 = vsel %vm2013_vm4, %v2221_v59, %v2220_v28  ;;  %v1587_v62 = vadd.f32 %v3386_v43, %v3800_v48 }
 0x1c2   : > { %v1061_v23 = vpop.xlane.xlu1 %1060  ;;  %v1058_v63 = vpop.xlane.xlu0 %1057  ;;  %v2225_v42 = vperm.slane %v1586_v20, %v3452_v10  ;;  %v2247_v32 = vsel %vm2001_vm1, %v2246_v13, %v2245_v35  ;;  %v620_v31 = vmul.f32 %v3997_v39, %v360_v52  ;;  %v619_v60 = vmul.f32 %v3997_v39, %v359_v19  ;;  %v363_v19 = vld [vmem:[%s2853_s4 + $0x530] sm:$0xff] }
 0x1c3   : > { %v1598_v40 = vadd.f32 %v3386_v43, %v1058_v63  ;;  %v1064_v6 = vpop.xlane.xlu2 %1063  ;;  %v1599_v37 = vadd.f32 %v3386_v43, %v1061_v23  ;;  %v2179_v0 = vperm.slane %v3981_v22, %v3577_v54  ;;  %v2199_v11 = vsel %vm2029_vm8, %v2198_v1, %v2197_v47  ;;  %v362_v47 = vld [vmem:[%s2853_s4 + $0x528] sm:$0xff] }
 0x1c4   : > { %v1600_v48 = vadd.f32 %v3386_v43, %v1064_v6  ;;  %v621_v16 = vmul.f32 %v3997_v39, %v361_v61  ;;  %v1574_v58 = vadd.f32 %v3386_v43, %v3600_v18  ;;  %v2224_v23 = vsel %vm2017_vm5, %v2223_v2, %v2222_v17  ;;  %v364_v17 = vld [vmem:[%s2853_s4 + $0x538] sm:$0xff] }
 0x1c5   : > { %v2248_v41 = vperm.slane %v1598_v40, %v3408_v27  ;;  %v1588_v63 = vadd.f32 %v3386_v43, %v3812_v38  ;;  %v2250_v59 = vperm.slane %v1599_v37, %v3413_v12  ;;  %v2227_v40 = vperm.slane %v1587_v62, %v3473_v56 }
 0x1c6   : > { %v1589_v6 = vadd.f32 %v3386_v43, %v3856_v15  ;;  %v2226_v38 = vsel %vm2021_vm6, %v2225_v42, %v2224_v23  ;;  %v1200_v45 = vsel %vm713_vm0, %v619_v60, 0.0  ;;  %v1575_v1 = vadd.f32 %v3386_v43, %v3598_v26  ;;  %v5023_v23 = vld [vmem:[#allocation50_spill] sm:$0xff] }
 0x1c7   : > { %1195 = vadd.xlane.f32.xlu1 %v1194_v14  ;;  %1192 = vadd.xlane.f32.xlu0 %v1191_v46  ;;  %v2249_v35 = vsel %vm2005_vm2, %v2248_v41, %v2247_v32  ;;  %v2201_v14 = vsel %vm2033_vm9, %v2200_v50, %v2199_v11  ;;  %v1203_v46 = vsel %vm713_vm0, %v620_v31, 0.0  ;;  %v1206_v52 = vsel %vm713_vm0, %v621_v16, 0.0 }
 0x1c8   : > { %1198 = vadd.xlane.f32.xlu2 %v1197_v49  ;;  %v2252_v49 = vperm.slane %v1600_v48, %v3429_v5  ;;  %v2202_v2 = vperm.slane %v1574_v58, %v3507_v9  ;;  %v2229_v50 = vperm.slane %v1588_v63, %v3483_v36  ;;  %v2251_v37 = vsel %vm5020_vm3, %v2250_v59, %v2249_v35  ;;  %v5024_v35 = vld [vmem:[#allocation6_spill] sm:$0xff] }
 0x1c9   : > { %v2228_v62 = vsel %vm2025_vm7, %v2227_v40, %v2226_v38  ;;  %v1590_v26 = vadd.f32 %v3386_v43, %v3854_v3  ;;  %v2231_v41 = vperm.slane %v1589_v6, %v3510_v44  ;;  %v1576_v42 = vadd.f32 %v3386_v43, %v3608_v30 }
 0x1ca   : > { %v1070_v28 = vpop.xlane.xlu1 %1069  ;;  %v1067_v20 = vpop.xlane.xlu0 %1066  ;;  %v623_v31 = vmul.f32 %v3997_v39, %v363_v19  ;;  %v622_v60 = vmul.f32 %v3997_v39, %v362_v47  ;;  %v2204_v11 = vperm.slane %v1575_v1, %v3520_v7  ;;  %v2253_v48 = vsel %vm2013_vm4, %v2252_v49, %v2251_v37  ;;  %v366_v47 = vld [vmem:[%s2853_s4 + $0x548] sm:$0xff]  ;;  %v5025_v37 = vld [vmem:[#allocation49_spill] sm:$0xff] }
 0x1cb   : > { %v1601_v18 = vadd.f32 %v3386_v43, %v1067_v20  ;;  %v1073_v13 = vpop.xlane.xlu2 %1072  ;;  %v1602_v15 = vadd.f32 %v3386_v43, %v1070_v28  ;;  %v624_v16 = vmul.f32 %v3997_v39, %v364_v17  ;;  %v2203_v58 = vsel %vm4921_vm10, %v2202_v2, %v2201_v14  ;;  %v365_v2 = vld [vmem:[%s2853_s4 + $0x540] sm:$0xff] }
 0x1cc   : > { %v1603_v32 = vadd.f32 %v3386_v43, %v1073_v13  ;;  %v1577_v30 = vadd.f32 %v3386_v43, %v5023_v23  ;;  %v2230_v63 = vsel %vm2029_vm8, %v2229_v50, %v2228_v62  ;;  %v2233_v40 = vperm.slane %v1590_v26, %v3507_v9  ;;  %v5026_v62 = vld [vmem:[#allocation12_spill] sm:$0xff] }
 0x1cd   : > { %v2254_v61 = vperm.slane %v1601_v18, %v3439_v8  ;;  %v2256_v3 = vperm.slane %v1602_v15, %v3452_v10  ;;  %v2232_v6 = vsel %vm2033_vm9, %v2231_v41, %v2230_v63  ;;  %v1591_v18 = vadd.f32 %v3386_v43, %v5024_v35  ;;  %v367_v41 = vld [vmem:[%s2853_s4 + $0x550] sm:$0xff] }
 0x1ce   : > { %v2258_v38 = vperm.slane %v1603_v32, %v3473_v56  ;;  %v1209_v1 = vsel %vm713_vm0, %v622_v60, 0.0  ;;  %v2206_v49 = vperm.slane %v1576_v42, %v3543_v55  ;;  %v1215_v19 = vsel %vm713_vm0, %v624_v16, 0.0 }
 0x1cf   : > { %1204 = vadd.xlane.f32.xlu1 %v1203_v46  ;;  %1201 = vadd.xlane.f32.xlu0 %v1200_v45  ;;  %v2255_v59 = vsel %vm2017_vm5, %v2254_v61, %v2253_v48  ;;  %v1212_v45 = vsel %vm713_vm0, %v623_v31, 0.0  ;;  %v2205_v50 = vsel %vm4920_vm11, %v2204_v11, %v2203_v58  ;;  %v1578_v61 = vadd.f32 %v3386_v43, %v5025_v37  ;;  %v5027_v58 = vld [vmem:[#allocation7_spill] sm:$0xff] }
 0x1d0   : > { %1207 = vadd.xlane.f32.xlu2 %v1206_v52  ;;  %v2257_v15 = vsel %vm2021_vm6, %v2256_v3, %v2255_v59  ;;  %v2208_v17 = vperm.slane %v1577_v30, %v3532_v25  ;;  %v1592_v26 = vadd.f32 %v3386_v43, %v5026_v62  ;;  %vm4922_vm3 = vcmask 1043459  }
 0x1d1   : > { %v2234_v42 = vsel %vm4921_vm10, %v2233_v40, %v2232_v6  ;;  %v2235_v32 = vperm.slane %v1591_v18, %v3520_v7  ;;  %v2259_v60 = vsel %vm2025_vm7, %v2258_v38, %v2257_v15  ;;  %v626_v48 = vmul.f32 %v3997_v39, %v366_v47 }
 0x1d2   : > { %v1079_v28 = vpop.xlane.xlu1 %1078  ;;  %v1076_v20 = vpop.xlane.xlu0 %1075  ;;  %v625_v3 = vmul.f32 %v3997_v39, %v365_v2  ;;  %v2207_v16 = vsel %vm4923_vm12, %v2206_v49, %v2205_v50  ;;  %v1593_v23 = vadd.f32 %v3386_v43, %v5027_v58  ;;  %v627_v63 = vmul.f32 %v3997_v39, %v367_v41 }
 0x1d3   : > { %v1604_v13 = vadd.f32 %v3386_v43, %v1076_v20  ;;  %v1082_v14 = vpop.xlane.xlu2 %1081  ;;  %v1605_v46 = vadd.f32 %v3386_v43, %v1079_v28  ;;  %v2210_v59 = vperm.slane %v1578_v61, %v3577_v54  ;;  %v2209_v28 = vsel %vm2049_vm13, %v2208_v17, %v2207_v16  ;;  %v5028_v20 = vld [vmem:[#allocation51_spill] sm:$0xff]  ;;  %v369_v61 = vld [vmem:[%s2853_s4 + $0x560] sm:$0xff]  ;;  %v368_v17 = vld [vmem:[%s2853_s4 + $0x558] sm:$0xff] }
 0x1d4   : > { %v1606_v31 = vadd.f32 %v3386_v43, %v1082_v14  ;;  %v1579_v40 = vadd.f32 %v3386_v43, %v5028_v20  ;;  %v2237_v6 = vperm.slane %v1592_v26, %v3543_v55  ;;  %v2239_v47 = vperm.slane %v1593_v23, %v3532_v25 }
 0x1d5   : > { %v2260_v52 = vperm.slane %v1604_v13, %v3483_v36  ;;  %v2262_v11 = vperm.slane %v1605_v46, %v3510_v44  ;;  %v2236_v13 = vsel %vm4920_vm11, %v2235_v32, %v2234_v42  ;;  %v1595_v2 = vadd.f32 %v3386_v43, %v3954_v33  ;;  %v370_v33 = vld [vmem:[%s2853_s4 + $0x568] sm:$0xff] }
 0x1d6   : > { %v2264_v14 = vperm.slane %v1606_v31, %v3507_v9  ;;  %v1224_v37 = vsel %vm713_vm0, %v627_v63, 0.0  ;;  %v2180_v62 = vsel %vm2053_vm14, %v2179_v0, %v3964_v34  ;;  %v2212_v26 = vperm.slane %v1579_v40, %v3657_v21 }
 0x1d7   : > { %1213 = vadd.xlane.f32.xlu1 %v1212_v45  ;;  %1210 = vadd.xlane.f32.xlu0 %v1209_v1  ;;  %v2261_v30 = vsel %vm2029_vm8, %v2260_v52, %v2259_v60  ;;  %v5029_v1 = vld [vmem:[#allocation14_spill] sm:$0xff]  ;;  %v1221_v52 = vsel %vm713_vm0, %v626_v48, 0.0  ;;  %v2238_v41 = vsel %vm4923_vm12, %v2237_v6, %v2236_v13  ;;  %v2211_v32 = vsel %vm2053_vm14, %v2210_v59, %v2209_v28 }
 0x1d8   : > { %1216 = vadd.xlane.f32.xlu2 %v1215_v19  ;;  %v1594_v49 = vadd.f32 %v3386_v43, %v5029_v1  ;;  %v2263_v15 = vsel %vm2033_vm9, %v2262_v11, %v2261_v30  ;;  %v1218_v19 = vsel %vm713_vm0, %v625_v3, 0.0  ;;  %v629_v0 = vmul.f32 %v3997_v39, %v369_v61 }
 0x1d9   : > { %v2265_v31 = vsel %vm4921_vm10, %v2264_v14, %v2263_v15  ;;  %v628_v11 = vmul.f32 %v3997_v39, %v368_v17  ;;  %v2529_v48 = vsel %vm4922_vm3, %v3957_v53, %v3939_v24  ;;  %v2240_v3 = vsel %vm2049_vm13, %v2239_v47, %v2238_v41 }
 0x1da   : > { %v1088_v35 = vpop.xlane.xlu1 %1087  ;;  %v1085_v18 = vpop.xlane.xlu0 %1084  ;;  %v2241_v22 = vperm.slane %v1594_v49, %v3577_v54  ;;  %v2243_v16 = vperm.slane %v1595_v2, %v3657_v21  ;;  %v630_v58 = vmul.f32 %v3997_v39, %v370_v33  ;;  %v2182_v23 = vsel %vm2057_vm15, %v2181_v29, %v2180_v62  ;;  %v373_v49 = vld [vmem:[%s2853_s4 + $0x580] sm:$0xff] }
 0x1db   : > { %v1608_v38 = vadd.f32 %v3386_v43, %v1088_v35  ;;  %v1607_v46 = vadd.f32 %v3386_v43, %v1085_v18  ;;  %v1091_v45 = vpop.xlane.xlu2 %1090  ;;  %vm4926_vm10 = vcmask 1045509   ;;  %v2213_v53 = vsel %vm2057_vm15, %v2212_v26, %v2211_v32 }
 0x1dc   : > { %v1609_v42 = vadd.f32 %v3386_v43, %v1091_v45  ;;  %v2242_v29 = vsel %vm2053_vm14, %v2241_v22, %v2240_v3  ;;  %vm4925_vm3 = vcmask 1046534   ;;  %v1230_v40 = vsel %vm713_vm0, %v629_v0, 0.0  ;;  %v374_v3 = vld [vmem:[%s2853_s4 + $0x588] sm:$0xff] }
 0x1dd   : > { %v2266_v50 = vperm.slane %v1607_v46, %v3520_v7  ;;  %v2268_v60 = vperm.slane %v1608_v38, %v3543_v55  ;;  %v1227_v6 = vsel %vm713_vm0, %v628_v11, 0.0  ;;  %v2244_v35 = vsel %vm2057_vm15, %v2243_v16, %v2242_v29  ;;  %v372_v38 = vld [vmem:[%s2853_s4 + $0x578] sm:$0xff]  ;;  %v371_v46 = vld [vmem:[%s2853_s4 + $0x570] sm:$0xff] }
 0x1de   : > { %v2270_v30 = vperm.slane %v1609_v42, %v3532_v25  ;;  %v1233_v14 = vsel %vm713_vm0, %v630_v58, 0.0  ;;  %v633_v17 = vmul.f32 %v3997_v39, %v373_v49  ;;  %v376_v58 = vld [vmem:[%s2853_s4 + $0x598] sm:$0xff]  ;;  %v379_v49 = vld [vmem:[%s2853_s4 + $0x5b0] sm:$0xff] }
 0x1df   : > { %1222 = vadd.xlane.f32.xlu1 %v1221_v52  ;;  %1219 = vadd.xlane.f32.xlu0 %v1218_v19  ;;  %v2267_v34 = vsel %vm4920_vm11, %v2266_v50, %v2265_v31  ;;  %vm2530_vm11 = vcmask 1044484   ;;  %v632_v50 = vmul.f32 %v3997_v39, %v372_v38 }
 0x1e0   : > { %1225 = vadd.xlane.f32.xlu2 %v1224_v37  ;;  %v2269_v59 = vsel %vm4923_vm12, %v2268_v60, %v2267_v34  ;;  %v2531_v45 = vsel %vm2530_vm11, %v2182_v23, %v2529_v48  ;;  %vm4924_vm12 = vcmask 1047559   ;;  %v631_v37 = vmul.f32 %v3997_v39, %v371_v46  ;;  %v375_v48 = vld [vmem:[%s2853_s4 + $0x590] sm:$0xff]  ;;  %v378_v46 = vld [vmem:[%s2853_s4 + $0x5a8] sm:$0xff] }
 0x1e1   : > { %v2271_v1 = vsel %vm2049_vm13, %v2270_v30, %v2269_v59  ;;  %v2533_v15 = vsel %vm4926_vm10, %v2213_v53, %v2531_v45  ;;  %v1239_v60 = vsel %vm713_vm0, %v632_v50, 0.0  ;;  %v1242_v11 = vsel %vm713_vm0, %v633_v17, 0.0  ;;  %v377_v45 = vld [vmem:[%s2853_s4 + $0x5a0] sm:$0xff] }
 0x1e2   : > { %v1097_v63 = vpop.xlane.xlu1 %1096  ;;  %v1094_v24 = vpop.xlane.xlu0 %1093  ;;  %v2535_v47 = vsel %vm4925_vm3, %v2244_v35, %v2533_v15  ;;  %v1236_v22 = vsel %vm713_vm0, %v631_v37, 0.0  ;;  %v636_v59 = vmul.f32 %v3997_v39, %v376_v58  ;;  %v639_v50 = vmul.f32 %v3997_v39, %v379_v49 }
 0x1e3   : > { %v1611_v28 = vadd.f32 %v3386_v43, %v1097_v63  ;;  %v1610_v20 = vadd.f32 %v3386_v43, %v1094_v24  ;;  %v1100_v51 = vpop.xlane.xlu2 %1099  ;;  %v635_v63 = vmul.f32 %v3997_v39, %v375_v48  ;;  %v634_v24 = vmul.f32 %v3997_v39, %v374_v3 }
 0x1e4   : > { %v1612_v19 = vadd.f32 %v3386_v43, %v1100_v51  ;;  %v1251_v38 = vsel %vm713_vm0, %v636_v59, 0.0  ;;  %vm5032_vm3 = vcmask 786112   ;;  %vm5033_vm10 = vcmask 851712  }
 0x1e5   : > { %v2274_v18 = vperm.slane %v1611_v28, %v3657_v21  ;;  %v2272_v13 = vperm.slane %v1610_v20, %v3577_v54  ;;  %v1248_v35 = vsel %vm713_vm0, %v635_v63, 0.0 }
 0x1e6   : > { %v2276_v41 = vperm.slane %v1612_v19, %v3382_v57  ;;  %v638_v19 = vmul.f32 %v3997_v39, %v378_v46 }
 0x1e7   : > { %v2273_v52 = vsel %vm2053_vm14, %v2272_v13, %v2271_v1  ;;  %1231 = vadd.xlane.f32.xlu1 %v1230_v40  ;;  %1228 = vadd.xlane.f32.xlu0 %v1227_v6 }
 0x1e8   : > { %v2275_v2 = vsel %vm2057_vm15, %v2274_v18, %v2273_v52  ;;  %1234 = vadd.xlane.f32.xlu2 %v1233_v14  ;;  %v1245_v18 = vsel %vm713_vm0, %v634_v24, 0.0 }
 0x1e9   : > { %v2537_v61 = vsel %vm4924_vm12, %v2275_v2, %v2535_v47  ;;  %vm5030_vm12 = vcmask 261312   ;;  %v637_v47 = vmul.f32 %v3997_v39, %v377_v45 }
 0x1ea   : > { %v1106_v62 = vpop.xlane.xlu1 %1105  ;;  %v1103_v26 = vpop.xlane.xlu0 %1102  ;;  %2547 = vst [vmem:[%s4201_s12] sm:$0xff] %v2537_v61 }
 0x1eb   : > { %v1614_v42 = vadd.f32 %v3386_v43, %v1106_v62  ;;  %v1613_v33 = vadd.f32 %v3386_v43, %v1103_v26  ;;  %v1109_v32 = vpop.xlane.xlu2 %1108 }
 0x1ec   : > { %v1615_v31 = vadd.f32 %v3386_v43, %v1109_v32 }
 0x1ed   : > { %v2279_v34 = vperm.slane %v1614_v42, %v3408_v27  ;;  %v2277_v0 = vperm.slane %v1613_v33, %v3392_v4  ;;  %v1257_v42 = vsel %vm713_vm0, %v638_v19, 0.0  ;;  %v1254_v33 = vsel %vm713_vm0, %v637_v47, 0.0 }
 0x1ee   : > { %v2281_v16 = vperm.slane %v1615_v31, %v3413_v12 }
 0x1ef   : > { %v2278_v23 = vsel %vm2001_vm1, %v2277_v0, %v2276_v41  ;;  %1240 = vadd.xlane.f32.xlu1 %v1239_v60  ;;  %1237 = vadd.xlane.f32.xlu0 %v1236_v22  ;;  %v1260_v60 = vsel %vm713_vm0, %v639_v50, 0.0  ;;  %v381_v22 = vld [vmem:[%s2853_s4 + $0x5c0] sm:$0xff] }
 0x1f0   : > { %v2280_v30 = vsel %vm2005_vm2, %v2279_v34, %v2278_v23  ;;  %1243 = vadd.xlane.f32.xlu2 %v1242_v11  ;;  %v380_v34 = vld [vmem:[%s2853_s4 + $0x5b8] sm:$0xff]  ;;  %v382_v11 = vld [vmem:[%s2853_s4 + $0x5c8] sm:$0xff] }
 0x1f1   : > { %v2282_v53 = vsel %vm5030_vm12, %v2281_v16, %v2280_v30  ;;  %v641_v16 = vmul.f32 %v3997_v39, %v381_v22  ;;  %v640_v58 = vmul.f32 %v3997_v39, %v380_v34  ;;  %v642_v30 = vmul.f32 %v3997_v39, %v382_v11 }
 0x1f2   : > { %v1115_v28 = vpop.xlane.xlu1 %1114  ;;  %v1112_v20 = vpop.xlane.xlu0 %1111  ;;  %vm5031_vm12 = vcmask 720512  }
 0x1f3   : > { %v1617_v51 = vadd.f32 %v3386_v43, %v1115_v28  ;;  %v1616_v29 = vadd.f32 %v3386_v43, %v1112_v20  ;;  %v1118_v40 = vpop.xlane.xlu2 %1117 }
 0x1f4   : > { %v1618_v6 = vadd.f32 %v3386_v43, %v1118_v40 }
 0x1f5   : > { %v2285_v13 = vperm.slane %v1617_v51, %v3439_v8  ;;  %v2283_v14 = vperm.slane %v1616_v29, %v3429_v5  ;;  %v1266_v51 = vsel %vm713_vm0, %v641_v16, 0.0  ;;  %v1263_v29 = vsel %vm713_vm0, %v640_v58, 0.0 }
 0x1f6   : > { %v2287_v1 = vperm.slane %v1618_v6, %v3452_v10 }
 0x1f7   : > { %v2284_v15 = vsel %vm2013_vm4, %v2283_v14, %v2282_v53  ;;  %1249 = vadd.xlane.f32.xlu1 %v1248_v35  ;;  %1246 = vadd.xlane.f32.xlu0 %v1245_v18  ;;  %v1269_v35 = vsel %vm713_vm0, %v642_v30, 0.0  ;;  %v384_v18 = vld [vmem:[%s2853_s4 + $0x5d8] sm:$0xff] }
 0x1f8   : > { %v2286_v52 = vsel %vm2017_vm5, %v2285_v13, %v2284_v15  ;;  %1252 = vadd.xlane.f32.xlu2 %v1251_v38  ;;  %v383_v13 = vld [vmem:[%s2853_s4 + $0x5d0] sm:$0xff]  ;;  %v385_v38 = vld [vmem:[%s2853_s4 + $0x5e0] sm:$0xff] }
 0x1f9   : > { %v2288_v2 = vsel %vm2021_vm6, %v2287_v1, %v2286_v52  ;;  %v644_v1 = vmul.f32 %v3997_v39, %v384_v18  ;;  %v643_v49 = vmul.f32 %v3997_v39, %v383_v13  ;;  %v645_v52 = vmul.f32 %v3997_v39, %v385_v38 }
 0x1fa   : > { %v1124_v37 = vpop.xlane.xlu1 %1123  ;;  %v1121_v61 = vpop.xlane.xlu0 %1120 }
 0x1fb   : > { %v1620_v17 = vadd.f32 %v3386_v43, %v1124_v37  ;;  %v1619_v62 = vadd.f32 %v3386_v43, %v1121_v61  ;;  %v1127_v26 = vpop.xlane.xlu2 %1126 }
 0x1fc   : > { %v1621_v41 = vadd.f32 %v3386_v43, %v1127_v26 }
 0x1fd   : > { %v2291_v32 = vperm.slane %v1620_v17, %v3483_v36  ;;  %v2289_v31 = vperm.slane %v1619_v62, %v3473_v56  ;;  %v1275_v17 = vsel %vm713_vm0, %v644_v1, 0.0  ;;  %v1272_v62 = vsel %vm713_vm0, %v643_v49, 0.0 }
 0x1fe   : > { %v2293_v0 = vperm.slane %v1621_v41, %v3510_v44 }
 0x1ff   : > { %v2290_v48 = vsel %vm2025_vm7, %v2289_v31, %v2288_v2  ;;  %1258 = vadd.xlane.f32.xlu1 %v1257_v42  ;;  %1255 = vadd.xlane.f32.xlu0 %v1254_v33  ;;  %v1278_v42 = vsel %vm713_vm0, %v645_v52, 0.0  ;;  %v387_v33 = vld [vmem:[%s2853_s4 + $0x5f0] sm:$0xff] }
 0x200   : > { %v2292_v3 = vsel %vm2029_vm8, %v2291_v32, %v2290_v48  ;;  %1261 = vadd.xlane.f32.xlu2 %v1260_v60  ;;  %v386_v32 = vld [vmem:[%s2853_s4 + $0x5e8] sm:$0xff]  ;;  %v388_v60 = vld [vmem:[%s2853_s4 + $0x5f8] sm:$0xff] }
 0x201   : > { %v2294_v23 = vsel %vm2033_vm9, %v2293_v0, %v2292_v3  ;;  %v647_v0 = vmul.f32 %v3997_v39, %v387_v33  ;;  %v646_v11 = vmul.f32 %v3997_v39, %v386_v32  ;;  %v648_v3 = vmul.f32 %v3997_v39, %v388_v60 }
 0x202   : > { %v1133_v63 = vpop.xlane.xlu1 %1132  ;;  %v1130_v24 = vpop.xlane.xlu0 %1129 }
 0x203   : > { %v1623_v53 = vadd.f32 %v3386_v43, %v1133_v63  ;;  %v1622_v59 = vadd.f32 %v3386_v43, %v1130_v24  ;;  %v1136_v28 = vpop.xlane.xlu2 %1135 }
 0x204   : > { %v1624_v20 = vadd.f32 %v3386_v43, %v1136_v28 }
 0x205   : > { %v2297_v40 = vperm.slane %v1623_v53, %v3520_v7  ;;  %v2295_v6 = vperm.slane %v1622_v59, %v3507_v9  ;;  %v1284_v53 = vsel %vm713_vm0, %v647_v0, 0.0  ;;  %v1281_v59 = vsel %vm713_vm0, %v646_v11, 0.0 }
 0x206   : > { %v2299_v14 = vperm.slane %v1624_v20, %v3543_v55 }
 0x207   : > { %v2296_v46 = vsel %vm5031_vm12, %v2295_v6, %v2294_v23  ;;  %1267 = vadd.xlane.f32.xlu1 %v1266_v51  ;;  %1264 = vadd.xlane.f32.xlu0 %v1263_v29  ;;  %v1287_v51 = vsel %vm713_vm0, %v648_v3, 0.0  ;;  %v390_v29 = vld [vmem:[%s2853_s4 + $0x608] sm:$0xff] }
 0x208   : > { %v2298_v45 = vsel %vm5032_vm3, %v2297_v40, %v2296_v46  ;;  %1270 = vadd.xlane.f32.xlu2 %v1269_v35  ;;  %v389_v40 = vld [vmem:[%s2853_s4 + $0x600] sm:$0xff]  ;;  %v391_v35 = vld [vmem:[%s2853_s4 + $0x610] sm:$0xff]  ;;  %vm5035_vm3 = vmmov %vm5031_vm12  ;;  %vm5036_vm12 = vcmask 786112  }
 0x209   : > { %v2300_v15 = vsel %vm5033_vm10, %v2299_v14, %v2298_v45  ;;  %v650_v14 = vmul.f32 %v3997_v39, %v390_v29  ;;  %v649_v38 = vmul.f32 %v3997_v39, %v389_v40  ;;  %v651_v46 = vmul.f32 %v3997_v39, %v391_v35 }
 0x20a   : > { %v1142_v19 = vpop.xlane.xlu1 %1141  ;;  %v1139_v47 = vpop.xlane.xlu0 %1138  ;;  %vm5034_vm10 = vcmask 261312  }
 0x20b   : > { %v1626_v2 = vadd.f32 %v3386_v43, %v1142_v19  ;;  %v1625_v50 = vadd.f32 %v3386_v43, %v1139_v47  ;;  %v1145_v37 = vpop.xlane.xlu2 %1144  ;;  %v1293_v47 = vsel %vm713_vm0, %v650_v14, 0.0 }
 0x20c   : > { %v1627_v61 = vadd.f32 %v3386_v43, %v1145_v37 }
 0x20d   : > { %v2303_v26 = vperm.slane %v1626_v2, %v3577_v54  ;;  %v2301_v41 = vperm.slane %v1625_v50, %v3532_v25  ;;  %v1290_v2 = vsel %vm713_vm0, %v649_v38, 0.0 }
 0x20e   : > { %v2305_v31 = vperm.slane %v1627_v61, %v3657_v21  ;;  %v1296_v61 = vsel %vm713_vm0, %v651_v46, 0.0 }
 0x20f   : > { %v2302_v22 = vsel %vm2049_vm13, %v2301_v41, %v2300_v15  ;;  %1276 = vadd.xlane.f32.xlu1 %v1275_v17  ;;  %1273 = vadd.xlane.f32.xlu0 %v1272_v62  ;;  %v393_v17 = vld [vmem:[%s2853_s4 + $0x620] sm:$0xff]  ;;  %v392_v62 = vld [vmem:[%s2853_s4 + $0x618] sm:$0xff]  ;;  %v394_v41 = vld [vmem:[%s2853_s4 + $0x628] sm:$0xff] }
 0x210   : > { %v2304_v34 = vsel %vm2053_vm14, %v2303_v26, %v2302_v22  ;;  %1279 = vadd.xlane.f32.xlu2 %v1278_v42  ;;  %v653_v32 = vmul.f32 %v3997_v39, %v393_v17  ;;  %v654_v22 = vmul.f32 %v3997_v39, %v394_v41  ;;  %v400_v17 = vld [vmem:[%s2853_s4 + $0x658] sm:$0xff] }
 0x211   : > { %v4294_v48 = vsel %vm2057_vm15, %v2305_v31, %v2304_v34  ;;  %v652_v31 = vmul.f32 %v3997_v39, %v392_v62 }
 0x212   : > { %v1151_v16 = vpop.xlane.xlu1 %1150  ;;  %v1148_v58 = vpop.xlane.xlu0 %1147 }
 0x213   : > { %v1629_v23 = vadd.f32 %v3386_v43, %v1151_v16  ;;  %v1628_v30 = vadd.f32 %v3386_v43, %v1148_v58  ;;  %v1154_v63 = vpop.xlane.xlu2 %1153 }
 0x214   : > { %v1630_v24 = vadd.f32 %v3386_v43, %v1154_v63 }
 0x215   : > { %v2308_v28 = vperm.slane %v1629_v23, %v3392_v4  ;;  %v2307_v20 = vperm.slane %v1628_v30, %v3382_v57  ;;  %v1302_v23 = vsel %vm713_vm0, %v653_v32, 0.0  ;;  %v1299_v30 = vsel %vm713_vm0, %v652_v31, 0.0 }
 0x216   : > { %v2310_v6 = vperm.slane %v1630_v24, %v3408_v27  ;;  %v660_v32 = vmul.f32 %v3997_v39, %v400_v17 }
 0x217   : > { %v2309_v18 = vsel %vm2001_vm1, %v2308_v28, %v2307_v20  ;;  %1285 = vadd.xlane.f32.xlu1 %v1284_v53  ;;  %1282 = vadd.xlane.f32.xlu0 %v1281_v59  ;;  %v1305_v53 = vsel %vm713_vm0, %v654_v22, 0.0  ;;  %v396_v59 = vld [vmem:[%s2853_s4 + $0x638] sm:$0xff]  ;;  %v395_v28 = vld [vmem:[%s2853_s4 + $0x630] sm:$0xff] }
 0x218   : > { %v2311_v13 = vsel %vm2005_vm2, %v2310_v6, %v2309_v18  ;;  %1288 = vadd.xlane.f32.xlu2 %v1287_v51  ;;  %v397_v51 = vld [vmem:[%s2853_s4 + $0x640] sm:$0xff]  ;;  %v656_v6 = vmul.f32 %v3997_v39, %v396_v59  ;;  %v655_v35 = vmul.f32 %v3997_v39, %v395_v28  ;;  %v403_v59 = vld [vmem:[%s2853_s4 + $0x670] sm:$0xff] }
 0x21a   : > { %v1160_v45 = vpop.xlane.xlu1 %1159  ;;  %v1157_v1 = vpop.xlane.xlu0 %1156 }
 0x21b   : > { %v1632_v49 = vadd.f32 %v3386_v43, %v1160_v45  ;;  %v1631_v15 = vadd.f32 %v3386_v43, %v1157_v1  ;;  %v1163_v52 = vpop.xlane.xlu2 %1162 }
 0x21c   : > { %v1633_v19 = vadd.f32 %v3386_v43, %v1163_v52  ;;  %v1308_v52 = vsel %vm713_vm0, %v655_v35, 0.0 }
 0x21d   : > { %v2314_v50 = vperm.slane %v1632_v49, %v3429_v5  ;;  %v2312_v37 = vperm.slane %v1631_v15, %v3413_v12  ;;  %v1311_v15 = vsel %vm713_vm0, %v656_v6, 0.0  ;;  %v663_v6 = vmul.f32 %v3997_v39, %v403_v59 }
 0x21e   : > { %v2316_v26 = vperm.slane %v1633_v19, %v3439_v8 }
 0x21f   : > { %v2313_v42 = vsel %vm5034_vm10, %v2312_v37, %v2311_v13  ;;  %1294 = vadd.xlane.f32.xlu1 %v1293_v47  ;;  %1291 = vadd.xlane.f32.xlu0 %v1290_v2  ;;  %v657_v13 = vmul.f32 %v3997_v39, %v397_v51  ;;  %v398_v37 = vld [vmem:[%s2853_s4 + $0x648] sm:$0xff]  ;;  %vm5037_vm10 = vcmask 851712  }
 0x220   : > { %v2315_v33 = vsel %vm2013_vm4, %v2314_v50, %v2313_v42  ;;  %1297 = vadd.xlane.f32.xlu2 %v1296_v61  ;;  %v399_v50 = vld [vmem:[%s2853_s4 + $0x650] sm:$0xff]  ;;  %v658_v42 = vmul.f32 %v3997_v39, %v398_v37 }
 0x221   : > { %v2317_v60 = vsel %vm2017_vm5, %v2316_v26, %v2315_v33  ;;  %v1314_v2 = vsel %vm713_vm0, %v657_v13, 0.0  ;;  %v659_v41 = vmul.f32 %v3997_v39, %v399_v50  ;;  %v406_v50 = vld [vmem:[%s2853_s4 + $0x688] sm:$0xff] }
 0x222   : > { %v1169_v34 = vpop.xlane.xlu1 %1168  ;;  %v1166_v0 = vpop.xlane.xlu0 %1165 }
 0x223   : > { %v1635_v11 = vadd.f32 %v3386_v43, %v1169_v34  ;;  %v1634_v3 = vadd.f32 %v3386_v43, %v1166_v0  ;;  %v1172_v16 = vpop.xlane.xlu2 %1171 }
 0x224   : > { %v1636_v58 = vadd.f32 %v3386_v43, %v1172_v16  ;;  %v1317_v16 = vsel %vm713_vm0, %v658_v42, 0.0 }
 0x225   : > { %v2320_v63 = vperm.slane %v1635_v11, %v3473_v56  ;;  %v2318_v24 = vperm.slane %v1634_v3, %v3452_v10  ;;  %v1320_v3 = vsel %vm713_vm0, %v659_v41, 0.0  ;;  %v666_v41 = vmul.f32 %v3997_v39, %v406_v50 }
 0x226   : > { %v2322_v20 = vperm.slane %v1636_v58, %v3483_v36 }
 0x227   : > { %v2319_v29 = vsel %vm2021_vm6, %v2318_v24, %v2317_v60  ;;  %1303 = vadd.xlane.f32.xlu1 %v1302_v23  ;;  %1300 = vadd.xlane.f32.xlu0 %v1299_v30  ;;  %v1323_v30 = vsel %vm713_vm0, %v660_v32, 0.0  ;;  %v401_v24 = vld [vmem:[%s2853_s4 + $0x660] sm:$0xff] }
 0x228   : > { %v2321_v40 = vsel %vm2025_vm7, %v2320_v63, %v2319_v29  ;;  %1306 = vadd.xlane.f32.xlu2 %v1305_v53  ;;  %v402_v63 = vld [vmem:[%s2853_s4 + $0x668] sm:$0xff]  ;;  %v661_v29 = vmul.f32 %v3997_v39, %v401_v24 }
 0x229   : > { %v2323_v18 = vsel %vm2029_vm8, %v2322_v20, %v2321_v40  ;;  %v662_v51 = vmul.f32 %v3997_v39, %v402_v63 }
 0x22a   : > { %v1178_v14 = vpop.xlane.xlu1 %1177  ;;  %v1175_v38 = vpop.xlane.xlu0 %1174 }
 0x22b   : > { %v1638_v46 = vadd.f32 %v3386_v43, %v1178_v14  ;;  %v1637_v45 = vadd.f32 %v3386_v43, %v1175_v38  ;;  %v1181_v1 = vpop.xlane.xlu2 %1180 }
 0x22c   : > { %v1639_v49 = vadd.f32 %v3386_v43, %v1181_v1  ;;  %v1326_v1 = vsel %vm713_vm0, %v661_v29, 0.0 }
 0x22d   : > { %v2326_v19 = vperm.slane %v1638_v46, %v3507_v9  ;;  %v2324_v47 = vperm.slane %v1637_v45, %v3510_v44  ;;  %v1329_v45 = vsel %vm713_vm0, %v662_v51, 0.0 }
 0x22e   : > { %v2328_v61 = vperm.slane %v1639_v49, %v3520_v7 }
 0x22f   : > { %v2325_v62 = vsel %vm2033_vm9, %v2324_v47, %v2323_v18  ;;  %1312 = vadd.xlane.f32.xlu1 %v1311_v15  ;;  %1309 = vadd.xlane.f32.xlu0 %v1308_v52  ;;  %v1332_v52 = vsel %vm713_vm0, %v663_v6, 0.0  ;;  %v404_v47 = vld [vmem:[%s2853_s4 + $0x678] sm:$0xff] }
 0x230   : > { %v2327_v26 = vsel %vm5035_vm3, %v2326_v19, %v2325_v62  ;;  %1315 = vadd.xlane.f32.xlu2 %v1314_v2  ;;  %v405_v19 = vld [vmem:[%s2853_s4 + $0x680] sm:$0xff]  ;;  %vm5038_vm3 = vcmask 1041409  }
 0x231   : > { %v2329_v33 = vsel %vm5036_vm12, %v2328_v61, %v2327_v26  ;;  %v665_v62 = vmul.f32 %v3997_v39, %v405_v19  ;;  %v664_v26 = vmul.f32 %v3997_v39, %v404_v47  ;;  %vm5039_vm12 = vcmask 261312   ;;  %v4442_v47 = vld [vmem:[%s4914_s1] ss:$0 sm:$0xff] }
 0x232   : > { %v1187_v31 = vpop.xlane.xlu1 %1186  ;;  %v1184_v60 = vpop.xlane.xlu0 %1183 }
 0x233   : > { %v1641_v22 = vadd.f32 %v3386_v43, %v1187_v31  ;;  %v1640_v34 = vadd.f32 %v3386_v43, %v1184_v60  ;;  %v1190_v0 = vpop.xlane.xlu2 %1189 }
 0x234   : > { %v1642_v11 = vadd.f32 %v3386_v43, %v1190_v0 }
 0x235   : > { %v2332_v58 = vperm.slane %v1641_v22, %v3532_v25  ;;  %v2330_v23 = vperm.slane %v1640_v34, %v3543_v55  ;;  %v1338_v22 = vsel %vm713_vm0, %v665_v62, 0.0  ;;  %v1335_v34 = vsel %vm713_vm0, %v664_v26, 0.0 }
 0x236   : > { %v2334_v53 = vperm.slane %v1642_v11, %v3577_v54 }
 0x237   : > { %v2331_v28 = vsel %vm5037_vm10, %v2330_v23, %v2329_v33  ;;  %1321 = vadd.xlane.f32.xlu1 %v1320_v3  ;;  %1318 = vadd.xlane.f32.xlu0 %v1317_v16  ;;  %v1341_v3 = vsel %vm713_vm0, %v666_v41, 0.0  ;;  %v408_v16 = vld [vmem:[%s2853_s4 + $0x698] sm:$0xff]  ;;  %vm5040_vm10 = vcmask 720512  }
 0x238   : > { %v2333_v20 = vsel %vm2049_vm13, %v2332_v58, %v2331_v28  ;;  %1324 = vadd.xlane.f32.xlu2 %v1323_v30  ;;  %v407_v58 = vld [vmem:[%s2853_s4 + $0x690] sm:$0xff]  ;;  %v409_v30 = vld [vmem:[%s2853_s4 + $0x6a0] sm:$0xff] }
 0x239   : > { %v2335_v40 = vsel %vm2053_vm14, %v2334_v53, %v2333_v20  ;;  %v668_v53 = vmul.f32 %v3997_v39, %v408_v16  ;;  %v667_v59 = vmul.f32 %v3997_v39, %v407_v58  ;;  %v669_v20 = vmul.f32 %v3997_v39, %v409_v30  ;;  %v411_v39 = vld [vmem:[%s2853_s4 + $0x6b0] sm:$0xff] }
 0x23a   : > { %v1196_v35 = vpop.xlane.xlu1 %1195  ;;  %v1193_v18 = vpop.xlane.xlu0 %1192  ;;  %v415_v16 = vld [vmem:[%s2853_s4 + $0x6d0] sm:$0xff] }
 0x23b   : > { %v1644_v13 = vadd.f32 %v3386_v43, %v1196_v35  ;;  %v1643_v14 = vadd.f32 %v3386_v43, %v1193_v18  ;;  %v1199_v38 = vpop.xlane.xlu2 %1198 }
 0x23c   : > { %v1645_v46 = vadd.f32 %v3386_v43, %v1199_v38 }
 0x23d   : > { %v2338_v49 = vperm.slane %v1644_v13, %v3382_v57  ;;  %v2336_v15 = vperm.slane %v1643_v14, %v3657_v21  ;;  %v1347_v13 = vsel %vm713_vm0, %v668_v53, 0.0  ;;  %v1344_v14 = vsel %vm713_vm0, %v667_v59, 0.0 }
 0x23e   : > { %v2339_v2 = vperm.slane %v1645_v46, %v3392_v4  ;;  %v675_v53 = vmul.f32 %v4442_v47, %v415_v16 }
 0x23f   : > { %v2337_v37 = vsel %vm2057_vm15, %v2336_v15, %v2335_v40  ;;  %1330 = vadd.xlane.f32.xlu1 %v1329_v45  ;;  %1327 = vadd.xlane.f32.xlu0 %v1326_v1  ;;  %v1350_v45 = vsel %vm713_vm0, %v669_v20, 0.0  ;;  %v410_v1 = vld [vmem:[%s2853_s4 + $0x6a8] sm:$0xff]  ;;  %v412_v15 = vld [vmem:[%s2853_s4 + $0x6b8] sm:$0xff] }
 0x240   : > { %v4401_v61 = vsel %vm5038_vm3, %v2337_v37, %v4294_v48  ;;  %v2340_v17 = vsel %vm2001_vm1, %v2339_v2, %v2338_v49  ;;  %1333 = vadd.xlane.f32.xlu2 %v1332_v52  ;;  %v671_v2 = vmul.f32 %v4442_v47, %v411_v39  ;;  %v670_v50 = vmul.f32 %v4442_v47, %v410_v1  ;;  %v418_v39 = vld [vmem:[%s2853_s4 + $0x6e8] sm:$0xff] }
 0x241   : > { %vm5041_vm3 = vcmask 786112  }
 0x242   : > { %v1205_v42 = vpop.xlane.xlu1 %1204  ;;  %v1202_v33 = vpop.xlane.xlu0 %1201 }
 0x243   : > { %v1647_v32 = vadd.f32 %v3386_v43, %v1205_v42  ;;  %v1646_v31 = vadd.f32 %v3386_v43, %v1202_v33  ;;  %v1208_v48 = vpop.xlane.xlu2 %1207 }
 0x244   : > { %v1648_v60 = vadd.f32 %v3386_v43, %v1208_v48  ;;  %v1353_v48 = vsel %vm713_vm0, %v670_v50, 0.0 }
 0x245   : > { %v2343_v0 = vperm.slane %v1647_v32, %v3413_v12  ;;  %v2341_v11 = vperm.slane %v1646_v31, %v3408_v27  ;;  %v1356_v31 = vsel %vm713_vm0, %v671_v2, 0.0  ;;  %v678_v2 = vmul.f32 %v4442_v47, %v418_v39 }
 0x246   : > { %v2345_v23 = vperm.slane %v1648_v60, %v3429_v5 }
 0x247   : > { %v2342_v63 = vsel %vm2005_vm2, %v2341_v11, %v2340_v17  ;;  %1339 = vadd.xlane.f32.xlu1 %v1338_v22  ;;  %1336 = vadd.xlane.f32.xlu0 %v1335_v34  ;;  %v672_v17 = vmul.f32 %v4442_v47, %v412_v15  ;;  %v413_v11 = vld [vmem:[%s2853_s4 + $0x6c0] sm:$0xff] }
 0x248   : > { %v2344_v24 = vsel %vm5039_vm12, %v2343_v0, %v2342_v63  ;;  %1342 = vadd.xlane.f32.xlu2 %v1341_v3  ;;  %v414_v0 = vld [vmem:[%s2853_s4 + $0x6c8] sm:$0xff]  ;;  %v673_v63 = vmul.f32 %v4442_v47, %v413_v11  ;;  %vm5042_vm12 = vcmask 851712  }
 0x249   : > { %v2346_v28 = vsel %vm2013_vm4, %v2345_v23, %v2344_v24  ;;  %v1359_v34 = vsel %vm713_vm0, %v672_v17, 0.0  ;;  %v674_v30 = vmul.f32 %v4442_v47, %v414_v0 }
 0x24a   : > { %v1214_v51 = vpop.xlane.xlu1 %1213  ;;  %v1211_v29 = vpop.xlane.xlu0 %1210 }
 0x24b   : > { %v1650_v40 = vadd.f32 %v3386_v43, %v1214_v51  ;;  %v1649_v6 = vadd.f32 %v3386_v43, %v1211_v29  ;;  %v1217_v35 = vpop.xlane.xlu2 %1216 }
 0x24c   : > { %v1651_v18 = vadd.f32 %v3386_v43, %v1217_v35  ;;  %v1362_v35 = vsel %vm713_vm0, %v673_v63, 0.0 }
 0x24d   : > { %v2349_v38 = vperm.slane %v1650_v40, %v3452_v10  ;;  %v2347_v46 = vperm.slane %v1649_v6, %v3439_v8  ;;  %v1365_v6 = vsel %vm713_vm0, %v674_v30, 0.0 }
 0x24e   : > { %v2351_v49 = vperm.slane %v1651_v18, %v3473_v56 }
 0x24f   : > { %v2348_v52 = vsel %vm2017_vm5, %v2347_v46, %v2346_v28  ;;  %1348 = vadd.xlane.f32.xlu1 %v1347_v13  ;;  %1345 = vadd.xlane.f32.xlu0 %v1344_v14  ;;  %v1368_v14 = vsel %vm713_vm0, %v675_v53, 0.0  ;;  %v416_v46 = vld [vmem:[%s2853_s4 + $0x6d8] sm:$0xff] }
 0x250   : > { %v2350_v19 = vsel %vm2021_vm6, %v2349_v38, %v2348_v52  ;;  %1351 = vadd.xlane.f32.xlu2 %v1350_v45  ;;  %v417_v38 = vld [vmem:[%s2853_s4 + $0x6e0] sm:$0xff]  ;;  %v676_v52 = vmul.f32 %v4442_v47, %v416_v46 }
 0x251   : > { %v2352_v37 = vsel %vm2025_vm7, %v2351_v49, %v2350_v19  ;;  %v677_v15 = vmul.f32 %v4442_v47, %v417_v38 }
 0x252   : > { %v1223_v62 = vpop.xlane.xlu1 %1222  ;;  %v1220_v26 = vpop.xlane.xlu0 %1219 }
 0x253   : > { %v1653_v41 = vadd.f32 %v3386_v43, %v1223_v62  ;;  %v1652_v42 = vadd.f32 %v3386_v43, %v1220_v26  ;;  %v1226_v33 = vpop.xlane.xlu2 %1225 }
 0x254   : > { %v1654_v32 = vadd.f32 %v3386_v43, %v1226_v33 }
 0x255   : > { %v2355_v60 = vperm.slane %v1653_v41, %v3510_v44  ;;  %v2353_v22 = vperm.slane %v1652_v42, %v3483_v36  ;;  %v1374_v41 = vsel %vm713_vm0, %v677_v15, 0.0  ;;  %v1371_v42 = vsel %vm713_vm0, %v676_v52, 0.0 }
 0x256   : > { %v2357_v3 = vperm.slane %v1654_v32, %v3507_v9 }
 0x257   : > { %v2354_v58 = vsel %vm2029_vm8, %v2353_v22, %v2352_v37  ;;  %1357 = vadd.xlane.f32.xlu1 %v1356_v31  ;;  %1354 = vadd.xlane.f32.xlu0 %v1353_v48  ;;  %v1377_v31 = vsel %vm713_vm0, %v678_v2, 0.0  ;;  %v420_v48 = vld [vmem:[%s2853_s4 + $0x6f8] sm:$0xff]  ;;  %v421_v22 = vld [vmem:[%s2853_s4 + $0x700] sm:$0xff] }
 0x258   : > { %v2356_v23 = vsel %vm2033_vm9, %v2355_v60, %v2354_v58  ;;  %1360 = vadd.xlane.f32.xlu2 %v1359_v34  ;;  %v419_v60 = vld [vmem:[%s2853_s4 + $0x6f0] sm:$0xff]  ;;  %v681_v58 = vmul.f32 %v4442_v47, %v421_v22 }
 0x259   : > { %v2358_v24 = vsel %vm5040_vm10, %v2357_v3, %v2356_v23  ;;  %v680_v3 = vmul.f32 %v4442_v47, %v420_v48  ;;  %v679_v16 = vmul.f32 %v4442_v47, %v419_v60  ;;  %vm5043_vm10 = vcmask 1042434   ;;  %v427_v48 = vld [vmem:[%s2853_s4 + $0x730] sm:$0xff] }
 0x25a   : > { %v1232_v59 = vpop.xlane.xlu1 %1231  ;;  %v1229_v28 = vpop.xlane.xlu0 %1228 }
 0x25b   : > { %v1656_v20 = vadd.f32 %v3386_v43, %v1232_v59  ;;  %v1655_v51 = vadd.f32 %v3386_v43, %v1229_v28  ;;  %v1235_v29 = vpop.xlane.xlu2 %1234 }
 0x25c   : > { %v1657_v40 = vadd.f32 %v3386_v43, %v1235_v29  ;;  %v1380_v29 = vsel %vm713_vm0, %v679_v16, 0.0 }
 0x25d   : > { %v2361_v18 = vperm.slane %v1656_v20, %v3543_v55  ;;  %v2359_v13 = vperm.slane %v1655_v51, %v3520_v7  ;;  %v1383_v51 = vsel %vm713_vm0, %v680_v3, 0.0  ;;  %v687_v3 = vmul.f32 %v4442_v47, %v427_v48 }
 0x25e   : > { %v2363_v45 = vperm.slane %v1657_v40, %v3532_v25 }
 0x25f   : > { %v2360_v1 = vsel %vm5041_vm3, %v2359_v13, %v2358_v24  ;;  %1366 = vadd.xlane.f32.xlu1 %v1365_v6  ;;  %1363 = vadd.xlane.f32.xlu0 %v1362_v35  ;;  %v1386_v6 = vsel %vm713_vm0, %v681_v58, 0.0  ;;  %v423_v35 = vld [vmem:[%s2853_s4 + $0x710] sm:$0xff]  ;;  %vm5044_vm3 = vcmask 261312  }
 0x260   : > { %v2362_v49 = vsel %vm5042_vm12, %v2361_v18, %v2360_v1  ;;  %1369 = vadd.xlane.f32.xlu2 %v1368_v14  ;;  %v422_v18 = vld [vmem:[%s2853_s4 + $0x708] sm:$0xff]  ;;  %v424_v14 = vld [vmem:[%s2853_s4 + $0x718] sm:$0xff]  ;;  %vm5045_vm12 = vcmask 720512  }
 0x261   : > { %v2364_v19 = vsel %vm2049_vm13, %v2363_v45, %v2362_v49  ;;  %v683_v45 = vmul.f32 %v4442_v47, %v423_v35  ;;  %v682_v39 = vmul.f32 %v4442_v47, %v422_v18  ;;  %v684_v49 = vmul.f32 %v4442_v47, %v424_v14  ;;  %v430_v35 = vld [vmem:[%s2853_s4 + $0x748] sm:$0xff] }
 0x262   : > { %v1241_v50 = vpop.xlane.xlu1 %1240  ;;  %v1238_v37 = vpop.xlane.xlu0 %1237 }
 0x263   : > { %v1659_v17 = vadd.f32 %v3386_v43, %v1241_v50  ;;  %v1658_v62 = vadd.f32 %v3386_v43, %v1238_v37  ;;  %v1244_v26 = vpop.xlane.xlu2 %1243 }
 0x264   : > { %v1660_v0 = vadd.f32 %v3386_v43, %v1244_v26 }
 0x265   : > { %v2367_v33 = vperm.slane %v1659_v17, %v3657_v21  ;;  %v2365_v32 = vperm.slane %v1658_v62, %v3577_v54  ;;  %v1392_v17 = vsel %vm713_vm0, %v683_v45, 0.0  ;;  %v1389_v62 = vsel %vm713_vm0, %v682_v39, 0.0 }
 0x266   : > { %v2369_v24 = vperm.slane %v1660_v0, %v3382_v57  ;;  %v690_v45 = vmul.f32 %v4442_v47, %v430_v35 }
 0x267   : > { %v2366_v34 = vsel %vm2053_vm14, %v2365_v32, %v2364_v19  ;;  %1375 = vadd.xlane.f32.xlu1 %v1374_v41  ;;  %1372 = vadd.xlane.f32.xlu0 %v1371_v42  ;;  %v1395_v42 = vsel %vm713_vm0, %v684_v49, 0.0  ;;  %v425_v32 = vld [vmem:[%s2853_s4 + $0x720] sm:$0xff] }
 0x268   : > { %v2368_v11 = vsel %vm2057_vm15, %v2367_v33, %v2366_v34  ;;  %1378 = vadd.xlane.f32.xlu2 %v1377_v31  ;;  %v426_v33 = vld [vmem:[%s2853_s4 + $0x728] sm:$0xff]  ;;  %v685_v0 = vmul.f32 %v4442_v47, %v425_v32 }
 0x269   : > { %v4502_v23 = vsel %vm5043_vm10, %v2368_v11, %v4401_v61  ;;  %v686_v34 = vmul.f32 %v4442_v47, %v426_v33  ;;  %v437_v33 = vld [vmem:[%s2853_s4 + $0x780] sm:$0xff]  ;;  %vm5046_vm10 = vcmask 786112  }
 0x26a   : > { %v1250_v30 = vpop.xlane.xlu1 %1249  ;;  %v1247_v63 = vpop.xlane.xlu0 %1246 }
 0x26b   : > { %v1662_v53 = vadd.f32 %v3386_v43, %v1250_v30  ;;  %v1661_v59 = vadd.f32 %v3386_v43, %v1247_v63  ;;  %v1253_v28 = vpop.xlane.xlu2 %1252 }
 0x26c   : > { %v1663_v20 = vadd.f32 %v3386_v43, %v1253_v28  ;;  %v1398_v28 = vsel %vm713_vm0, %v685_v0, 0.0 }
 0x26d   : > { %v2372_v40 = vperm.slane %v1662_v53, %v3408_v27  ;;  %v2370_v61 = vperm.slane %v1661_v59, %v3392_v4  ;;  %v1401_v59 = vsel %vm713_vm0, %v686_v34, 0.0  ;;  %v697_v34 = vmul.f32 %v4442_v47, %v437_v33 }
 0x26e   : > { %v2374_v13 = vperm.slane %v1663_v20, %v3413_v12 }
 0x26f   : > { %v2371_v38 = vsel %vm2001_vm1, %v2370_v61, %v2369_v24  ;;  %1384 = vadd.xlane.f32.xlu1 %v1383_v51  ;;  %1381 = vadd.xlane.f32.xlu0 %v1380_v29  ;;  %v1404_v29 = vsel %vm713_vm0, %v687_v3, 0.0  ;;  %v428_v61 = vld [vmem:[%s2853_s4 + $0x738] sm:$0xff] }
 0x270   : > { %v2373_v46 = vsel %vm2005_vm2, %v2372_v40, %v2371_v38  ;;  %1387 = vadd.xlane.f32.xlu2 %v1386_v6  ;;  %v429_v40 = vld [vmem:[%s2853_s4 + $0x740] sm:$0xff]  ;;  %v688_v38 = vmul.f32 %v4442_v47, %v428_v61 }
 0x271   : > { %v2375_v1 = vsel %vm5044_vm3, %v2374_v13, %v2373_v46  ;;  %v689_v14 = vmul.f32 %v4442_v47, %v429_v40  ;;  %vm5047_vm3 = vcmask 851712   ;;  %v440_v40 = vld [vmem:[%s2853_s4 + $0x798] sm:$0xff] }
 0x272   : > { %v1259_v15 = vpop.xlane.xlu1 %1258  ;;  %v1256_v52 = vpop.xlane.xlu0 %1255 }
 0x273   : > { %v1665_v19 = vadd.f32 %v3386_v43, %v1259_v15  ;;  %v1664_v2 = vadd.f32 %v3386_v43, %v1256_v52  ;;  %v1262_v50 = vpop.xlane.xlu2 %1261 }
 0x274   : > { %v1666_v37 = vadd.f32 %v3386_v43, %v1262_v50  ;;  %v1407_v50 = vsel %vm713_vm0, %v688_v38, 0.0 }
 0x275   : > { %v2378_v26 = vperm.slane %v1665_v19, %v3439_v8  ;;  %v2376_v41 = vperm.slane %v1664_v2, %v3429_v5  ;;  %v1410_v2 = vsel %vm713_vm0, %v689_v14, 0.0  ;;  %v700_v14 = vmul.f32 %v4442_v47, %v440_v40 }
 0x276   : > { %v2380_v31 = vperm.slane %v1666_v37, %v3452_v10 }
 0x277   : > { %v2377_v60 = vsel %vm2013_vm4, %v2376_v41, %v2375_v1  ;;  %1393 = vadd.xlane.f32.xlu1 %v1392_v17  ;;  %1390 = vadd.xlane.f32.xlu0 %v1389_v62  ;;  %v1413_v62 = vsel %vm713_vm0, %v690_v45, 0.0  ;;  %v431_v41 = vld [vmem:[%s2853_s4 + $0x750] sm:$0xff] }
 0x278   : > { %v2379_v22 = vsel %vm2017_vm5, %v2378_v26, %v2377_v60  ;;  %1396 = vadd.xlane.f32.xlu2 %v1395_v42  ;;  %v432_v26 = vld [vmem:[%s2853_s4 + $0x758] sm:$0xff]  ;;  %v691_v60 = vmul.f32 %v4442_v47, %v431_v41 }
 0x279   : > { %v2381_v11 = vsel %vm2021_vm6, %v2380_v31, %v2379_v22  ;;  %v692_v48 = vmul.f32 %v4442_v47, %v432_v26  ;;  %v443_v26 = vld [vmem:[%s2853_s4 + $0x7b0] sm:$0xff] }
 0x27a   : > { %v1268_v16 = vpop.xlane.xlu1 %1267  ;;  %v1265_v58 = vpop.xlane.xlu0 %1264 }
 0x27b   : > { %v1668_v30 = vadd.f32 %v3386_v43, %v1268_v16  ;;  %v1667_v63 = vadd.f32 %v3386_v43, %v1265_v58  ;;  %v1271_v24 = vpop.xlane.xlu2 %1270 }
 0x27c   : > { %v1669_v53 = vadd.f32 %v3386_v43, %v1271_v24  ;;  %v1416_v24 = vsel %vm713_vm0, %v691_v60, 0.0 }
 0x27d   : > { %v2384_v20 = vperm.slane %v1668_v30, %v3483_v36  ;;  %v2382_v51 = vperm.slane %v1667_v63, %v3473_v56  ;;  %v1419_v63 = vsel %vm713_vm0, %v692_v48, 0.0 }
 0x27e   : > { %v2386_v6 = vperm.slane %v1669_v53, %v3510_v44 }
 0x27f   : > { %v2383_v18 = vsel %vm2025_vm7, %v2382_v51, %v2381_v11  ;;  %1402 = vadd.xlane.f32.xlu1 %v1401_v59  ;;  %1399 = vadd.xlane.f32.xlu0 %v1398_v28  ;;  %v1434_v28 = vsel %vm713_vm0, %v697_v34, 0.0  ;;  %v438_v51 = vld [vmem:[%s2853_s4 + $0x788] sm:$0xff] }
 0x280   : > { %v2385_v13 = vsel %vm2029_vm8, %v2384_v20, %v2383_v18  ;;  %1405 = vadd.xlane.f32.xlu2 %v1404_v29  ;;  %v439_v20 = vld [vmem:[%s2853_s4 + $0x790] sm:$0xff]  ;;  %v698_v18 = vmul.f32 %v4442_v47, %v438_v51 }
 0x281   : > { %v2387_v46 = vsel %vm2033_vm9, %v2386_v6, %v2385_v13  ;;  %v699_v35 = vmul.f32 %v4442_v47, %v439_v20 }
 0x282   : > { %v1277_v39 = vpop.xlane.xlu1 %1276  ;;  %v1274_v1 = vpop.xlane.xlu0 %1273 }
 0x283   : > { %v1671_v49 = vadd.f32 %v3386_v43, %v1277_v39  ;;  %v1670_v15 = vadd.f32 %v3386_v43, %v1274_v1  ;;  %v1280_v52 = vpop.xlane.xlu2 %1279 }
 0x284   : > { %v1672_v19 = vadd.f32 %v3386_v43, %v1280_v52  ;;  %v1440_v52 = vsel %vm713_vm0, %v699_v35, 0.0 }
 0x285   : > { %v2390_v37 = vperm.slane %v1671_v49, %v3520_v7  ;;  %v2388_v17 = vperm.slane %v1670_v15, %v3507_v9 }
 0x286   : > { %v2392_v42 = vperm.slane %v1672_v19, %v3543_v55  ;;  %v1437_v19 = vsel %vm713_vm0, %v698_v18, 0.0 }
 0x287   : > { %v2389_v32 = vsel %vm5045_vm12, %v2388_v17, %v2387_v46  ;;  %1411 = vadd.xlane.f32.xlu1 %v1410_v2  ;;  %1408 = vadd.xlane.f32.xlu0 %v1407_v50  ;;  %vm5048_vm12 = vcmask 1043459   ;;  %v441_v17 = vld [vmem:[%s2853_s4 + $0x7a0] sm:$0xff] }
 0x288   : > { %v2391_v31 = vsel %vm5046_vm10, %v2390_v37, %v2389_v32  ;;  %1414 = vadd.xlane.f32.xlu2 %v1413_v62  ;;  %v442_v37 = vld [vmem:[%s2853_s4 + $0x7a8] sm:$0xff]  ;;  %v701_v32 = vmul.f32 %v4442_v47, %v441_v17  ;;  %vm5049_vm10 = vcmask 261312  }
 0x289   : > { %v2393_v22 = vsel %vm5047_vm3, %v2392_v42, %v2391_v31  ;;  %v702_v33 = vmul.f32 %v4442_v47, %v442_v37  ;;  %v703_v31 = vmul.f32 %v4442_v47, %v443_v26  ;;  %vm5050_vm3 = vcmask 720512  }
 0x28a   : > { %v1286_v0 = vpop.xlane.xlu1 %1285  ;;  %v1283_v11 = vpop.xlane.xlu0 %1282 }
 0x28b   : > { %v1674_v3 = vadd.f32 %v3386_v43, %v1286_v0  ;;  %v1673_v16 = vadd.f32 %v3386_v43, %v1283_v11  ;;  %v1289_v58 = vpop.xlane.xlu2 %1288 }
 0x28c   : > { %v1675_v30 = vadd.f32 %v3386_v43, %v1289_v58 }
 0x28d   : > { %v2396_v53 = vperm.slane %v1674_v3, %v3577_v54  ;;  %v2394_v59 = vperm.slane %v1673_v16, %v3532_v25  ;;  %v1449_v3 = vsel %vm713_vm0, %v702_v33, 0.0  ;;  %v1446_v16 = vsel %vm713_vm0, %v701_v32, 0.0 }
 0x28e   : > { %v2398_v29 = vperm.slane %v1675_v30, %v3657_v21 }
 0x28f   : > { %v2395_v61 = vsel %vm2049_vm13, %v2394_v59, %v2393_v22  ;;  %1420 = vadd.xlane.f32.xlu1 %v1419_v63  ;;  %1417 = vadd.xlane.f32.xlu0 %v1416_v24  ;;  %v1452_v63 = vsel %vm713_vm0, %v703_v31, 0.0  ;;  %v445_v24 = vld [vmem:[%s2853_s4 + $0x7c0] sm:$0xff] }
 0x290   : > { %v2397_v6 = vsel %vm2053_vm14, %v2396_v53, %v2395_v61  ;;  %1435 = vadd.xlane.f32.xlu2 %v1434_v28  ;;  %v444_v53 = vld [vmem:[%s2853_s4 + $0x7b8] sm:$0xff]  ;;  %v446_v28 = vld [vmem:[%s2853_s4 + $0x7c8] sm:$0xff] }
 0x291   : > { %v2399_v13 = vsel %vm2057_vm15, %v2398_v29, %v2397_v6  ;;  %v705_v29 = vmul.f32 %v4442_v47, %v445_v24  ;;  %v704_v40 = vmul.f32 %v4442_v47, %v444_v53  ;;  %v706_v6 = vmul.f32 %v4442_v47, %v446_v28  ;;  %v435_v24 = vld [vmem:[%s2853_s4 + $0x770] sm:$0xff] }
 0x292   : > { %v4597_v38 = vsel %vm5048_vm12, %v2399_v13, %v4502_v23  ;;  %v1295_v46 = vpop.xlane.xlu1 %1294  ;;  %v1292_v45 = vpop.xlane.xlu0 %1291  ;;  %v1443_v23 = vsel %vm713_vm0, %v700_v14, 0.0  ;;  %vm5051_vm12 = vcmask 786112  }
 0x293   : > { %v1677_v39 = vadd.f32 %v3386_v43, %v1295_v46  ;;  %v1676_v1 = vadd.f32 %v3386_v43, %v1292_v45  ;;  %v1298_v49 = vpop.xlane.xlu2 %1297 }
 0x294   : > { %v1678_v15 = vadd.f32 %v3386_v43, %v1298_v49 }
 0x295   : > { %v2401_v2 = vperm.slane %v1677_v39, %v3392_v4  ;;  %v2400_v50 = vperm.slane %v1676_v1, %v3382_v57  ;;  %v1458_v39 = vsel %vm713_vm0, %v705_v29, 0.0  ;;  %v1455_v1 = vsel %vm713_vm0, %v704_v40, 0.0 }
 0x296   : > { %v2403_v62 = vperm.slane %v1678_v15, %v3408_v27  ;;  %v695_v29 = vmul.f32 %v4442_v47, %v435_v24 }
 0x297   : > { %v2402_v41 = vsel %vm2001_vm1, %v2401_v2, %v2400_v50  ;;  %1441 = vadd.xlane.f32.xlu1 %v1440_v52  ;;  %1438 = vadd.xlane.f32.xlu0 %v1437_v19  ;;  %v1461_v52 = vsel %vm713_vm0, %v706_v6, 0.0  ;;  %v433_v19 = vld [vmem:[%s2853_s4 + $0x760] sm:$0xff]  ;;  %v447_v2 = vld [vmem:[%s2853_s4 + $0x7d0] sm:$0xff] }
 0x298   : > { %v2404_v42 = vsel %vm2005_vm2, %v2403_v62, %v2402_v41  ;;  %1444 = vadd.xlane.f32.xlu2 %v1443_v23  ;;  %v448_v23 = vld [vmem:[%s2853_s4 + $0x7d8] sm:$0xff]  ;;  %v693_v62 = vmul.f32 %v4442_v47, %v433_v19  ;;  %v707_v26 = vmul.f32 %v4442_v47, %v447_v2  ;;  %v451_v19 = vld [vmem:[%s2853_s4 + $0x7f0] sm:$0xff] }
 0x29a   : > { %v1304_v48 = vpop.xlane.xlu1 %1303  ;;  %v1301_v60 = vpop.xlane.xlu0 %1300 }
 0x29b   : > { %v1680_v22 = vadd.f32 %v3386_v43, %v1304_v48  ;;  %v1679_v34 = vadd.f32 %v3386_v43, %v1301_v60  ;;  %v1307_v0 = vpop.xlane.xlu2 %1306 }
 0x29c   : > { %v1681_v11 = vadd.f32 %v3386_v43, %v1307_v0  ;;  %v1464_v0 = vsel %vm713_vm0, %v707_v26, 0.0 }
 0x29d   : > { %v2407_v58 = vperm.slane %v1680_v22, %v3429_v5  ;;  %v2405_v30 = vperm.slane %v1679_v34, %v3413_v12  ;;  %v1422_v34 = vsel %vm713_vm0, %v693_v62, 0.0  ;;  %v711_v62 = vmul.f32 %v4442_v47, %v451_v19 }
 0x29e   : > { %v2409_v59 = vperm.slane %v1681_v11, %v3439_v8 }
 0x29f   : > { %v2406_v20 = vsel %vm5049_vm10, %v2405_v30, %v2404_v42  ;;  %1450 = vadd.xlane.f32.xlu1 %v1449_v3  ;;  %1447 = vadd.xlane.f32.xlu0 %v1446_v16  ;;  %v708_v42 = vmul.f32 %v4442_v47, %v448_v23  ;;  %v434_v30 = vld [vmem:[%s2853_s4 + $0x768] sm:$0xff]  ;;  %vm5052_vm10 = vcmask 851712  }
 0x2a0   : > { %v2408_v51 = vsel %vm2013_vm4, %v2407_v58, %v2406_v20  ;;  %1453 = vadd.xlane.f32.xlu2 %v1452_v63  ;;  %v449_v58 = vld [vmem:[%s2853_s4 + $0x7e0] sm:$0xff]  ;;  %v694_v20 = vmul.f32 %v4442_v47, %v434_v30 }
 0x2a1   : > { %v2410_v61 = vsel %vm2017_vm5, %v2409_v59, %v2408_v51  ;;  %v1467_v16 = vsel %vm713_vm0, %v708_v42, 0.0  ;;  %v709_v28 = vmul.f32 %v4442_v47, %v449_v58 }
 0x2a2   : > { %v1313_v35 = vpop.xlane.xlu1 %1312  ;;  %v1310_v18 = vpop.xlane.xlu0 %1309 }
 0x2a3   : > { %v1683_v13 = vadd.f32 %v3386_v43, %v1313_v35  ;;  %v1682_v14 = vadd.f32 %v3386_v43, %v1310_v18  ;;  %v1316_v46 = vpop.xlane.xlu2 %1315 }
 0x2a4   : > { %v1684_v45 = vadd.f32 %v3386_v43, %v1316_v46  ;;  %v1425_v46 = vsel %vm713_vm0, %v694_v20, 0.0 }
 0x2a5   : > { %v2413_v49 = vperm.slane %v1683_v13, %v3473_v56  ;;  %v2411_v15 = vperm.slane %v1682_v14, %v3452_v10  ;;  %v1470_v14 = vsel %vm713_vm0, %v709_v28, 0.0 }
 0x2a6   : > { %v2415_v50 = vperm.slane %v1684_v45, %v3483_v36 }
 0x2a7   : > { %v2412_v37 = vsel %vm2021_vm6, %v2411_v15, %v2410_v61  ;;  %1459 = vadd.xlane.f32.xlu1 %v1458_v39  ;;  %1456 = vadd.xlane.f32.xlu0 %v1455_v1  ;;  %v1428_v1 = vsel %vm713_vm0, %v695_v29, 0.0  ;;  %v450_v15 = vld [vmem:[%s2853_s4 + $0x7e8] sm:$0xff] }
 0x2a8   : > { %v2414_v17 = vsel %vm2025_vm7, %v2413_v49, %v2412_v37  ;;  %1462 = vadd.xlane.f32.xlu2 %v1461_v52  ;;  %v436_v49 = vld [vmem:[%s2853_s4 + $0x778] sm:$0xff]  ;;  %v710_v37 = vmul.f32 %v4442_v47, %v450_v15 }
 0x2a9   : > { %v2416_v41 = vsel %vm2029_vm8, %v2415_v50, %v2414_v17  ;;  %v696_v23 = vmul.f32 %v4442_v47, %v436_v49 }
 0x2aa   : > { %v1322_v33 = vpop.xlane.xlu1 %1321  ;;  %v1319_v32 = vpop.xlane.xlu0 %1318 }
 0x2ab   : > { %v1686_v31 = vadd.f32 %v3386_v43, %v1322_v33  ;;  %v1685_v48 = vadd.f32 %v3386_v43, %v1319_v32  ;;  %v1325_v60 = vpop.xlane.xlu2 %1324 }
 0x2ac   : > { %v1687_v22 = vadd.f32 %v3386_v43, %v1325_v60  ;;  %v1473_v60 = vsel %vm713_vm0, %v710_v37, 0.0 }
 0x2ad   : > { %v2419_v11 = vperm.slane %v1686_v31, %v3507_v9  ;;  %v2417_v3 = vperm.slane %v1685_v48, %v3510_v44  ;;  %v1431_v48 = vsel %vm713_vm0, %v696_v23, 0.0 }
 0x2ae   : > { %v2421_v63 = vperm.slane %v1687_v22, %v3520_v7 }
 0x2af   : > { %v2418_v53 = vsel %vm2033_vm9, %v2417_v3, %v2416_v41  ;;  %1423 = vadd.xlane.f32.xlu1 %v1422_v34  ;;  %1465 = vadd.xlane.f32.xlu0 %v1464_v0  ;;  %v1476_v0 = vsel %vm713_vm0, %v711_v62, 0.0 }
 0x2b0   : > { %v2420_v59 = vsel %vm5050_vm3, %v2419_v11, %v2418_v53  ;;  %1468 = vadd.xlane.f32.xlu2 %v1467_v16  ;;  %v452_v11 = vld [vmem:[%s2853_s4 + $0x7f8] sm:$0xff] }
 0x2b1   : > { %v2422_v51 = vsel %vm5051_vm12, %v2421_v63, %v2420_v59  ;;  %v712_v63 = vmul.f32 %v4442_v47, %v452_v11 }
 0x2b2   : > { %v1331_v40 = vpop.xlane.xlu1 %1330  ;;  %v1328_v61 = vpop.xlane.xlu0 %1327 }
 0x2b3   : > { %v1689_v6 = vadd.f32 %v3386_v43, %v1331_v40  ;;  %v1688_v35 = vadd.f32 %v3386_v43, %v1328_v61  ;;  %v1334_v18 = vpop.xlane.xlu2 %1333  ;;  %v1479_v29 = vsel %vm713_vm0, %v712_v63, 0.0  ;;  %vm5054_vm0 = vmmov %vm5050_vm3 }
 0x2b4   : > { %v1690_v13 = vadd.f32 %v3386_v43, %v1334_v18  ;;  %vm5055_vm3 = vmmov %vm5051_vm12 }
 0x2b5   : > { %v2425_v45 = vperm.slane %v1689_v6, %v3532_v25  ;;  %v2423_v39 = vperm.slane %v1688_v35, %v3543_v55  ;;  %vm5056_vm12 = vmmov %vm5052_vm10 }
 0x2b6   : > { %v2427_v52 = vperm.slane %v1690_v13, %v3577_v54 }
 0x2b7   : > { %v2424_v2 = vsel %vm5052_vm10, %v2423_v39, %v2422_v51  ;;  %1471 = vadd.xlane.f32.xlu1 %v1470_v14  ;;  %1426 = vadd.xlane.f32.xlu0 %v1425_v46  ;;  %vm5057_vm10 = vcmask 1045509  }
 0x2b8   : > { %v2426_v50 = vsel %vm2049_vm13, %v2425_v45, %v2424_v2  ;;  %1429 = vadd.xlane.f32.xlu2 %v1428_v1 }
 0x2b9   : > { %v2428_v17 = vsel %vm2053_vm14, %v2427_v52, %v2426_v50 }
 0x2ba   : > { %v1340_v26 = vpop.xlane.xlu1 %1339  ;;  %v1337_v41 = vpop.xlane.xlu0 %1336 }
 0x2bb   : > { %v1692_v42 = vadd.f32 %v3386_v43, %v1340_v26  ;;  %v1691_v33 = vadd.f32 %v3386_v43, %v1337_v41  ;;  %v1343_v32 = vpop.xlane.xlu2 %1342 }
 0x2bc   : > { %v1693_v31 = vadd.f32 %v3386_v43, %v1343_v32 }
 0x2bd   : > { %v2431_v22 = vperm.slane %v1692_v42, %v3382_v57  ;;  %v2429_v34 = vperm.slane %v1691_v33, %v3657_v21 }
 0x2be   : > { %v2432_v3 = vperm.slane %v1693_v31, %v3392_v4 }
 0x2bf   : > { %v2430_v16 = vsel %vm2057_vm15, %v2429_v34, %v2428_v17  ;;  %1432 = vadd.xlane.f32.xlu1 %v1431_v48  ;;  %1474 = vadd.xlane.f32.xlu0 %v1473_v60 }
 0x2c0   : > { %v4701_v58 = vsel %vm2530_vm11, %v2430_v16, %v4597_v38  ;;  %v2433_v30 = vsel %vm2001_vm1, %v2432_v3, %v2431_v22  ;;  %1477 = vadd.xlane.f32.xlu2 %v1476_v0  ;;  %vm5053_vm11 = vcmask 261312  }
 0x2c2   : > { %v1349_v24 = vpop.xlane.xlu1 %1348  ;;  %v1346_v53 = vpop.xlane.xlu0 %1345 }
 0x2c3   : > { %v1695_v59 = vadd.f32 %v3386_v43, %v1349_v24  ;;  %v1694_v28 = vadd.f32 %v3386_v43, %v1346_v53  ;;  %v1352_v20 = vpop.xlane.xlu2 %1351 }
 0x2c4   : > { %v1696_v51 = vadd.f32 %v3386_v43, %v1352_v20 }
 0x2c5   : > { %v2436_v40 = vperm.slane %v1695_v59, %v3413_v12  ;;  %v2434_v38 = vperm.slane %v1694_v28, %v3408_v27 }
 0x2c6   : > { %v2438_v61 = vperm.slane %v1696_v51, %v3429_v5 }
 0x2c7   : > { %v2435_v6 = vsel %vm2005_vm2, %v2434_v38, %v2433_v30  ;;  %1480 = vadd.xlane.f32.xlu0 %v1479_v29 }
 0x2c8   : > { %v2437_v47 = vsel %vm5053_vm11, %v2436_v40, %v2435_v6 }
 0x2c9   : > { %v2439_v35 = vsel %vm2013_vm4, %v2438_v61, %v2437_v47 }
 0x2ca   : > { %v1358_v18 = vpop.xlane.xlu1 %1357  ;;  %v1355_v13 = vpop.xlane.xlu0 %1354 }
 0x2cb   : > { %v1698_v14 = vadd.f32 %v3386_v43, %v1358_v18  ;;  %v1697_v46 = vadd.f32 %v3386_v43, %v1355_v13  ;;  %v1361_v45 = vpop.xlane.xlu2 %1360 }
 0x2cc   : > { %v1699_v39 = vadd.f32 %v3386_v43, %v1361_v45 }
 0x2cd   : > { %v2442_v1 = vperm.slane %v1698_v14, %v3452_v10  ;;  %v2440_v49 = vperm.slane %v1697_v46, %v3439_v8 }
 0x2ce   : > { %v2444_v15 = vperm.slane %v1699_v39, %v3473_v56 }
 0x2cf   : > { %v2441_v52 = vsel %vm2017_vm5, %v2440_v49, %v2439_v35 }
 0x2d0   : > { %v2443_v19 = vsel %vm2021_vm6, %v2442_v1, %v2441_v52 }
 0x2d1   : > { %v2445_v2 = vsel %vm2025_vm7, %v2444_v15, %v2443_v19 }
 0x2d2   : > { %v1367_v50 = vpop.xlane.xlu1 %1366  ;;  %v1364_v23 = vpop.xlane.xlu0 %1363 }
 0x2d3   : > { %v1701_v37 = vadd.f32 %v3386_v43, %v1367_v50  ;;  %v1700_v17 = vadd.f32 %v3386_v43, %v1364_v23  ;;  %v1370_v62 = vpop.xlane.xlu2 %1369 }
 0x2d4   : > { %v1702_v26 = vadd.f32 %v3386_v43, %v1370_v62 }
 0x2d5   : > { %v2448_v41 = vperm.slane %v1701_v37, %v3510_v44  ;;  %v2446_v42 = vperm.slane %v1700_v17, %v3483_v36 }
 0x2d6   : > { %v2450_v33 = vperm.slane %v1702_v26, %v3507_v9 }
 0x2d7   : > { %v2447_v32 = vsel %vm2029_vm8, %v2446_v42, %v2445_v2 }
 0x2d8   : > { %v2449_v31 = vsel %vm2033_vm9, %v2448_v41, %v2447_v32 }
 0x2d9   : > { %v2451_v48 = vsel %vm5054_vm0, %v2450_v33, %v2449_v31 }
 0x2da   : > { %v1376_v60 = vpop.xlane.xlu1 %1375  ;;  %v1373_v22 = vpop.xlane.xlu0 %1372 }
 0x2db   : > { %v1704_v34 = vadd.f32 %v3386_v43, %v1376_v60  ;;  %v1703_v0 = vadd.f32 %v3386_v43, %v1373_v22  ;;  %v1379_v11 = vpop.xlane.xlu2 %1378 }
 0x2dc   : > { %v1705_v3 = vadd.f32 %v3386_v43, %v1379_v11 }
 0x2dd   : > { %v2454_v16 = vperm.slane %v1704_v34, %v3543_v55  ;;  %v2452_v30 = vperm.slane %v1703_v0, %v3520_v7 }
 0x2de   : > { %v2456_v63 = vperm.slane %v1705_v3, %v3532_v25 }
 0x2df   : > { %v2453_v24 = vsel %vm5055_vm3, %v2452_v30, %v2451_v48 }
 0x2e0   : > { %v2455_v53 = vsel %vm5056_vm12, %v2454_v16, %v2453_v24 }
 0x2e1   : > { %v2457_v59 = vsel %vm2049_vm13, %v2456_v63, %v2455_v53 }
 0x2e2   : > { %v1385_v28 = vpop.xlane.xlu1 %1384  ;;  %v1382_v20 = vpop.xlane.xlu0 %1381 }
 0x2e3   : > { %v1707_v51 = vadd.f32 %v3386_v43, %v1385_v28  ;;  %v1706_v29 = vadd.f32 %v3386_v43, %v1382_v20  ;;  %v1388_v40 = vpop.xlane.xlu2 %1387 }
 0x2e4   : > { %v1708_v47 = vadd.f32 %v3386_v43, %v1388_v40 }
 0x2e5   : > { %v2460_v38 = vperm.slane %v1707_v51, %v3657_v21  ;;  %v2458_v61 = vperm.slane %v1706_v29, %v3577_v54 }
 0x2e6   : > { %v2462_v46 = vperm.slane %v1708_v47, %v3382_v57 }
 0x2e7   : > { %v2459_v6 = vsel %vm2053_vm14, %v2458_v61, %v2457_v59 }
 0x2e8   : > { %v2461_v35 = vsel %vm2057_vm15, %v2460_v38, %v2459_v6 }
 0x2e9   : > { %v4751_v18 = vsel %vm5057_vm10, %v2461_v35, %v4701_v58 }
 0x2ea   : > { %v1394_v13 = vpop.xlane.xlu1 %1393  ;;  %v1391_v14 = vpop.xlane.xlu0 %1390 }
 0x2eb   : > { %v1709_v45 = vadd.f32 %v3386_v43, %v1391_v14  ;;  %v1397_v39 = vpop.xlane.xlu2 %1396  ;;  %v1710_v32 = vadd.f32 %v3386_v43, %v1394_v13 }
 0x2ec   : > { %v1711_v48 = vadd.f32 %v3386_v43, %v1397_v39 }
 0x2ed   : > { %v2463_v1 = vperm.slane %v1709_v45, %v3392_v4  ;;  %v2465_v60 = vperm.slane %v1710_v32, %v3408_v27 }
 0x2ee   : > { %v2467_v11 = vperm.slane %v1711_v48, %v3413_v12 }
 0x2ef   : > { %v2464_v49 = vsel %vm2001_vm1, %v2463_v1, %v2462_v46 }
 0x2f0   : > { %v2466_v63 = vsel %vm2005_vm2, %v2465_v60, %v2464_v49 }
 0x2f1   : > { %v2468_v29 = vsel %vm5053_vm11, %v2467_v11, %v2466_v63 }
 0x2f2   : > { %v1403_v15 = vpop.xlane.xlu1 %1402  ;;  %v1400_v52 = vpop.xlane.xlu0 %1399 }
 0x2f3   : > { %v1406_v19 = vpop.xlane.xlu2 %1405  ;;  %v1712_v22 = vadd.f32 %v3386_v43, %v1400_v52  ;;  %v1713_v3 = vadd.f32 %v3386_v43, %v1403_v15 }
 0x2f4   : > { %v1714_v51 = vadd.f32 %v3386_v43, %v1406_v19 }
 0x2f5   : > { %v2469_v24 = vperm.slane %v1712_v22, %v3429_v5  ;;  %v2471_v40 = vperm.slane %v1713_v3, %v3439_v8 }
 0x2f7   : > { %v2470_v6 = vsel %vm2013_vm4, %v2469_v24, %v2468_v29 }
 0x2f8   : > { %v2472_v14 = vsel %vm2017_vm5, %v2471_v40, %v2470_v6 }
 0x2fa   : > { %v1412_v2 = vpop.xlane.xlu1 %1411  ;;  %v1409_v50 = vpop.xlane.xlu0 %1408 }
 0x2fb   : > { %v1415_v23 = vpop.xlane.xlu2 %1414  ;;  %v1715_v38 = vadd.f32 %v3386_v43, %v1409_v50  ;;  %v1716_v13 = vadd.f32 %v3386_v43, %v1412_v2 }
 0x2fc   : > { %v1717_v19 = vadd.f32 %v3386_v43, %v1415_v23 }
 0x2fd   : > { %v2475_v46 = vperm.slane %v1715_v38, %v3473_v56  ;;  %v2477_v2 = vperm.slane %v1716_v13, %v3483_v36 }
 0x2fe   : > { %v2479_v23 = vperm.slane %v1717_v19, %v3510_v44 }
 0x302   : > { %v1421_v37 = vpop.xlane.xlu1 %1420  ;;  %v1418_v58 = vpop.xlane.xlu0 %1417 }
 0x303   : > { %v1436_v17 = vpop.xlane.xlu2 %1435 }
 0x304   : > { %v1724_v34 = vadd.f32 %v3386_v43, %v1436_v17  ;;  %v1718_v17 = vadd.f32 %v3386_v43, %v1418_v58 }
 0x306   : > { %v2493_v28 = vperm.slane %v1724_v34, %v3382_v57  ;;  %v2481_v58 = vperm.slane %v1718_v17, %v3507_v9 }
 0x30a   : > { %v1442_v62 = vpop.xlane.xlu1 %1441  ;;  %v1439_v26 = vpop.xlane.xlu0 %1438 }
 0x30b   : > { %v1445_v41 = vpop.xlane.xlu2 %1444  ;;  %v1725_v0 = vadd.f32 %v3386_v43, %v1439_v26  ;;  %v1726_v53 = vadd.f32 %v3386_v43, %v1442_v62 }
 0x30c   : > { %v1727_v61 = vadd.f32 %v3386_v43, %v1445_v41 }
 0x30d   : > { %v2494_v20 = vperm.slane %v1725_v0, %v3392_v4  ;;  %v2496_v47 = vperm.slane %v1726_v53, %v3408_v27  ;;  %v2473_v4 = vperm.slane %v1714_v51, %v3452_v10 }
 0x30e   : > { %v2498_v45 = vperm.slane %v1727_v61, %v3413_v12 }
 0x30f   : > { %v2495_v57 = vsel %vm2001_vm1, %v2494_v20, %v2493_v28  ;;  %v2474_v50 = vsel %vm2021_vm6, %v2473_v4, %v2472_v14  ;;  %vm5058_vm1 = vmmov %vm5053_vm11 }
 0x310   : > { %v2497_v27 = vsel %vm2005_vm2, %v2496_v47, %v2495_v57  ;;  %v2476_v12 = vsel %vm2025_vm7, %v2475_v46, %v2474_v50  ;;  %vm5059_vm2 = vmmov %vm5054_vm0 }
 0x311   : > { %v2499_v26 = vsel %vm5058_vm1, %v2498_v45, %v2497_v27  ;;  %v2478_v32 = vsel %vm2029_vm8, %v2477_v2, %v2476_v12 }
 0x312   : > { %v1451_v42 = vpop.xlane.xlu1 %1450  ;;  %v1448_v33 = vpop.xlane.xlu0 %1447 }
 0x313   : > { %v1454_v31 = vpop.xlane.xlu2 %1453  ;;  %v1728_v35 = vadd.f32 %v3386_v43, %v1448_v33  ;;  %v1729_v39 = vadd.f32 %v3386_v43, %v1451_v42  ;;  %v1719_v33 = vadd.f32 %v3386_v43, %v1421_v37  ;;  %v2480_v37 = vsel %vm2033_vm9, %v2479_v23, %v2478_v32 }
 0x314   : > { %v1730_v62 = vadd.f32 %v3386_v43, %v1454_v31  ;;  %v2482_v63 = vsel %vm5059_vm2, %v2481_v58, %v2480_v37 }
 0x315   : > { %v2500_v15 = vperm.slane %v1728_v35, %v3429_v5  ;;  %v2502_v41 = vperm.slane %v1729_v39, %v3439_v8 }
 0x316   : > { %v2504_v31 = vperm.slane %v1730_v62, %v3452_v10 }
 0x317   : > { %v2501_v5 = vsel %vm2013_vm4, %v2500_v15, %v2499_v26  ;;  %vm5060_vm4 = vmmov %vm5055_vm3 }
 0x318   : > { %v2503_v60 = vsel %vm2017_vm5, %v2502_v41, %v2501_v5  ;;  %vm5061_vm5 = vmmov %vm5056_vm12 }
 0x319   : > { %v2505_v10 = vsel %vm2021_vm6, %v2504_v31, %v2503_v60  ;;  %vm5062_vm6 = vmmov %vm5054_vm0  ;;  %vm5066_vm0 = vcmask 1047559  }
 0x31a   : > { %v1460_v16 = vpop.xlane.xlu1 %1459  ;;  %v1457_v30 = vpop.xlane.xlu0 %1456 }
 0x31b   : > { %v1463_v59 = vpop.xlane.xlu2 %1462  ;;  %v1731_v42 = vadd.f32 %v3386_v43, %v1457_v30  ;;  %v1732_v48 = vadd.f32 %v3386_v43, %v1460_v16  ;;  %v2483_v30 = vperm.slane %v1719_v33, %v3520_v7 }
 0x31c   : > { %v1733_v24 = vadd.f32 %v3386_v43, %v1463_v59 }
 0x31d   : > { %v2506_v8 = vperm.slane %v1731_v42, %v3473_v56  ;;  %v2508_v16 = vperm.slane %v1732_v48, %v3483_v36  ;;  %v2484_v38 = vsel %vm5060_vm4, %v2483_v30, %v2482_v63 }
 0x31e   : > { %v2510_v40 = vperm.slane %v1733_v24, %v3510_v44 }
 0x31f   : > { %v2507_v56 = vsel %vm2025_vm7, %v2506_v8, %v2505_v10  ;;  %vm5063_vm7 = vcmask 1046534  }
 0x320   : > { %v2509_v29 = vsel %vm2029_vm8, %v2508_v16, %v2507_v56  ;;  %vm5064_vm8 = vmmov %vm5055_vm3 }
 0x321   : > { %v2511_v46 = vsel %vm2033_vm9, %v2510_v40, %v2509_v29  ;;  %vm5065_vm9 = vmmov %vm5061_vm5 }
 0x322   : > { %v1424_v1 = vpop.xlane.xlu1 %1423  ;;  %v1466_v49 = vpop.xlane.xlu0 %1465 }
 0x323   : > { %v1469_v52 = vpop.xlane.xlu2 %1468  ;;  %v1720_v22 = vadd.f32 %v3386_v43, %v1424_v1  ;;  %v1734_v28 = vadd.f32 %v3386_v43, %v1466_v49 }
 0x324   : > { %v1735_v36 = vadd.f32 %v3386_v43, %v1469_v52 }
 0x325   : > { %v2485_v53 = vperm.slane %v1720_v22, %v3543_v55  ;;  %v2512_v61 = vperm.slane %v1734_v28, %v3507_v9 }
 0x326   : > { %v2514_v45 = vperm.slane %v1735_v36, %v3520_v7 }
 0x327   : > { %v2486_v59 = vsel %vm5061_vm5, %v2485_v53, %v2484_v38  ;;  %v2513_v9 = vsel %vm5062_vm6, %v2512_v61, %v2511_v46 }
 0x328   : > { %v2515_v7 = vsel %vm5064_vm8, %v2514_v45, %v2513_v9 }
 0x32a   : > { %v1472_v34 = vpop.xlane.xlu1 %1471  ;;  %v1427_v0 = vpop.xlane.xlu0 %1426 }
 0x32b   : > { %v1721_v11 = vadd.f32 %v3386_v43, %v1427_v0  ;;  %v1430_v3 = vpop.xlane.xlu2 %1429  ;;  %v1736_v6 = vadd.f32 %v3386_v43, %v1472_v34 }
 0x32c   : > { %v1722_v20 = vadd.f32 %v3386_v43, %v1430_v3 }
 0x32d   : > { %v2487_v51 = vperm.slane %v1721_v11, %v3532_v25  ;;  %v2516_v1 = vperm.slane %v1736_v6, %v3543_v55 }
 0x32e   : > { %v2489_v47 = vperm.slane %v1722_v20, %v3577_v54 }
 0x32f   : > { %v2488_v4 = vsel %vm2049_vm13, %v2487_v51, %v2486_v59  ;;  %v2517_v50 = vsel %vm5065_vm9, %v2516_v1, %v2515_v7 }
 0x330   : > { %v2490_v49 = vsel %vm2053_vm14, %v2489_v47, %v2488_v4 }
 0x332   : > { %v1433_v35 = vpop.xlane.xlu1 %1432  ;;  %v1475_v57 = vpop.xlane.xlu0 %1474 }
 0x333   : > { %v1723_v13 = vadd.f32 %v3386_v43, %v1433_v35  ;;  %v1737_v44 = vadd.f32 %v3386_v43, %v1475_v57  ;;  %v1478_v14 = vpop.xlane.xlu2 %1477 }
 0x334   : > { %v1738_v27 = vadd.f32 %v3386_v43, %v1478_v14 }
 0x335   : > { %v2491_v39 = vperm.slane %v1723_v13, %v3657_v21  ;;  %v2518_v52 = vperm.slane %v1737_v44, %v3532_v25 }
 0x336   : > { %v2520_v2 = vperm.slane %v1738_v27, %v3577_v54 }
 0x337   : > { %v2492_v15 = vsel %vm2057_vm15, %v2491_v39, %v2490_v49  ;;  %v2519_v17 = vsel %vm2049_vm13, %v2518_v52, %v2517_v50 }
 0x338   : > { %v2543_v19 = vsel %vm5063_vm7, %v2492_v15, %v4751_v18  ;;  %v2521_v26 = vsel %vm2053_vm14, %v2520_v2, %v2519_v17 }
 0x33a   : > { %v1481_v55 = vpop.xlane.xlu0 %1480 }
 0x33b   : > { %v1739_v62 = vadd.f32 %v3386_v43, %v1481_v55 }
 0x33d   : > { %v2522_v12 = vperm.slane %v1739_v62, %v3657_v21  ;;  %2556 = sbr.rel (!%p2834_p5) target bundleno = 865 (0x361), region = 36 }
 0x33f   : > { %v2523_v25 = vsel %vm2057_vm15, %v2522_v12, %v2521_v26 }
 0x340   : > { %v2544_v41 = vsel %vm5066_vm0, %v2523_v25, %v2543_v19 }
 0x341   : > { %2548 = vst [vmem:[%s4201_s12 + $0x8] sm:$0xff] %v2544_v41 }
 0x342   : > { %s5075_s25 = smov (!%p2559_p11, %s2558_s25), 2 }
 0x343   : > { %s2643_s26 = sshll.u32 %s5075_s25, 3 }
 0x344   : > { %s2562_s27 = ssub.s32 16, %s2643_s26 }
 0x345   : > { %s2563_s28 = sshll.u32 %s2562_s27, 4 }
 0x346   : > { %2564 = vsyncadd %s4852_s20, %s2563_s28  ;;  %p4861_p12 = scmp.ne.s32.totalorder %s2643_s26, 0  ;;  %s2650_s23 = sshll.u32 %s2817_s2, 4 }
 0x347   : > { %s2567_s5 = scalar_lea.hbm %s4916_s3, %s2650_s23  ;;  %s2569_s6 = sshll.u32 %s4201_s12, 4  ;;  %s4870_s6 = int_to_ptr.vmem [resolvable:$true] %s2569_s6 }
 0x348   : > { %s2571_s7 = sshll.u32 %s2567_s5, 4  ;;  %s2647_s8 = sshll.u32 %s5075_s25, 7  ;;  %s4872_s7 = int_to_ptr.hbm [resolvable:$true] %s2571_s7 }
 0x349   : > { %s2695_s9 = sshra.s32 %s4870_s6, 4  ;;  %s2697_s10 = sshrl.u32 %s2647_s8, 4  ;;  %s2696_s9 = int_to_ptr.vmem [resolvable:$true] %s2695_s9 }
 0x34a   : > { %s2702_s11 = scalar_lea.vmem %s2696_s9, %s2697_s10  ;;  %s2770_s2 = smov [#allocation3]  }
 0x34b   : > { %p2703_p13 = scmp.ne.s32.totalorder %s2696_s9, %s2702_s11  ;;  %s2706_s13 = scalar_lea.vmem %s2770_s2, 32 }
 0x34c   : > { %p2708_p2 = scmp.lt.s32.totalorder %s2706_s13, %s2702_s11 }
 0x34d   : > { %p2704_p0 = pnand %p2703_p13, %p4861_p12 }
 0x34f   : > { %p2705_p1 = pneg %p2704_p0 }
 0x351   : > { %p2710_p3 = pnand %p2708_p2, %p2705_p1 }
 0x353   : > { %2713 = shalt.err (!%p2710_p3)
}
 0x354   : > { %s2714_s12 = sshra.s32 %s4872_s7, 4  ;;  %s2725_s27 = scalar_lea.hbm %s4916_s3, 24  ;;  %s2715_s12 = int_to_ptr.hbm [resolvable:$true] %s2714_s12 }
 0x355   : > { %s2721_s18 = scalar_lea.hbm %s2715_s12, %s2697_s10  ;;  %p2726_p8 = scmp.lt.s32.totalorder %s2715_s12, %s4916_s3 }
 0x356   : > { %p2722_p4 = scmp.ne.s32.totalorder %s2715_s12, %s2721_s18  ;;  %p2727_p9 = scmp.lt.s32.totalorder %s2725_s27, %s2721_s18 }
 0x358   : > { %p2723_p5 = pnand %p2722_p4, %p4861_p12  ;;  %p2728_p10 = por %p2727_p9, %p2726_p8 }
 0x35a   : > { %p2724_p7 = pneg %p2723_p5 }
 0x35c   : > { %p2729_p11 = pnand %p2728_p10, %p2724_p7 }
 0x35e   : > { %2732 = shalt.err (!%p2729_p11)
}
 0x35f   : > { %s2771_s30 = smov 128   ;;  %s2772_s4 = smov 8  }
 0x360   : > { %2577 = dma.vmem_to_hbm [thread:$0]  (%p4861_p12), %s4870_s6, %s2647_s8, %s4872_s7, %s4852_s20, %s2771_s30, %s2771_s30, %s2772_s4  }
 0x361 PF: > { %p2656_p13 = scmp.ge.s32.totalorder %s2768_s17, 2  ;;  %s2586_s5 = sand.u32 1, %s2756_s14  }
 0x362   : > { %s2587_s9 = scalar_lea.sflag [#allocation4], %s2586_s5 }
 0x363   : > { %p2653_p0 = pnand %p2656_p13, %p2838_p6 }
 0x365   : > { %p2654_p1 = pneg %p2653_p0 }
 0x367   : > { %2751 = dma.done.wait (%p2654_p1), %s2587_s9, 256  }
 0x368   : > { %2753 = vsyncadd (%p2654_p1), %s2587_s9, 4294967040  ;;  %p14_p2 = scmp.ge.s32.totalorder %s2821_s19, 4   ;;  %s5068_s14 = smov %s2760_s15 }
 0x369   : > { %s5069_s15 = smov %s2764_s16  ;;  %s5070_s16 = smov %s2832_s22 }
 0x36a   : > { %s5071_s17 = smov %s2821_s19  ;;  %16 = sbr.rel (!%p14_p2) target bundleno = 5 (0x5), region = 67 }
 0x36f   :  { %2593 = vsyncpa [#allocation4], 1 }
 0x370   :  { %2595 = vsyncpa [#allocation4 + $0x1], 1 }

</bundles_post_ra>
